<compile_context>
chip_gen: v7x
topology: tpu7x:2x2x1
jax: 0.10.0
libtpu: 0.0.40
codegen_flags: <defaults>
</compile_context>

<pallas_src>
import numpy as np
import jax
import jax.numpy as jnp
from jax import lax
from jax.experimental import pallas as pl
from jax.experimental.pallas import tpu as pltpu


# --------------------------- host-side matrix builders ----------------------

def _bilinear_matrix(n_in, n_out):
    # F.interpolate(mode='bilinear', scale_factor=2, align_corners=True).
    m = np.zeros((n_out, n_in), np.float32)
    if n_in == 1:
        m[:, 0] = 1.0
        return m
    for o in range(n_out):
        src = o * (n_in - 1) / (n_out - 1)
        lo = min(int(np.floor(src)), n_in - 2)
        frac = src - lo
        m[o, lo] += 1.0 - frac
        m[o, lo + 1] += frac
    return m


def _pool_h_matrix(h):
    # AvgPool2d(2) along one axis; even sizes only (all levels even here).
    assert h % 2 == 0, "odd spatial size (ceil_mode) not implemented"
    p = np.zeros((h // 2, h), np.float32)
    for v in range(h // 2):
        p[v, 2 * v] = 0.5
        p[v, 2 * v + 1] = 0.5
    return p


def _pool_wc_matrix(w, c):
    # (W*C, (W/2)*C): average adjacent column blocks, identity over channels.
    return np.kron(_pool_h_matrix(w).T, np.eye(c, dtype=np.float32))


def _up_h_matrix(h):
    return _bilinear_matrix(h, 2 * h)                 # (2H, H), left-applied


def _up_wc_matrix(w, c):
    # (W*C, 2W*C): bilinear along width, identity over channels, right-applied.
    return np.kron(_bilinear_matrix(w, 2 * w).T, np.eye(c, dtype=np.float32))


def _banded_conv_cat(w33, wsp):
    # w33: (3, 3, Cin, Cout).  For the lane-dense layout X[r, w*Cin + ci]:
    #   Y = X @ Mcat,  Mcat = [M0 | M1 | M2]  (shape (W*Cin, 3*W*Cout))
    # where (X @ M[dy])[r, u*Cout+co] = sum_dx x[r, u+dx-1, :] @ w[dy, dx].
    # dy=0 must then be shifted DOWN one row, dy=2 shifted UP one row (done
    # in-kernel with pltpu.roll + boundary masks).
    w33 = np.asarray(w33, np.float32)
    cin, cout = w33.shape[2], w33.shape[3]
    mats = []
    for dy in range(3):
        m = np.zeros((wsp * cin, wsp * cout), np.float32)
        for dx in range(3):
            band = np.zeros((wsp, wsp), np.float32)
            for col in range(wsp):
                v = col - (dx - 1)
                if 0 <= v < wsp:
                    band[col, v] = 1.0
            m += np.kron(band, w33[dy, dx])
        mats.append(m)
    return np.concatenate(mats, axis=1)               # (W*Cin, 3*W*Cout)


def _bias_row(b, wsp):
    return np.tile(np.asarray(b, np.float32), wsp)[None, :]   # (1, W*Cout)


def _head_matrix(w, wsp):
    # 1x1 conv (C0 -> ncls_pad) as a block-diagonal (W*C0, W*ncls_pad) matrix.
    return np.kron(np.eye(wsp, dtype=np.float32), np.asarray(w, np.float32))


# ----------------------------- parameter init -------------------------------

def _conv_init(key, kh, kw, cin, cout):
    # Deterministic init mirroring nn.Conv2d default (uniform +/- 1/sqrt(fan_in)).
    k1, k2 = jax.random.split(key)
    bound = 1.0 / np.sqrt(kh * kw * cin)
    w = jax.random.uniform(k1, (kh, kw, cin, cout), jnp.float32, -bound, bound)
    b = jax.random.uniform(k2, (cout,), jnp.float32, -bound, bound)
    return w, b


def init_params(key, input_channels, num_classes, num_filters):
    keys = iter(jax.random.split(key, 4 * 3 * len(num_filters) + 8))
    down = []
    prev = input_channels
    for nf in num_filters:
        convs, cin = [], prev
        for _ in range(3):
            convs.append(_conv_init(next(keys), 3, 3, cin, nf))
            cin = nf
        down.append(convs)
        prev = nf
    up = []
    out_ch = num_filters[-1]
    for i in range(len(num_filters) - 2, -1, -1):
        cin = out_ch + num_filters[i]
        convs, c = [], cin
        for _ in range(3):
            convs.append(_conv_init(next(keys), 3, 3, c, num_filters[i]))
            c = num_filters[i]
        up.append(convs)
        out_ch = num_filters[i]
    last_w, last_b = _conv_init(next(keys), 1, 1, num_filters[0], num_classes)
    return {"down": down, "up": up, "last": (last_w[0, 0], last_b)}


# --------------------- lowering params -> fused-kernel plan ------------------

def _prepare(params, input_channels, num_classes, num_filters, H, W, Bt,
             ncls_pad):
    """Builds the single packed weight slab + the op plan.

    Plan ops (weight entries are (row_offset, n_rows, n_cols) into the slab):
      ("conv",  m, b, h)
      ("conv2", mu, ms, b, h, skip_level)     # skip-concat folded into weights
      ("pool",  ph_blockdiag, pwc)
      ("up",    uh_blockdiag, uwc)
      ("save_skip", level)
      ("head",  m, b)
    """
    arrays, plan = [], []

    def add(a):
        arrays.append(np.asarray(a, np.float32))
        return len(arrays) - 1

    eye_bt = np.eye(Bt, dtype=np.float32)
    n_lv = len(num_filters)
    h, wsp = H, W
    prev_c = input_channels

    # contracting path
    for li, nf in enumerate(num_filters):
        if li > 0:
            plan.append(("pool", add(np.kron(eye_bt, _pool_h_matrix(h))),
                         add(_pool_wc_matrix(wsp, prev_c))))
            h //= 2
            wsp //= 2
        for (wk, bk) in params["down"][li]:
            plan.append(("conv", add(_banded_conv_cat(np.asarray(wk), wsp)),
                         add(_bias_row(np.asarray(bk), wsp)), h))
        prev_c = nf
        if li != n_lv - 1:
            plan.append(("save_skip", li))

    # expanding path
    out_c = num_filters[-1]
    for ui in range(n_lv - 1):
        lvl = n_lv - 2 - ui
        plan.append(("up", add(np.kron(eye_bt, _up_h_matrix(h))),
                     add(_up_wc_matrix(wsp, out_c))))
        h *= 2
        wsp *= 2
        convs = params["up"][ui]
        w0, b0 = convs[0]
        w0 = np.asarray(w0)                       # (3,3, out_c + skip_c, cout)
        plan.append(("conv2",
                     add(_banded_conv_cat(w0[:, :, :out_c, :], wsp)),
                     add(_banded_conv_cat(w0[:, :, out_c:, :], wsp)),
                     add(_bias_row(np.asarray(b0), wsp)),
                     h, lvl))
        for (wk, bk) in convs[1:]:
            plan.append(("conv", add(_banded_conv_cat(np.asarray(wk), wsp)),
                         add(_bias_row(np.asarray(bk), wsp)), h))
        out_c = num_filters[lvl]

    # Dropout2d(p=0) is the identity; 1x1 conv head with zero-padded classes
    # so the output store is lane-dense.
    wl, bl = params["last"]
    wl = np.asarray(wl, np.float32)
    bl = np.asarray(bl, np.float32)
    wl_pad = np.zeros((wl.shape[0], ncls_pad), np.float32)
    wl_pad[:, :num_classes] = wl
    bl_pad = np.zeros((ncls_pad,), np.float32)
    bl_pad[:num_classes] = bl
    plan.append(("head", add(_head_matrix(wl_pad, wsp)),
                 add(_bias_row(bl_pad, wsp))))

    # ---- pack everything into one (8,128)-padded slab ----
    width = max(a.shape[1] for a in arrays)
    width = -(-width // 128) * 128
    coords, pieces, off = [], [], 0
    for a in arrays:
        r, c = a.shape
        r_pad = -(-r // 8) * 8
        block = np.zeros((r_pad, width), np.float32)
        block[:r, :c] = a
        pieces.append(block)
        coords.append((off, r, c))
        off += r_pad
    slab = np.concatenate(pieces, axis=0)

    def remap(op):
        tag = op[0]
        if tag == "conv":
            return ("conv", coords[op[1]], coords[op[2]], op[3])
        if tag == "conv2":
            return ("conv2", coords[op[1]], coords[op[2]], coords[op[3]],
                    op[4], op[5])
        if tag in ("pool", "up"):
            return (tag, coords[op[1]], coords[op[2]])
        if tag == "head":
            return ("head", coords[op[1]], coords[op[2]])
        return op

    return jnp.asarray(slab), [remap(op) for op in plan]


# ------------------------------- fused kernel --------------------------------

def _mm(a, b):
    return jnp.dot(a, b, preferred_element_type=jnp.float32)


def _make_fused_kernel(plan):
    def kernel(x_ref, w_ref, o_ref):
        def rd(t):
            off, r, c = t
            return w_ref[off:off + r, 0:c]            # static slice -> view

        masks = {}                                    # memoized per (rows, h)

        def boundary_masks(rows, h, wc):
            key = (rows, h, wc)
            if key not in masks:
                rid = lax.broadcasted_iota(jnp.int32, (rows, wc), 0) % h
                masks[key] = (rid != 0, rid != h - 1)
            return masks[key]

        def conv_finish(y, bias, h, rows, wc):
            # y = [Y(dy=0) | Y(dy=1) | Y(dy=2)]; dy=0 shifts down, dy=2 up.
            y_m = y[:, 0:wc]
            y_0 = y[:, wc:2 * wc]
            y_p = y[:, 2 * wc:3 * wc]
            top_ok, bot_ok = boundary_masks(rows, h, wc)
            dn = jnp.where(top_ok, pltpu.roll(y_m, shift=1, axis=0), 0.0)
            up = jnp.where(bot_ok, pltpu.roll(y_p, shift=rows - 1, axis=0), 0.0)
            return jnp.maximum(y_0 + dn + up + bias, 0.0)

        x = x_ref[...]                                # (Bt*H, W*Cin)
        skips = {}
        for op in plan:
            tag = op[0]
            if tag == "conv":
                _, m, b, h = op
                wc = m[2] // 3
                y = _mm(x, rd(m))
                x = conv_finish(y, rd(b), h, x.shape[0], wc)
            elif tag == "conv2":
                _, mu, ms, b, h, lvl = op
                wc = mu[2] // 3
                y = _mm(x, rd(mu)) + _mm(skips[lvl], rd(ms))
                x = conv_finish(y, rd(b), h, x.shape[0], wc)
            elif tag in ("pool", "up"):
                _, mh, mwc = op
                x = _mm(rd(mh), _mm(x, rd(mwc)))
            elif tag == "save_skip":
                skips[op[1]] = x
            elif tag == "head":
                _, m, b = op
                o_ref[...] = _mm(x, rd(m)) + rd(b)
    return kernel


# ------------------------------- public wrapper -------------------------------

def build_forward(params, input_channels, num_classes, num_filters, H, W,
                  batch, batch_tile=None):
    levels = len(num_filters) - 1
    assert H % (2 ** levels) == 0 and W % (2 ** levels) == 0
    Bt = batch if batch_tile is None else batch_tile
    assert batch % Bt == 0 and (Bt * H) % 8 == 0

    # Pad classes so the output store is lane-dense (W * ncls_pad % 128 == 0).
    ncls_pad = num_classes
    while (W * ncls_pad) % 128 != 0 and ncls_pad < num_classes + 128:
        ncls_pad += 1
    if (W * ncls_pad) % 128 != 0:
        ncls_pad = num_classes                        # fall back: masked store

    slab, plan = _prepare(params, input_channels, num_classes, num_filters,
                          H, W, Bt, ncls_pad)
    kernel = _make_fused_kernel(plan)
    wc_in = W * input_channels
    wc_out = W * ncls_pad
    slab_rows, slab_w = slab.shape
    grid = (batch // Bt,)

    def forward(slab_arr, x_nchw):
        B = x_nchw.shape[0]
        # NCHW -> lane-dense rows: row = b*H + h, lanes = w*Cin + c.
        x = jnp.transpose(x_nchw, (0, 2, 3, 1)).astype(jnp.float32)
        x = x.reshape(B * H, wc_in)
        out = pl.pallas_call(
            kernel,
            out_shape=jax.ShapeDtypeStruct((B * H, wc_out), jnp.float32),
            grid=grid,
            in_specs=[pl.BlockSpec((Bt * H, wc_in), lambda i: (i, 0)),
                      pl.BlockSpec((slab_rows, slab_w), lambda i: (0, 0))],
            out_specs=pl.BlockSpec((Bt * H, wc_out), lambda i: (i, 0)),
            compiler_params=pltpu.CompilerParams(
                dimension_semantics=("parallel",),    # v7x: shard over 2 TCs
                vmem_limit_bytes=32 * 1024 * 1024,    # v7x-safe (64 MiB phys)
            ),
        )(x, slab_arr)
        out = out.reshape(B, H, W, ncls_pad)[..., :num_classes]
        return jnp.transpose(out, (0, 3, 1, 2))       # back to NCHW

    return slab, jax.jit(forward)


# --------------------------- pure-JAX reference ------------------------------

def _ref_conv3x3(x, w, b, prec):
    H, W = x.shape[1], x.shape[2]
    xp = jnp.pad(x, ((0, 0), (1, 1), (1, 1), (0, 0)))
    out = jnp.zeros(x.shape[:3] + (w.shape[-1],), jnp.float32)
    for dy in range(3):
        for dx in range(3):
            out = out + jnp.einsum("bhwi,io->bhwo",
                                   xp[:, dy:dy + H, dx:dx + W, :], w[dy, dx],
                                   precision=prec)
    return jnp.maximum(out + b, 0.0)


def reference_forward(params, x_nchw, num_filters):
    prec = lax.Precision.HIGHEST
    x = jnp.transpose(x_nchw, (0, 2, 3, 1)).astype(jnp.float32)
    n_lv = len(num_filters)
    blocks = []
    for li, convs in enumerate(params["down"]):
        if li > 0:
            B, H, W, C = x.shape
            x = x.reshape(B, H // 2, 2, W // 2, 2, C).mean(axis=(2, 4))
        for (w, b) in convs:
            x = _ref_conv3x3(x, w, b, prec)
        if li != n_lv - 1:
            blocks.append(x)
    for ui, convs in enumerate(params["up"]):
        B, H, W, C = x.shape
        uh = jnp.asarray(_bilinear_matrix(H, 2 * H))
        uw = jnp.asarray(_bilinear_matrix(W, 2 * W))
        x = jnp.einsum("oi,biwc->bowc", uh, x, precision=prec)
        x = jnp.einsum("pw,bowc->bopc", uw, x, precision=prec)
        x = jnp.concatenate([x, blocks[-ui - 1]], axis=-1)
        for (w, b) in convs:
            x = _ref_conv3x3(x, w, b, prec)
    wl, bl = params["last"]
    x = jnp.einsum("bhwc,co->bhwo", x, wl, precision=prec) + bl
    return jnp.transpose(x, (0, 3, 1, 2))


# ---------------------------------- main -------------------------------------

if __name__ == "__main__":
    input_channels, num_classes = 1, 2
    num_filters = [8, 16, 32]
    B, H, W = 4, 16, 16

    key = jax.random.PRNGKey(0)
    kp, kx = jax.random.split(key)
    params = init_params(kp, input_channels, num_classes, num_filters)
    x = jax.random.normal(kx, (B, input_channels, H, W), jnp.float32)

    slab, fwd = build_forward(params, input_channels, num_classes, num_filters,
                              H, W, batch=B, batch_tile=2)
    y = fwd(slab, x)
    jax.block_until_ready(y)

    assert y.shape == (B, num_classes, H, W), y.shape
    assert bool(jnp.all(jnp.isfinite(y)))

    y_ref = reference_forward(params, x, num_filters)
    np.testing.assert_allclose(np.asarray(y), np.asarray(y_ref),
                               rtol=2e-3, atol=2e-3)
    print("KERNEL_OK")
</pallas_src>

<mosaic_0001>
module attributes {stable_mosaic.version = 11 : i64} {
  func.func @kernel(%arg0: i32, %arg1: memref<32x16xf32, #tpu.memory_space<vmem>>, %arg2: memref<3032x384xf32, #tpu.memory_space<vmem>>, %arg3: memref<32x128xf32, #tpu.memory_space<vmem>>) attributes {dimension_semantics = [#tpu.dimension_semantics<parallel>], iteration_bounds = array<i64: 2>, scalar_prefetch = 0 : i64, scratch_operands = 0 : i64, tpu.core_type = #tpu.core_type<tc>, window_params = [{transform_indices = @transform_0, window_bounds = array<i64: 32, 16>}, {pipeline_mode = #tpu.pipeline_mode<synchronous>, transform_indices = @transform_1, window_bounds = array<i64: 3032, 384>}, {transform_indices = @transform_2, window_bounds = array<i64: 32, 128>}]} {
    %c0 = arith.constant 0 : index
    %c0_0 = arith.constant 0 : index
    %0 = vector.load %arg1[%c0, %c0_0] : memref<32x16xf32, #tpu.memory_space<vmem>>, vector<32x16xf32>
    %c0_1 = arith.constant 0 : index
    %c0_2 = arith.constant 0 : index
    %1 = vector.load %arg2[%c0_1, %c0_2] : memref<3032x384xf32, #tpu.memory_space<vmem>>, vector<16x384xf32>
    %cst = arith.constant dense<0.000000e+00> : vector<32x384xf32>
    %2 = tpu.matmul %0, %1, %cst {dimension_numbers = #tpu.dot_dimension_numbers<[1], [0], [0], [1], [0, 0, 1, 1], [], []>} : vector<32x16xf32>, vector<16x384xf32>, vector<32x384xf32> -> vector<32x384xf32>
    %c16 = arith.constant 16 : index
    %c0_3 = arith.constant 0 : index
    %3 = vector.load %arg2[%c16, %c0_3] : memref<3032x384xf32, #tpu.memory_space<vmem>>, vector<1x128xf32>
    %4 = vector.extract_strided_slice %2 {offsets = [0, 0], sizes = [32, 128], strides = [1, 1]} : vector<32x384xf32> to vector<32x128xf32>
    %5 = vector.extract_strided_slice %2 {offsets = [0, 128], sizes = [32, 128], strides = [1, 1]} : vector<32x384xf32> to vector<32x128xf32>
    %6 = vector.extract_strided_slice %2 {offsets = [0, 256], sizes = [32, 128], strides = [1, 1]} : vector<32x384xf32> to vector<32x128xf32>
    %7 = tpu.iota {dimensions = array<i32: 0>} : vector<32x128xi32>
    %c16_i32 = arith.constant 16 : i32
    %c0_i32 = arith.constant 0 : i32
    %8 = arith.cmpi eq, %c16_i32, %c0_i32 : i32
    %c1_i32 = arith.constant 1 : i32
    %9 = arith.select %8, %c1_i32, %c16_i32 : i32
    %10 = vector.broadcast %9 : i32 to vector<32x128xi32>
    %11 = arith.remsi %7, %10 : vector<32x128xi32>
    %c0_i32_4 = arith.constant 0 : i32
    %12 = vector.broadcast %c0_i32_4 : i32 to vector<32x128xi32>
    %13 = arith.cmpi ne, %11, %12 : vector<32x128xi32>
    %c0_i32_5 = arith.constant 0 : i32
    %14 = vector.broadcast %c0_i32_5 : i32 to vector<32x128xi32>
    %15 = arith.cmpi slt, %11, %14 : vector<32x128xi32>
    %c0_i32_6 = arith.constant 0 : i32
    %16 = arith.cmpi slt, %9, %c0_i32_6 : i32
    %17 = vector.broadcast %16 : i1 to vector<32x128xi1>
    %18 = vector.broadcast %17 : vector<32x128xi1> to vector<32x128xi1>
    %19 = arith.xori %15, %18 : vector<32x128xi1>
    %20 = arith.andi %19, %13 : vector<32x128xi1>
    %21 = vector.broadcast %9 : i32 to vector<32x128xi32>
    %22 = arith.addi %11, %21 : vector<32x128xi32>
    %23 = arith.select %20, %22, %11 : vector<32x128xi1>, vector<32x128xi32>
    %c0_i32_7 = arith.constant 0 : i32
    %24 = vector.broadcast %c0_i32_7 : i32 to vector<32x128xi32>
    %25 = arith.cmpi ne, %23, %24 : vector<32x128xi32>
    %c15_i32 = arith.constant 15 : i32
    %26 = vector.broadcast %c15_i32 : i32 to vector<32x128xi32>
    %27 = arith.cmpi ne, %23, %26 : vector<32x128xi32>
    %c1_i32_8 = arith.constant 1 : i32
    %28 = tpu.dynamic_rotate %4 by %c1_i32_8 dim 0 : vector<32x128xf32>, i32 -> vector<32x128xf32>
    %cst_9 = arith.constant 0.000000e+00 : f32
    %29 = vector.broadcast %cst_9 : f32 to vector<32x128xf32>
    %30 = arith.select %25, %28, %29 : vector<32x128xi1>, vector<32x128xf32>
    %c31_i32 = arith.constant 31 : i32
    %31 = tpu.dynamic_rotate %6 by %c31_i32 dim 0 : vector<32x128xf32>, i32 -> vector<32x128xf32>
    %cst_10 = arith.constant 0.000000e+00 : f32
    %32 = vector.broadcast %cst_10 : f32 to vector<32x128xf32>
    %33 = arith.select %27, %31, %32 : vector<32x128xi1>, vector<32x128xf32>
    %34 = arith.addf %5, %30 : vector<32x128xf32>
    %35 = arith.addf %34, %33 : vector<32x128xf32>
    %36 = vector.broadcast %3 : vector<1x128xf32> to vector<32x128xf32>
    %37 = arith.addf %35, %36 : vector<32x128xf32>
    %cst_11 = arith.constant 0.000000e+00 : f32
    %38 = vector.broadcast %cst_11 : f32 to vector<32x128xf32>
    %39 = arith.maximumf %37, %38 : vector<32x128xf32>
    %c24 = arith.constant 24 : index
    %c0_12 = arith.constant 0 : index
    %40 = vector.load %arg2[%c24, %c0_12] : memref<3032x384xf32, #tpu.memory_space<vmem>>, vector<128x384xf32>
    %cst_13 = arith.constant dense<0.000000e+00> : vector<32x384xf32>
    %41 = tpu.matmul %39, %40, %cst_13 {dimension_numbers = #tpu.dot_dimension_numbers<[1], [0], [0], [1], [0, 0, 1, 1], [], []>} : vector<32x128xf32>, vector<128x384xf32>, vector<32x384xf32> -> vector<32x384xf32>
    %c152 = arith.constant 152 : index
    %c0_14 = arith.constant 0 : index
    %42 = vector.load %arg2[%c152, %c0_14] : memref<3032x384xf32, #tpu.memory_space<vmem>>, vector<1x128xf32>
    %43 = vector.extract_strided_slice %41 {offsets = [0, 0], sizes = [32, 128], strides = [1, 1]} : vector<32x384xf32> to vector<32x128xf32>
    %44 = vector.extract_strided_slice %41 {offsets = [0, 128], sizes = [32, 128], strides = [1, 1]} : vector<32x384xf32> to vector<32x128xf32>
    %45 = vector.extract_strided_slice %41 {offsets = [0, 256], sizes = [32, 128], strides = [1, 1]} : vector<32x384xf32> to vector<32x128xf32>
    %c1_i32_15 = arith.constant 1 : i32
    %46 = tpu.dynamic_rotate %43 by %c1_i32_15 dim 0 : vector<32x128xf32>, i32 -> vector<32x128xf32>
    %cst_16 = arith.constant 0.000000e+00 : f32
    %47 = vector.broadcast %cst_16 : f32 to vector<32x128xf32>
    %48 = arith.select %25, %46, %47 : vector<32x128xi1>, vector<32x128xf32>
    %c31_i32_17 = arith.constant 31 : i32
    %49 = tpu.dynamic_rotate %45 by %c31_i32_17 dim 0 : vector<32x128xf32>, i32 -> vector<32x128xf32>
    %cst_18 = arith.constant 0.000000e+00 : f32
    %50 = vector.broadcast %cst_18 : f32 to vector<32x128xf32>
    %51 = arith.select %27, %49, %50 : vector<32x128xi1>, vector<32x128xf32>
    %52 = arith.addf %44, %48 : vector<32x128xf32>
    %53 = arith.addf %52, %51 : vector<32x128xf32>
    %54 = vector.broadcast %42 : vector<1x128xf32> to vector<32x128xf32>
    %55 = arith.addf %53, %54 : vector<32x128xf32>
    %cst_19 = arith.constant 0.000000e+00 : f32
    %56 = vector.broadcast %cst_19 : f32 to vector<32x128xf32>
    %57 = arith.maximumf %55, %56 : vector<32x128xf32>
    %c160 = arith.constant 160 : index
    %c0_20 = arith.constant 0 : index
    %58 = vector.load %arg2[%c160, %c0_20] : memref<3032x384xf32, #tpu.memory_space<vmem>>, vector<128x384xf32>
    %cst_21 = arith.constant dense<0.000000e+00> : vector<32x384xf32>
    %59 = tpu.matmul %57, %58, %cst_21 {dimension_numbers = #tpu.dot_dimension_numbers<[1], [0], [0], [1], [0, 0, 1, 1], [], []>} : vector<32x128xf32>, vector<128x384xf32>, vector<32x384xf32> -> vector<32x384xf32>
    %c288 = arith.constant 288 : index
    %c0_22 = arith.constant 0 : index
    %60 = vector.load %arg2[%c288, %c0_22] : memref<3032x384xf32, #tpu.memory_space<vmem>>, vector<1x128xf32>
    %61 = vector.extract_strided_slice %59 {offsets = [0, 0], sizes = [32, 128], strides = [1, 1]} : vector<32x384xf32> to vector<32x128xf32>
    %62 = vector.extract_strided_slice %59 {offsets = [0, 128], sizes = [32, 128], strides = [1, 1]} : vector<32x384xf32> to vector<32x128xf32>
    %63 = vector.extract_strided_slice %59 {offsets = [0, 256], sizes = [32, 128], strides = [1, 1]} : vector<32x384xf32> to vector<32x128xf32>
    %c1_i32_23 = arith.constant 1 : i32
    %64 = tpu.dynamic_rotate %61 by %c1_i32_23 dim 0 : vector<32x128xf32>, i32 -> vector<32x128xf32>
    %cst_24 = arith.constant 0.000000e+00 : f32
    %65 = vector.broadcast %cst_24 : f32 to vector<32x128xf32>
    %66 = arith.select %25, %64, %65 : vector<32x128xi1>, vector<32x128xf32>
    %c31_i32_25 = arith.constant 31 : i32
    %67 = tpu.dynamic_rotate %63 by %c31_i32_25 dim 0 : vector<32x128xf32>, i32 -> vector<32x128xf32>
    %cst_26 = arith.constant 0.000000e+00 : f32
    %68 = vector.broadcast %cst_26 : f32 to vector<32x128xf32>
    %69 = arith.select %27, %67, %68 : vector<32x128xi1>, vector<32x128xf32>
    %70 = arith.addf %62, %66 : vector<32x128xf32>
    %71 = arith.addf %70, %69 : vector<32x128xf32>
    %72 = vector.broadcast %60 : vector<1x128xf32> to vector<32x128xf32>
    %73 = arith.addf %71, %72 : vector<32x128xf32>
    %cst_27 = arith.constant 0.000000e+00 : f32
    %74 = vector.broadcast %cst_27 : f32 to vector<32x128xf32>
    %75 = arith.maximumf %73, %74 : vector<32x128xf32>
    %c296 = arith.constant 296 : index
    %c0_28 = arith.constant 0 : index
    %76 = vector.load %arg2[%c296, %c0_28] : memref<3032x384xf32, #tpu.memory_space<vmem>>, vector<16x32xf32>
    %c312 = arith.constant 312 : index
    %c0_29 = arith.constant 0 : index
    %77 = vector.load %arg2[%c312, %c0_29] : memref<3032x384xf32, #tpu.memory_space<vmem>>, vector<128x64xf32>
    %cst_30 = arith.constant dense<0.000000e+00> : vector<32x64xf32>
    %78 = tpu.matmul %75, %77, %cst_30 {dimension_numbers = #tpu.dot_dimension_numbers<[1], [0], [0], [1], [0, 0, 1, 1], [], []>} : vector<32x128xf32>, vector<128x64xf32>, vector<32x64xf32> -> vector<32x64xf32>
    %cst_31 = arith.constant dense<0.000000e+00> : vector<16x64xf32>
    %79 = tpu.matmul %76, %78, %cst_31 {dimension_numbers = #tpu.dot_dimension_numbers<[1], [0], [0], [1], [0, 0, 1, 1], [], []>} : vector<16x32xf32>, vector<32x64xf32>, vector<16x64xf32> -> vector<16x64xf32>
    %c440 = arith.constant 440 : index
    %c0_32 = arith.constant 0 : index
    %80 = vector.load %arg2[%c440, %c0_32] : memref<3032x384xf32, #tpu.memory_space<vmem>>, vector<64x384xf32>
    %cst_33 = arith.constant dense<0.000000e+00> : vector<16x384xf32>
    %81 = tpu.matmul %79, %80, %cst_33 {dimension_numbers = #tpu.dot_dimension_numbers<[1], [0], [0], [1], [0, 0, 1, 1], [], []>} : vector<16x64xf32>, vector<64x384xf32>, vector<16x384xf32> -> vector<16x384xf32>
    %c504 = arith.constant 504 : index
    %c0_34 = arith.constant 0 : index
    %82 = vector.load %arg2[%c504, %c0_34] : memref<3032x384xf32, #tpu.memory_space<vmem>>, vector<1x128xf32>
    %83 = vector.extract_strided_slice %81 {offsets = [0, 0], sizes = [16, 128], strides = [1, 1]} : vector<16x384xf32> to vector<16x128xf32>
    %84 = vector.extract_strided_slice %81 {offsets = [0, 128], sizes = [16, 128], strides = [1, 1]} : vector<16x384xf32> to vector<16x128xf32>
    %85 = vector.extract_strided_slice %81 {offsets = [0, 256], sizes = [16, 128], strides = [1, 1]} : vector<16x384xf32> to vector<16x128xf32>
    %86 = tpu.iota {dimensions = array<i32: 0>} : vector<16x128xi32>
    %c8_i32 = arith.constant 8 : i32
    %c0_i32_35 = arith.constant 0 : i32
    %87 = arith.cmpi eq, %c8_i32, %c0_i32_35 : i32
    %c1_i32_36 = arith.constant 1 : i32
    %88 = arith.select %87, %c1_i32_36, %c8_i32 : i32
    %89 = vector.broadcast %88 : i32 to vector<16x128xi32>
    %90 = arith.remsi %86, %89 : vector<16x128xi32>
    %c0_i32_37 = arith.constant 0 : i32
    %91 = vector.broadcast %c0_i32_37 : i32 to vector<16x128xi32>
    %92 = arith.cmpi ne, %90, %91 : vector<16x128xi32>
    %c0_i32_38 = arith.constant 0 : i32
    %93 = vector.broadcast %c0_i32_38 : i32 to vector<16x128xi32>
    %94 = arith.cmpi slt, %90, %93 : vector<16x128xi32>
    %c0_i32_39 = arith.constant 0 : i32
    %95 = arith.cmpi slt, %88, %c0_i32_39 : i32
    %96 = vector.broadcast %95 : i1 to vector<16x128xi1>
    %97 = vector.broadcast %96 : vector<16x128xi1> to vector<16x128xi1>
    %98 = arith.xori %94, %97 : vector<16x128xi1>
    %99 = arith.andi %98, %92 : vector<16x128xi1>
    %100 = vector.broadcast %88 : i32 to vector<16x128xi32>
    %101 = arith.addi %90, %100 : vector<16x128xi32>
    %102 = arith.select %99, %101, %90 : vector<16x128xi1>, vector<16x128xi32>
    %c0_i32_40 = arith.constant 0 : i32
    %103 = vector.broadcast %c0_i32_40 : i32 to vector<16x128xi32>
    %104 = arith.cmpi ne, %102, %103 : vector<16x128xi32>
    %c7_i32 = arith.constant 7 : i32
    %105 = vector.broadcast %c7_i32 : i32 to vector<16x128xi32>
    %106 = arith.cmpi ne, %102, %105 : vector<16x128xi32>
    %c1_i32_41 = arith.constant 1 : i32
    %107 = tpu.dynamic_rotate %83 by %c1_i32_41 dim 0 : vector<16x128xf32>, i32 -> vector<16x128xf32>
    %cst_42 = arith.constant 0.000000e+00 : f32
    %108 = vector.broadcast %cst_42 : f32 to vector<16x128xf32>
    %109 = arith.select %104, %107, %108 : vector<16x128xi1>, vector<16x128xf32>
    %c15_i32_43 = arith.constant 15 : i32
    %110 = tpu.dynamic_rotate %85 by %c15_i32_43 dim 0 : vector<16x128xf32>, i32 -> vector<16x128xf32>
    %cst_44 = arith.constant 0.000000e+00 : f32
    %111 = vector.broadcast %cst_44 : f32 to vector<16x128xf32>
    %112 = arith.select %106, %110, %111 : vector<16x128xi1>, vector<16x128xf32>
    %113 = arith.addf %84, %109 : vector<16x128xf32>
    %114 = arith.addf %113, %112 : vector<16x128xf32>
    %115 = vector.broadcast %82 : vector<1x128xf32> to vector<16x128xf32>
    %116 = arith.addf %114, %115 : vector<16x128xf32>
    %cst_45 = arith.constant 0.000000e+00 : f32
    %117 = vector.broadcast %cst_45 : f32 to vector<16x128xf32>
    %118 = arith.maximumf %116, %117 : vector<16x128xf32>
    %c512 = arith.constant 512 : index
    %c0_46 = arith.constant 0 : index
    %119 = vector.load %arg2[%c512, %c0_46] : memref<3032x384xf32, #tpu.memory_space<vmem>>, vector<128x384xf32>
    %cst_47 = arith.constant dense<0.000000e+00> : vector<16x384xf32>
    %120 = tpu.matmul %118, %119, %cst_47 {dimension_numbers = #tpu.dot_dimension_numbers<[1], [0], [0], [1], [0, 0, 1, 1], [], []>} : vector<16x128xf32>, vector<128x384xf32>, vector<16x384xf32> -> vector<16x384xf32>
    %c640 = arith.constant 640 : index
    %c0_48 = arith.constant 0 : index
    %121 = vector.load %arg2[%c640, %c0_48] : memref<3032x384xf32, #tpu.memory_space<vmem>>, vector<1x128xf32>
    %122 = vector.extract_strided_slice %120 {offsets = [0, 0], sizes = [16, 128], strides = [1, 1]} : vector<16x384xf32> to vector<16x128xf32>
    %123 = vector.extract_strided_slice %120 {offsets = [0, 128], sizes = [16, 128], strides = [1, 1]} : vector<16x384xf32> to vector<16x128xf32>
    %124 = vector.extract_strided_slice %120 {offsets = [0, 256], sizes = [16, 128], strides = [1, 1]} : vector<16x384xf32> to vector<16x128xf32>
    %c1_i32_49 = arith.constant 1 : i32
    %125 = tpu.dynamic_rotate %122 by %c1_i32_49 dim 0 : vector<16x128xf32>, i32 -> vector<16x128xf32>
    %cst_50 = arith.constant 0.000000e+00 : f32
    %126 = vector.broadcast %cst_50 : f32 to vector<16x128xf32>
    %127 = arith.select %104, %125, %126 : vector<16x128xi1>, vector<16x128xf32>
    %c15_i32_51 = arith.constant 15 : i32
    %128 = tpu.dynamic_rotate %124 by %c15_i32_51 dim 0 : vector<16x128xf32>, i32 -> vector<16x128xf32>
    %cst_52 = arith.constant 0.000000e+00 : f32
    %129 = vector.broadcast %cst_52 : f32 to vector<16x128xf32>
    %130 = arith.select %106, %128, %129 : vector<16x128xi1>, vector<16x128xf32>
    %131 = arith.addf %123, %127 : vector<16x128xf32>
    %132 = arith.addf %131, %130 : vector<16x128xf32>
    %133 = vector.broadcast %121 : vector<1x128xf32> to vector<16x128xf32>
    %134 = arith.addf %132, %133 : vector<16x128xf32>
    %cst_53 = arith.constant 0.000000e+00 : f32
    %135 = vector.broadcast %cst_53 : f32 to vector<16x128xf32>
    %136 = arith.maximumf %134, %135 : vector<16x128xf32>
    %c648 = arith.constant 648 : index
    %c0_54 = arith.constant 0 : index
    %137 = vector.load %arg2[%c648, %c0_54] : memref<3032x384xf32, #tpu.memory_space<vmem>>, vector<128x384xf32>
    %cst_55 = arith.constant dense<0.000000e+00> : vector<16x384xf32>
    %138 = tpu.matmul %136, %137, %cst_55 {dimension_numbers = #tpu.dot_dimension_numbers<[1], [0], [0], [1], [0, 0, 1, 1], [], []>} : vector<16x128xf32>, vector<128x384xf32>, vector<16x384xf32> -> vector<16x384xf32>
    %c776 = arith.constant 776 : index
    %c0_56 = arith.constant 0 : index
    %139 = vector.load %arg2[%c776, %c0_56] : memref<3032x384xf32, #tpu.memory_space<vmem>>, vector<1x128xf32>
    %140 = vector.extract_strided_slice %138 {offsets = [0, 0], sizes = [16, 128], strides = [1, 1]} : vector<16x384xf32> to vector<16x128xf32>
    %141 = vector.extract_strided_slice %138 {offsets = [0, 128], sizes = [16, 128], strides = [1, 1]} : vector<16x384xf32> to vector<16x128xf32>
    %142 = vector.extract_strided_slice %138 {offsets = [0, 256], sizes = [16, 128], strides = [1, 1]} : vector<16x384xf32> to vector<16x128xf32>
    %c1_i32_57 = arith.constant 1 : i32
    %143 = tpu.dynamic_rotate %140 by %c1_i32_57 dim 0 : vector<16x128xf32>, i32 -> vector<16x128xf32>
    %cst_58 = arith.constant 0.000000e+00 : f32
    %144 = vector.broadcast %cst_58 : f32 to vector<16x128xf32>
    %145 = arith.select %104, %143, %144 : vector<16x128xi1>, vector<16x128xf32>
    %c15_i32_59 = arith.constant 15 : i32
    %146 = tpu.dynamic_rotate %142 by %c15_i32_59 dim 0 : vector<16x128xf32>, i32 -> vector<16x128xf32>
    %cst_60 = arith.constant 0.000000e+00 : f32
    %147 = vector.broadcast %cst_60 : f32 to vector<16x128xf32>
    %148 = arith.select %106, %146, %147 : vector<16x128xi1>, vector<16x128xf32>
    %149 = arith.addf %141, %145 : vector<16x128xf32>
    %150 = arith.addf %149, %148 : vector<16x128xf32>
    %151 = vector.broadcast %139 : vector<1x128xf32> to vector<16x128xf32>
    %152 = arith.addf %150, %151 : vector<16x128xf32>
    %cst_61 = arith.constant 0.000000e+00 : f32
    %153 = vector.broadcast %cst_61 : f32 to vector<16x128xf32>
    %154 = arith.maximumf %152, %153 : vector<16x128xf32>
    %c784 = arith.constant 784 : index
    %c0_62 = arith.constant 0 : index
    %155 = vector.load %arg2[%c784, %c0_62] : memref<3032x384xf32, #tpu.memory_space<vmem>>, vector<8x16xf32>
    %c792 = arith.constant 792 : index
    %c0_63 = arith.constant 0 : index
    %156 = vector.load %arg2[%c792, %c0_63] : memref<3032x384xf32, #tpu.memory_space<vmem>>, vector<128x64xf32>
    %cst_64 = arith.constant dense<0.000000e+00> : vector<16x64xf32>
    %157 = tpu.matmul %154, %156, %cst_64 {dimension_numbers = #tpu.dot_dimension_numbers<[1], [0], [0], [1], [0, 0, 1, 1], [], []>} : vector<16x128xf32>, vector<128x64xf32>, vector<16x64xf32> -> vector<16x64xf32>
    %cst_65 = arith.constant dense<0.000000e+00> : vector<8x64xf32>
    %158 = tpu.matmul %155, %157, %cst_65 {dimension_numbers = #tpu.dot_dimension_numbers<[1], [0], [0], [1], [0, 0, 1, 1], [], []>} : vector<8x16xf32>, vector<16x64xf32>, vector<8x64xf32> -> vector<8x64xf32>
    %c920 = arith.constant 920 : index
    %c0_66 = arith.constant 0 : index
    %159 = vector.load %arg2[%c920, %c0_66] : memref<3032x384xf32, #tpu.memory_space<vmem>>, vector<64x384xf32>
    %cst_67 = arith.constant dense<0.000000e+00> : vector<8x384xf32>
    %160 = tpu.matmul %158, %159, %cst_67 {dimension_numbers = #tpu.dot_dimension_numbers<[1], [0], [0], [1], [0, 0, 1, 1], [], []>} : vector<8x64xf32>, vector<64x384xf32>, vector<8x384xf32> -> vector<8x384xf32>
    %c984 = arith.constant 984 : index
    %c0_68 = arith.constant 0 : index
    %161 = vector.load %arg2[%c984, %c0_68] : memref<3032x384xf32, #tpu.memory_space<vmem>>, vector<1x128xf32>
    %162 = vector.extract_strided_slice %160 {offsets = [0, 0], sizes = [8, 128], strides = [1, 1]} : vector<8x384xf32> to vector<8x128xf32>
    %163 = vector.extract_strided_slice %160 {offsets = [0, 128], sizes = [8, 128], strides = [1, 1]} : vector<8x384xf32> to vector<8x128xf32>
    %164 = vector.extract_strided_slice %160 {offsets = [0, 256], sizes = [8, 128], strides = [1, 1]} : vector<8x384xf32> to vector<8x128xf32>
    %165 = tpu.iota {dimensions = array<i32: 0>} : vector<8x128xi32>
    %c4_i32 = arith.constant 4 : i32
    %c0_i32_69 = arith.constant 0 : i32
    %166 = arith.cmpi eq, %c4_i32, %c0_i32_69 : i32
    %c1_i32_70 = arith.constant 1 : i32
    %167 = arith.select %166, %c1_i32_70, %c4_i32 : i32
    %168 = vector.broadcast %167 : i32 to vector<8x128xi32>
    %169 = arith.remsi %165, %168 : vector<8x128xi32>
    %c0_i32_71 = arith.constant 0 : i32
    %170 = vector.broadcast %c0_i32_71 : i32 to vector<8x128xi32>
    %171 = arith.cmpi ne, %169, %170 : vector<8x128xi32>
    %c0_i32_72 = arith.constant 0 : i32
    %172 = vector.broadcast %c0_i32_72 : i32 to vector<8x128xi32>
    %173 = arith.cmpi slt, %169, %172 : vector<8x128xi32>
    %c0_i32_73 = arith.constant 0 : i32
    %174 = arith.cmpi slt, %167, %c0_i32_73 : i32
    %175 = vector.broadcast %174 : i1 to vector<8x128xi1>
    %176 = vector.broadcast %175 : vector<8x128xi1> to vector<8x128xi1>
    %177 = arith.xori %173, %176 : vector<8x128xi1>
    %178 = arith.andi %177, %171 : vector<8x128xi1>
    %179 = vector.broadcast %167 : i32 to vector<8x128xi32>
    %180 = arith.addi %169, %179 : vector<8x128xi32>
    %181 = arith.select %178, %180, %169 : vector<8x128xi1>, vector<8x128xi32>
    %c0_i32_74 = arith.constant 0 : i32
    %182 = vector.broadcast %c0_i32_74 : i32 to vector<8x128xi32>
    %183 = arith.cmpi ne, %181, %182 : vector<8x128xi32>
    %c3_i32 = arith.constant 3 : i32
    %184 = vector.broadcast %c3_i32 : i32 to vector<8x128xi32>
    %185 = arith.cmpi ne, %181, %184 : vector<8x128xi32>
    %c1_i32_75 = arith.constant 1 : i32
    %186 = tpu.dynamic_rotate %162 by %c1_i32_75 dim 0 : vector<8x128xf32>, i32 -> vector<8x128xf32>
    %cst_76 = arith.constant 0.000000e+00 : f32
    %187 = vector.broadcast %cst_76 : f32 to vector<8x128xf32>
    %188 = arith.select %183, %186, %187 : vector<8x128xi1>, vector<8x128xf32>
    %c7_i32_77 = arith.constant 7 : i32
    %189 = tpu.dynamic_rotate %164 by %c7_i32_77 dim 0 : vector<8x128xf32>, i32 -> vector<8x128xf32>
    %cst_78 = arith.constant 0.000000e+00 : f32
    %190 = vector.broadcast %cst_78 : f32 to vector<8x128xf32>
    %191 = arith.select %185, %189, %190 : vector<8x128xi1>, vector<8x128xf32>
    %192 = arith.addf %163, %188 : vector<8x128xf32>
    %193 = arith.addf %192, %191 : vector<8x128xf32>
    %194 = vector.broadcast %161 : vector<1x128xf32> to vector<8x128xf32>
    %195 = arith.addf %193, %194 : vector<8x128xf32>
    %cst_79 = arith.constant 0.000000e+00 : f32
    %196 = vector.broadcast %cst_79 : f32 to vector<8x128xf32>
    %197 = arith.maximumf %195, %196 : vector<8x128xf32>
    %c992 = arith.constant 992 : index
    %c0_80 = arith.constant 0 : index
    %198 = vector.load %arg2[%c992, %c0_80] : memref<3032x384xf32, #tpu.memory_space<vmem>>, vector<128x384xf32>
    %cst_81 = arith.constant dense<0.000000e+00> : vector<8x384xf32>
    %199 = tpu.matmul %197, %198, %cst_81 {dimension_numbers = #tpu.dot_dimension_numbers<[1], [0], [0], [1], [0, 0, 1, 1], [], []>} : vector<8x128xf32>, vector<128x384xf32>, vector<8x384xf32> -> vector<8x384xf32>
    %c1120 = arith.constant 1120 : index
    %c0_82 = arith.constant 0 : index
    %200 = vector.load %arg2[%c1120, %c0_82] : memref<3032x384xf32, #tpu.memory_space<vmem>>, vector<1x128xf32>
    %201 = vector.extract_strided_slice %199 {offsets = [0, 0], sizes = [8, 128], strides = [1, 1]} : vector<8x384xf32> to vector<8x128xf32>
    %202 = vector.extract_strided_slice %199 {offsets = [0, 128], sizes = [8, 128], strides = [1, 1]} : vector<8x384xf32> to vector<8x128xf32>
    %203 = vector.extract_strided_slice %199 {offsets = [0, 256], sizes = [8, 128], strides = [1, 1]} : vector<8x384xf32> to vector<8x128xf32>
    %c1_i32_83 = arith.constant 1 : i32
    %204 = tpu.dynamic_rotate %201 by %c1_i32_83 dim 0 : vector<8x128xf32>, i32 -> vector<8x128xf32>
    %cst_84 = arith.constant 0.000000e+00 : f32
    %205 = vector.broadcast %cst_84 : f32 to vector<8x128xf32>
    %206 = arith.select %183, %204, %205 : vector<8x128xi1>, vector<8x128xf32>
    %c7_i32_85 = arith.constant 7 : i32
    %207 = tpu.dynamic_rotate %203 by %c7_i32_85 dim 0 : vector<8x128xf32>, i32 -> vector<8x128xf32>
    %cst_86 = arith.constant 0.000000e+00 : f32
    %208 = vector.broadcast %cst_86 : f32 to vector<8x128xf32>
    %209 = arith.select %185, %207, %208 : vector<8x128xi1>, vector<8x128xf32>
    %210 = arith.addf %202, %206 : vector<8x128xf32>
    %211 = arith.addf %210, %209 : vector<8x128xf32>
    %212 = vector.broadcast %200 : vector<1x128xf32> to vector<8x128xf32>
    %213 = arith.addf %211, %212 : vector<8x128xf32>
    %cst_87 = arith.constant 0.000000e+00 : f32
    %214 = vector.broadcast %cst_87 : f32 to vector<8x128xf32>
    %215 = arith.maximumf %213, %214 : vector<8x128xf32>
    %c1128 = arith.constant 1128 : index
    %c0_88 = arith.constant 0 : index
    %216 = vector.load %arg2[%c1128, %c0_88] : memref<3032x384xf32, #tpu.memory_space<vmem>>, vector<128x384xf32>
    %cst_89 = arith.constant dense<0.000000e+00> : vector<8x384xf32>
    %217 = tpu.matmul %215, %216, %cst_89 {dimension_numbers = #tpu.dot_dimension_numbers<[1], [0], [0], [1], [0, 0, 1, 1], [], []>} : vector<8x128xf32>, vector<128x384xf32>, vector<8x384xf32> -> vector<8x384xf32>
    %c1256 = arith.constant 1256 : index
    %c0_90 = arith.constant 0 : index
    %218 = vector.load %arg2[%c1256, %c0_90] : memref<3032x384xf32, #tpu.memory_space<vmem>>, vector<1x128xf32>
    %219 = vector.extract_strided_slice %217 {offsets = [0, 0], sizes = [8, 128], strides = [1, 1]} : vector<8x384xf32> to vector<8x128xf32>
    %220 = vector.extract_strided_slice %217 {offsets = [0, 128], sizes = [8, 128], strides = [1, 1]} : vector<8x384xf32> to vector<8x128xf32>
    %221 = vector.extract_strided_slice %217 {offsets = [0, 256], sizes = [8, 128], strides = [1, 1]} : vector<8x384xf32> to vector<8x128xf32>
    %c1_i32_91 = arith.constant 1 : i32
    %222 = tpu.dynamic_rotate %219 by %c1_i32_91 dim 0 : vector<8x128xf32>, i32 -> vector<8x128xf32>
    %cst_92 = arith.constant 0.000000e+00 : f32
    %223 = vector.broadcast %cst_92 : f32 to vector<8x128xf32>
    %224 = arith.select %183, %222, %223 : vector<8x128xi1>, vector<8x128xf32>
    %c7_i32_93 = arith.constant 7 : i32
    %225 = tpu.dynamic_rotate %221 by %c7_i32_93 dim 0 : vector<8x128xf32>, i32 -> vector<8x128xf32>
    %cst_94 = arith.constant 0.000000e+00 : f32
    %226 = vector.broadcast %cst_94 : f32 to vector<8x128xf32>
    %227 = arith.select %185, %225, %226 : vector<8x128xi1>, vector<8x128xf32>
    %228 = arith.addf %220, %224 : vector<8x128xf32>
    %229 = arith.addf %228, %227 : vector<8x128xf32>
    %230 = vector.broadcast %218 : vector<1x128xf32> to vector<8x128xf32>
    %231 = arith.addf %229, %230 : vector<8x128xf32>
    %cst_95 = arith.constant 0.000000e+00 : f32
    %232 = vector.broadcast %cst_95 : f32 to vector<8x128xf32>
    %233 = arith.maximumf %231, %232 : vector<8x128xf32>
    %c1264 = arith.constant 1264 : index
    %c0_96 = arith.constant 0 : index
    %234 = vector.load %arg2[%c1264, %c0_96] : memref<3032x384xf32, #tpu.memory_space<vmem>>, vector<16x8xf32>
    %c1280 = arith.constant 1280 : index
    %c0_97 = arith.constant 0 : index
    %235 = vector.load %arg2[%c1280, %c0_97] : memref<3032x384xf32, #tpu.memory_space<vmem>>, vector<128x256xf32>
    %cst_98 = arith.constant dense<0.000000e+00> : vector<8x256xf32>
    %236 = tpu.matmul %233, %235, %cst_98 {dimension_numbers = #tpu.dot_dimension_numbers<[1], [0], [0], [1], [0, 0, 1, 1], [], []>} : vector<8x128xf32>, vector<128x256xf32>, vector<8x256xf32> -> vector<8x256xf32>
    %cst_99 = arith.constant dense<0.000000e+00> : vector<16x256xf32>
    %237 = tpu.matmul %234, %236, %cst_99 {dimension_numbers = #tpu.dot_dimension_numbers<[1], [0], [0], [1], [0, 0, 1, 1], [], []>} : vector<16x8xf32>, vector<8x256xf32>, vector<16x256xf32> -> vector<16x256xf32>
    %c1408 = arith.constant 1408 : index
    %c0_100 = arith.constant 0 : index
    %238 = vector.load %arg2[%c1408, %c0_100] : memref<3032x384xf32, #tpu.memory_space<vmem>>, vector<256x384xf32>
    %cst_101 = arith.constant dense<0.000000e+00> : vector<16x384xf32>
    %239 = tpu.matmul %237, %238, %cst_101 {dimension_numbers = #tpu.dot_dimension_numbers<[1], [0], [0], [1], [0, 0, 1, 1], [], []>} : vector<16x256xf32>, vector<256x384xf32>, vector<16x384xf32> -> vector<16x384xf32>
    %c1664 = arith.constant 1664 : index
    %c0_102 = arith.constant 0 : index
    %240 = vector.load %arg2[%c1664, %c0_102] : memref<3032x384xf32, #tpu.memory_space<vmem>>, vector<128x384xf32>
    %cst_103 = arith.constant dense<0.000000e+00> : vector<16x384xf32>
    %241 = tpu.matmul %154, %240, %cst_103 {dimension_numbers = #tpu.dot_dimension_numbers<[1], [0], [0], [1], [0, 0, 1, 1], [], []>} : vector<16x128xf32>, vector<128x384xf32>, vector<16x384xf32> -> vector<16x384xf32>
    %242 = arith.addf %239, %241 : vector<16x384xf32>
    %c1792 = arith.constant 1792 : index
    %c0_104 = arith.constant 0 : index
    %243 = vector.load %arg2[%c1792, %c0_104] : memref<3032x384xf32, #tpu.memory_space<vmem>>, vector<1x128xf32>
    %244 = vector.extract_strided_slice %242 {offsets = [0, 0], sizes = [16, 128], strides = [1, 1]} : vector<16x384xf32> to vector<16x128xf32>
    %245 = vector.extract_strided_slice %242 {offsets = [0, 128], sizes = [16, 128], strides = [1, 1]} : vector<16x384xf32> to vector<16x128xf32>
    %246 = vector.extract_strided_slice %242 {offsets = [0, 256], sizes = [16, 128], strides = [1, 1]} : vector<16x384xf32> to vector<16x128xf32>
    %c1_i32_105 = arith.constant 1 : i32
    %247 = tpu.dynamic_rotate %244 by %c1_i32_105 dim 0 : vector<16x128xf32>, i32 -> vector<16x128xf32>
    %cst_106 = arith.constant 0.000000e+00 : f32
    %248 = vector.broadcast %cst_106 : f32 to vector<16x128xf32>
    %249 = arith.select %104, %247, %248 : vector<16x128xi1>, vector<16x128xf32>
    %c15_i32_107 = arith.constant 15 : i32
    %250 = tpu.dynamic_rotate %246 by %c15_i32_107 dim 0 : vector<16x128xf32>, i32 -> vector<16x128xf32>
    %cst_108 = arith.constant 0.000000e+00 : f32
    %251 = vector.broadcast %cst_108 : f32 to vector<16x128xf32>
    %252 = arith.select %106, %250, %251 : vector<16x128xi1>, vector<16x128xf32>
    %253 = arith.addf %245, %249 : vector<16x128xf32>
    %254 = arith.addf %253, %252 : vector<16x128xf32>
    %255 = vector.broadcast %243 : vector<1x128xf32> to vector<16x128xf32>
    %256 = arith.addf %254, %255 : vector<16x128xf32>
    %cst_109 = arith.constant 0.000000e+00 : f32
    %257 = vector.broadcast %cst_109 : f32 to vector<16x128xf32>
    %258 = arith.maximumf %256, %257 : vector<16x128xf32>
    %c1800 = arith.constant 1800 : index
    %c0_110 = arith.constant 0 : index
    %259 = vector.load %arg2[%c1800, %c0_110] : memref<3032x384xf32, #tpu.memory_space<vmem>>, vector<128x384xf32>
    %cst_111 = arith.constant dense<0.000000e+00> : vector<16x384xf32>
    %260 = tpu.matmul %258, %259, %cst_111 {dimension_numbers = #tpu.dot_dimension_numbers<[1], [0], [0], [1], [0, 0, 1, 1], [], []>} : vector<16x128xf32>, vector<128x384xf32>, vector<16x384xf32> -> vector<16x384xf32>
    %c1928 = arith.constant 1928 : index
    %c0_112 = arith.constant 0 : index
    %261 = vector.load %arg2[%c1928, %c0_112] : memref<3032x384xf32, #tpu.memory_space<vmem>>, vector<1x128xf32>
    %262 = vector.extract_strided_slice %260 {offsets = [0, 0], sizes = [16, 128], strides = [1, 1]} : vector<16x384xf32> to vector<16x128xf32>
    %263 = vector.extract_strided_slice %260 {offsets = [0, 128], sizes = [16, 128], strides = [1, 1]} : vector<16x384xf32> to vector<16x128xf32>
    %264 = vector.extract_strided_slice %260 {offsets = [0, 256], sizes = [16, 128], strides = [1, 1]} : vector<16x384xf32> to vector<16x128xf32>
    %c1_i32_113 = arith.constant 1 : i32
    %265 = tpu.dynamic_rotate %262 by %c1_i32_113 dim 0 : vector<16x128xf32>, i32 -> vector<16x128xf32>
    %cst_114 = arith.constant 0.000000e+00 : f32
    %266 = vector.broadcast %cst_114 : f32 to vector<16x128xf32>
    %267 = arith.select %104, %265, %266 : vector<16x128xi1>, vector<16x128xf32>
    %c15_i32_115 = arith.constant 15 : i32
    %268 = tpu.dynamic_rotate %264 by %c15_i32_115 dim 0 : vector<16x128xf32>, i32 -> vector<16x128xf32>
    %cst_116 = arith.constant 0.000000e+00 : f32
    %269 = vector.broadcast %cst_116 : f32 to vector<16x128xf32>
    %270 = arith.select %106, %268, %269 : vector<16x128xi1>, vector<16x128xf32>
    %271 = arith.addf %263, %267 : vector<16x128xf32>
    %272 = arith.addf %271, %270 : vector<16x128xf32>
    %273 = vector.broadcast %261 : vector<1x128xf32> to vector<16x128xf32>
    %274 = arith.addf %272, %273 : vector<16x128xf32>
    %cst_117 = arith.constant 0.000000e+00 : f32
    %275 = vector.broadcast %cst_117 : f32 to vector<16x128xf32>
    %276 = arith.maximumf %274, %275 : vector<16x128xf32>
    %c1936 = arith.constant 1936 : index
    %c0_118 = arith.constant 0 : index
    %277 = vector.load %arg2[%c1936, %c0_118] : memref<3032x384xf32, #tpu.memory_space<vmem>>, vector<128x384xf32>
    %cst_119 = arith.constant dense<0.000000e+00> : vector<16x384xf32>
    %278 = tpu.matmul %276, %277, %cst_119 {dimension_numbers = #tpu.dot_dimension_numbers<[1], [0], [0], [1], [0, 0, 1, 1], [], []>} : vector<16x128xf32>, vector<128x384xf32>, vector<16x384xf32> -> vector<16x384xf32>
    %c2064 = arith.constant 2064 : index
    %c0_120 = arith.constant 0 : index
    %279 = vector.load %arg2[%c2064, %c0_120] : memref<3032x384xf32, #tpu.memory_space<vmem>>, vector<1x128xf32>
    %280 = vector.extract_strided_slice %278 {offsets = [0, 0], sizes = [16, 128], strides = [1, 1]} : vector<16x384xf32> to vector<16x128xf32>
    %281 = vector.extract_strided_slice %278 {offsets = [0, 128], sizes = [16, 128], strides = [1, 1]} : vector<16x384xf32> to vector<16x128xf32>
    %282 = vector.extract_strided_slice %278 {offsets = [0, 256], sizes = [16, 128], strides = [1, 1]} : vector<16x384xf32> to vector<16x128xf32>
    %c1_i32_121 = arith.constant 1 : i32
    %283 = tpu.dynamic_rotate %280 by %c1_i32_121 dim 0 : vector<16x128xf32>, i32 -> vector<16x128xf32>
    %cst_122 = arith.constant 0.000000e+00 : f32
    %284 = vector.broadcast %cst_122 : f32 to vector<16x128xf32>
    %285 = arith.select %104, %283, %284 : vector<16x128xi1>, vector<16x128xf32>
    %c15_i32_123 = arith.constant 15 : i32
    %286 = tpu.dynamic_rotate %282 by %c15_i32_123 dim 0 : vector<16x128xf32>, i32 -> vector<16x128xf32>
    %cst_124 = arith.constant 0.000000e+00 : f32
    %287 = vector.broadcast %cst_124 : f32 to vector<16x128xf32>
    %288 = arith.select %106, %286, %287 : vector<16x128xi1>, vector<16x128xf32>
    %289 = arith.addf %281, %285 : vector<16x128xf32>
    %290 = arith.addf %289, %288 : vector<16x128xf32>
    %291 = vector.broadcast %279 : vector<1x128xf32> to vector<16x128xf32>
    %292 = arith.addf %290, %291 : vector<16x128xf32>
    %cst_125 = arith.constant 0.000000e+00 : f32
    %293 = vector.broadcast %cst_125 : f32 to vector<16x128xf32>
    %294 = arith.maximumf %292, %293 : vector<16x128xf32>
    %c2072 = arith.constant 2072 : index
    %c0_126 = arith.constant 0 : index
    %295 = vector.load %arg2[%c2072, %c0_126] : memref<3032x384xf32, #tpu.memory_space<vmem>>, vector<32x16xf32>
    %c2104 = arith.constant 2104 : index
    %c0_127 = arith.constant 0 : index
    %296 = vector.load %arg2[%c2104, %c0_127] : memref<3032x384xf32, #tpu.memory_space<vmem>>, vector<128x256xf32>
    %cst_128 = arith.constant dense<0.000000e+00> : vector<16x256xf32>
    %297 = tpu.matmul %294, %296, %cst_128 {dimension_numbers = #tpu.dot_dimension_numbers<[1], [0], [0], [1], [0, 0, 1, 1], [], []>} : vector<16x128xf32>, vector<128x256xf32>, vector<16x256xf32> -> vector<16x256xf32>
    %cst_129 = arith.constant dense<0.000000e+00> : vector<32x256xf32>
    %298 = tpu.matmul %295, %297, %cst_129 {dimension_numbers = #tpu.dot_dimension_numbers<[1], [0], [0], [1], [0, 0, 1, 1], [], []>} : vector<32x16xf32>, vector<16x256xf32>, vector<32x256xf32> -> vector<32x256xf32>
    %c2232 = arith.constant 2232 : index
    %c0_130 = arith.constant 0 : index
    %299 = vector.load %arg2[%c2232, %c0_130] : memref<3032x384xf32, #tpu.memory_space<vmem>>, vector<256x384xf32>
    %cst_131 = arith.constant dense<0.000000e+00> : vector<32x384xf32>
    %300 = tpu.matmul %298, %299, %cst_131 {dimension_numbers = #tpu.dot_dimension_numbers<[1], [0], [0], [1], [0, 0, 1, 1], [], []>} : vector<32x256xf32>, vector<256x384xf32>, vector<32x384xf32> -> vector<32x384xf32>
    %c2488 = arith.constant 2488 : index
    %c0_132 = arith.constant 0 : index
    %301 = vector.load %arg2[%c2488, %c0_132] : memref<3032x384xf32, #tpu.memory_space<vmem>>, vector<128x384xf32>
    %cst_133 = arith.constant dense<0.000000e+00> : vector<32x384xf32>
    %302 = tpu.matmul %75, %301, %cst_133 {dimension_numbers = #tpu.dot_dimension_numbers<[1], [0], [0], [1], [0, 0, 1, 1], [], []>} : vector<32x128xf32>, vector<128x384xf32>, vector<32x384xf32> -> vector<32x384xf32>
    %303 = arith.addf %300, %302 : vector<32x384xf32>
    %c2616 = arith.constant 2616 : index
    %c0_134 = arith.constant 0 : index
    %304 = vector.load %arg2[%c2616, %c0_134] : memref<3032x384xf32, #tpu.memory_space<vmem>>, vector<1x128xf32>
    %305 = vector.extract_strided_slice %303 {offsets = [0, 0], sizes = [32, 128], strides = [1, 1]} : vector<32x384xf32> to vector<32x128xf32>
    %306 = vector.extract_strided_slice %303 {offsets = [0, 128], sizes = [32, 128], strides = [1, 1]} : vector<32x384xf32> to vector<32x128xf32>
    %307 = vector.extract_strided_slice %303 {offsets = [0, 256], sizes = [32, 128], strides = [1, 1]} : vector<32x384xf32> to vector<32x128xf32>
    %c1_i32_135 = arith.constant 1 : i32
    %308 = tpu.dynamic_rotate %305 by %c1_i32_135 dim 0 : vector<32x128xf32>, i32 -> vector<32x128xf32>
    %cst_136 = arith.constant 0.000000e+00 : f32
    %309 = vector.broadcast %cst_136 : f32 to vector<32x128xf32>
    %310 = arith.select %25, %308, %309 : vector<32x128xi1>, vector<32x128xf32>
    %c31_i32_137 = arith.constant 31 : i32
    %311 = tpu.dynamic_rotate %307 by %c31_i32_137 dim 0 : vector<32x128xf32>, i32 -> vector<32x128xf32>
    %cst_138 = arith.constant 0.000000e+00 : f32
    %312 = vector.broadcast %cst_138 : f32 to vector<32x128xf32>
    %313 = arith.select %27, %311, %312 : vector<32x128xi1>, vector<32x128xf32>
    %314 = arith.addf %306, %310 : vector<32x128xf32>
    %315 = arith.addf %314, %313 : vector<32x128xf32>
    %316 = vector.broadcast %304 : vector<1x128xf32> to vector<32x128xf32>
    %317 = arith.addf %315, %316 : vector<32x128xf32>
    %cst_139 = arith.constant 0.000000e+00 : f32
    %318 = vector.broadcast %cst_139 : f32 to vector<32x128xf32>
    %319 = arith.maximumf %317, %318 : vector<32x128xf32>
    %c2624 = arith.constant 2624 : index
    %c0_140 = arith.constant 0 : index
    %320 = vector.load %arg2[%c2624, %c0_140] : memref<3032x384xf32, #tpu.memory_space<vmem>>, vector<128x384xf32>
    %cst_141 = arith.constant dense<0.000000e+00> : vector<32x384xf32>
    %321 = tpu.matmul %319, %320, %cst_141 {dimension_numbers = #tpu.dot_dimension_numbers<[1], [0], [0], [1], [0, 0, 1, 1], [], []>} : vector<32x128xf32>, vector<128x384xf32>, vector<32x384xf32> -> vector<32x384xf32>
    %c2752 = arith.constant 2752 : index
    %c0_142 = arith.constant 0 : index
    %322 = vector.load %arg2[%c2752, %c0_142] : memref<3032x384xf32, #tpu.memory_space<vmem>>, vector<1x128xf32>
    %323 = vector.extract_strided_slice %321 {offsets = [0, 0], sizes = [32, 128], strides = [1, 1]} : vector<32x384xf32> to vector<32x128xf32>
    %324 = vector.extract_strided_slice %321 {offsets = [0, 128], sizes = [32, 128], strides = [1, 1]} : vector<32x384xf32> to vector<32x128xf32>
    %325 = vector.extract_strided_slice %321 {offsets = [0, 256], sizes = [32, 128], strides = [1, 1]} : vector<32x384xf32> to vector<32x128xf32>
    %c1_i32_143 = arith.constant 1 : i32
    %326 = tpu.dynamic_rotate %323 by %c1_i32_143 dim 0 : vector<32x128xf32>, i32 -> vector<32x128xf32>
    %cst_144 = arith.constant 0.000000e+00 : f32
    %327 = vector.broadcast %cst_144 : f32 to vector<32x128xf32>
    %328 = arith.select %25, %326, %327 : vector<32x128xi1>, vector<32x128xf32>
    %c31_i32_145 = arith.constant 31 : i32
    %329 = tpu.dynamic_rotate %325 by %c31_i32_145 dim 0 : vector<32x128xf32>, i32 -> vector<32x128xf32>
    %cst_146 = arith.constant 0.000000e+00 : f32
    %330 = vector.broadcast %cst_146 : f32 to vector<32x128xf32>
    %331 = arith.select %27, %329, %330 : vector<32x128xi1>, vector<32x128xf32>
    %332 = arith.addf %324, %328 : vector<32x128xf32>
    %333 = arith.addf %332, %331 : vector<32x128xf32>
    %334 = vector.broadcast %322 : vector<1x128xf32> to vector<32x128xf32>
    %335 = arith.addf %333, %334 : vector<32x128xf32>
    %cst_147 = arith.constant 0.000000e+00 : f32
    %336 = vector.broadcast %cst_147 : f32 to vector<32x128xf32>
    %337 = arith.maximumf %335, %336 : vector<32x128xf32>
    %c2760 = arith.constant 2760 : index
    %c0_148 = arith.constant 0 : index
    %338 = vector.load %arg2[%c2760, %c0_148] : memref<3032x384xf32, #tpu.memory_space<vmem>>, vector<128x384xf32>
    %cst_149 = arith.constant dense<0.000000e+00> : vector<32x384xf32>
    %339 = tpu.matmul %337, %338, %cst_149 {dimension_numbers = #tpu.dot_dimension_numbers<[1], [0], [0], [1], [0, 0, 1, 1], [], []>} : vector<32x128xf32>, vector<128x384xf32>, vector<32x384xf32> -> vector<32x384xf32>
    %c2888 = arith.constant 2888 : index
    %c0_150 = arith.constant 0 : index
    %340 = vector.load %arg2[%c2888, %c0_150] : memref<3032x384xf32, #tpu.memory_space<vmem>>, vector<1x128xf32>
    %341 = vector.extract_strided_slice %339 {offsets = [0, 0], sizes = [32, 128], strides = [1, 1]} : vector<32x384xf32> to vector<32x128xf32>
    %342 = vector.extract_strided_slice %339 {offsets = [0, 128], sizes = [32, 128], strides = [1, 1]} : vector<32x384xf32> to vector<32x128xf32>
    %343 = vector.extract_strided_slice %339 {offsets = [0, 256], sizes = [32, 128], strides = [1, 1]} : vector<32x384xf32> to vector<32x128xf32>
    %c1_i32_151 = arith.constant 1 : i32
    %344 = tpu.dynamic_rotate %341 by %c1_i32_151 dim 0 : vector<32x128xf32>, i32 -> vector<32x128xf32>
    %cst_152 = arith.constant 0.000000e+00 : f32
    %345 = vector.broadcast %cst_152 : f32 to vector<32x128xf32>
    %346 = arith.select %25, %344, %345 : vector<32x128xi1>, vector<32x128xf32>
    %c31_i32_153 = arith.constant 31 : i32
    %347 = tpu.dynamic_rotate %343 by %c31_i32_153 dim 0 : vector<32x128xf32>, i32 -> vector<32x128xf32>
    %cst_154 = arith.constant 0.000000e+00 : f32
    %348 = vector.broadcast %cst_154 : f32 to vector<32x128xf32>
    %349 = arith.select %27, %347, %348 : vector<32x128xi1>, vector<32x128xf32>
    %350 = arith.addf %342, %346 : vector<32x128xf32>
    %351 = arith.addf %350, %349 : vector<32x128xf32>
    %352 = vector.broadcast %340 : vector<1x128xf32> to vector<32x128xf32>
    %353 = arith.addf %351, %352 : vector<32x128xf32>
    %cst_155 = arith.constant 0.000000e+00 : f32
    %354 = vector.broadcast %cst_155 : f32 to vector<32x128xf32>
    %355 = arith.maximumf %353, %354 : vector<32x128xf32>
    %c2896 = arith.constant 2896 : index
    %c0_156 = arith.constant 0 : index
    %356 = vector.load %arg2[%c2896, %c0_156] : memref<3032x384xf32, #tpu.memory_space<vmem>>, vector<128x128xf32>
    %cst_157 = arith.constant dense<0.000000e+00> : vector<32x128xf32>
    %357 = tpu.matmul %355, %356, %cst_157 {dimension_numbers = #tpu.dot_dimension_numbers<[1], [0], [0], [1], [0, 0, 1, 1], [], []>} : vector<32x128xf32>, vector<128x128xf32>, vector<32x128xf32> -> vector<32x128xf32>
    %c3024 = arith.constant 3024 : index
    %c0_158 = arith.constant 0 : index
    %358 = vector.load %arg2[%c3024, %c0_158] : memref<3032x384xf32, #tpu.memory_space<vmem>>, vector<1x128xf32>
    %359 = vector.broadcast %358 : vector<1x128xf32> to vector<32x128xf32>
    %360 = arith.addf %357, %359 : vector<32x128xf32>
    %c0_159 = arith.constant 0 : index
    %c0_160 = arith.constant 0 : index
    %361 = vector.load %arg3[%c0_159, %c0_160] : memref<32x128xf32, #tpu.memory_space<vmem>>, vector<32x128xf32>
    tpu.vector_store %arg3[%c0_159, %c0_160], %360 {strides = array<i32>} : memref<32x128xf32, #tpu.memory_space<vmem>>, vector<32x128xf32>,
    return
  }
  func.func @transform_0(%arg0: i32) -> (i32, i32) {
    %c0_i32 = arith.constant 0 : i32
    %c0_i32_0 = arith.constant 0 : i32
    return %arg0, %c0_i32 : i32, i32
  }
  func.func @transform_1(%arg0: i32) -> (i32, i32) {
    %c0_i32 = arith.constant 0 : i32
    %c0_i32_0 = arith.constant 0 : i32
    %c0_i32_1 = arith.constant 0 : i32
    return %c0_i32, %c0_i32_0 : i32, i32
  }
  func.func @transform_2(%arg0: i32) -> (i32, i32) {
    %c0_i32 = arith.constant 0 : i32
    %c0_i32_0 = arith.constant 0 : i32
    return %arg0, %c0_i32 : i32, i32
  }
}

</mosaic_0001>

<bundles_post_ra>
// kernel: forward.1
= control target key start
LH: loop header
LB: loop body
LE: loop exit
PB: predicated region body
PF: predicated region fallthrough
CT: control target
= control target key end

     0   :  { %7 = vsyncpa [#allocation3], 0  ;;  %s8215_s0 = inlined_call_operand.hbm [shape: f32[64,16], index: 0, kind: input, shape index: {}]   ;;  %s8216_s1 = inlined_call_operand.hbm [shape: f32[3032,384], index: 1, kind: input, shape index: {}]   ;;  %s8217_s2 = inlined_call_operand.vmem [shape: f32[64,128], index: 2, kind: output, shape index: {}]  }
   0x1   :  { %9 = vsyncpa [#allocation3 + $0x1], 0 }
   0x2   :  { %10 = vsyncpa [#allocation5], 0  ;;  %s7602_s9 = smov 0   ;;  %s7604_s10 = smov 0  }
   0x3   :  { %s7606_s11 = smov 0   ;;  %s7608_s12 = smov 0  }
   0x4 LB: > { %s5175_s13 = sadd.s32 4294967295, %s7576_s12   ;;  %p36_p0 = scmp.ne.s32.totalorder %s7568_s10, %s7564_s9  ;;  %s7576_s12 = sphi %s7608_s12, %s8253_s12   ;;  %s7572_s11 = sphi %s7606_s11, %s8252_s11   ;;  %s7568_s10 = sphi %s7604_s10, %s8251_s10   ;;  %s7564_s9 = sphi %s7602_s9, %s8250_s9  }
   0x5   : > { %p7624_p1 = scmp.eq.s32.totalorder %s5175_s13, 0  ;;  %p5177_p2 = scmp.ge.s32.totalorder %s7576_s12, 1 }
   0x6   : > { %p94_p3 = scmp.lt.s32.totalorder %s7576_s12, 3  ;;  %s7578_s17 = smov [#allocation4]  }
   0x7   : > { %s8222_s14 = scalar_select %p7624_p1, 1, 0 }
   0x8   : > { %p7632_p4 = por %p7624_p1, %p36_p0  ;;  %p7636_p5 = pnand %p5177_p2, %p94_p3 }
   0x9   : > { %s106_s18 = sshll.u32 %s7578_s17, 4  ;;  %s7649_s20 = sadd.s32 1, %s7576_s12   ;;  %s107_s18 = int_to_ptr.vmem [resolvable:$true] %s106_s18 }
   0xa   : > { %s8223_s15 = scalar_select %p7632_p4, 1, 0 }
   0xb   : > { %s8224_s16 = scalar_select %p7636_p5, 1, 0 }
   0xc   : > { %p7429_p6 = pneg %p7636_p5  ;;  %s23_s21 = sadd.s32 1, %s7572_s11 }
   0xd   : > { %s20_s22 = ssub.s32 %s7576_s12, %s7649_s20  ;;  %s7480_s25 = scalar_lea.hbm %s8216_s1, 145536 }
   0xe   : > { %p7644_p7 = pnand %p7429_p6, %p7624_p1  ;;  %p7481_p8 = scmp.ne.s32.totalorder %s8216_s1, %s7480_s25 }
   0xf   : > { %p7487_p12 = scmp.lt.u32.totalorder %s7480_s25, %s8216_s1 }
  0x10   : > { %p7482_p9 = pneg %p7644_p7 }
  0x12   : > { %p7483_p10 = pnand %p7482_p9, %p7481_p8 }
  0x14   : > { %p7484_p11 = pneg %p7483_p10 }
  0x16   : > { %p7489_p13 = pnand %p7487_p12, %p7484_p11 }
  0x18   : > { %7492 = shalt.err (!%p7489_p13)
}
  0x19   : > { %s7493_s30 = scalar_lea.vmem %s107_s18, 145536  ;;  %p7501_p6 = scmp.lt.s32.totalorder %s107_s18, %s107_s18 }
  0x1a   : > { %p7494_p0 = scmp.ne.s32.totalorder %s107_s18, %s7493_s30  ;;  %p7502_p1 = scmp.lt.s32.totalorder %s7493_s30, %s7493_s30 }
  0x1c   : > { %p7496_p2 = pnand %p7494_p0, %p7482_p9  ;;  %p7503_p4 = por %p7502_p1, %p7501_p6 }
  0x1e   : > { %p7497_p3 = pneg %p7496_p2 }
  0x20   : > { %p7504_p5 = pnand %p7503_p4, %p7497_p3 }
  0x22   : > { %7507 = shalt.err (!%p7504_p5)
}
  0x23   : > { %s7579_s3 = smov 384   ;;  %s7580_s4 = smov 24  }
  0x24   : > { %7432 = dma.hbm_to_vmem [thread:$0]  (!%p7644_p7), %s8216_s1, 145536, %s107_s18, [#allocation5], %s7579_s3, %s7579_s3, %s7580_s4  }
  0x25   : > { %p21_p8 = scmp.eq.s32.totalorder %s20_s22, 0  ;;  %p30_p9 = scmp.ne.s32.totalorder %s7572_s11, %s7568_s10 }
  0x26   : > { %p31_p1 = scmp.eq.s32.totalorder %s7576_s12, 0  ;;  %p7438_p4 = scmp.lt.s32.totalorder %s7576_s12, 2 }
  0x27   : > { %s7675_s7 = scalar_select %p21_p8, %s7572_s11, %s23_s21  }
  0x28   : > { %p32_p5 = por %p31_p1, %p30_p9  ;;  %s120_s8 = sand.u32 1, %s7572_s11  }
  0x29   : > { %s5180_s9 = sshll.u32 %s120_s8, 5  ;;  %s5213_s17 = sshll.u32 %s7576_s12, 9 }
  0x2a   : > { %s7682_s25 = scalar_lea.hbm %s8215_s0, %s5213_s17  ;;  %s124_s18 = scalar_lea.vmem [#allocation2], %s5180_s9 }
  0x2b   : > { %s131_s19 = sshll.u32 %s124_s18, 4  ;;  %p7686_p7 = pnand %p7438_p4, %p32_p5  ;;  %s7684_s19 = int_to_ptr.vmem [resolvable:$true] %s131_s19 }
  0x2c   : > { %s7690_s22 = scalar_lea.sflag [#allocation3], %s120_s8  ;;  %s7508_s26 = scalar_lea.hbm %s7682_s25, 512 }
  0x2d   : > { %p7509_p10 = scmp.ne.s32.totalorder %s7682_s25, %s7508_s26  ;;  %p7510_p11 = pneg %p7686_p7 }
  0x2e   : > { %s7513_s29 = scalar_lea.hbm %s8215_s0, 1024  ;;  %p7514_p0 = scmp.lt.u32.totalorder %s7682_s25, %s8215_s0 }
  0x2f   : > { %p7511_p12 = pnand %p7510_p11, %p7509_p10  ;;  %p7515_p2 = scmp.lt.u32.totalorder %s7513_s29, %s7508_s26 }
  0x30   : > { %p7517_p6 = scmp.lt.u32.totalorder %s7508_s26, %s7682_s25 }
  0x31   : > { %p7512_p13 = pneg %p7511_p12  ;;  %p7516_p3 = por %p7515_p2, %p7514_p0 }
  0x33   : > { %p7518_p8 = por %p7517_p6, %p7516_p3 }
  0x35   : > { %p7519_p9 = pnand %p7518_p8, %p7512_p13 }
  0x37   : > { %7522 = shalt.err (!%p7519_p9)
}
  0x38   : > { %s7523_s4 = scalar_lea.vmem %s7684_s19, 512  ;;  %s7581_s5 = smov [#allocation2]  }
  0x39   : > { %p7524_p1 = scmp.ne.s32.totalorder %s7684_s19, %s7523_s4  ;;  %s7528_s6 = sshll.u32 %s7581_s5, 4  ;;  %s7529_s6 = int_to_ptr.vmem [resolvable:$false] %s7528_s6 }
  0x3a   : > { %s7530_s8 = scalar_lea.vmem %s7529_s6, 1024  ;;  %p7531_p10 = scmp.lt.s32.totalorder %s7684_s19, %s7529_s6 }
  0x3b   : > { %p7526_p4 = pnand %p7524_p1, %p7510_p11  ;;  %p7532_p12 = scmp.lt.s32.totalorder %s7530_s8, %s7523_s4 }
  0x3d   : > { %p7527_p5 = pneg %p7526_p4  ;;  %p7533_p0 = por %p7532_p12, %p7531_p10 }
  0x3f   : > { %p7534_p2 = pnand %p7533_p0, %p7527_p5 }
  0x41   : > { %7537 = shalt.err (!%p7534_p2)
}
  0x42   : > { %s7582_s9 = smov 128   ;;  %s7583_s17 = smov 8  }
  0x43   : > { %7436 = dma.hbm_to_vmem [thread:$0]  (!%p7686_p7), %s7682_s25, 512, %s7684_s19, %s7690_s22, %s7582_s9, %s7582_s9, %s7583_s17  }
  0x44   : > { %p8227_p11 = scmp.ne.s32.totalorder %s8224_s16, 0 }
  0x45   : > { %s145_s23 = sand.u32 (!%p8227_p11), 1, %s7568_s10   ;;  %p8228_p13 = scmp.ne.s32.totalorder (!%p8227_p11), %s8223_s15, 0 }
  0x46   : > { %143 = sbr.rel (%p8227_p11) target bundleno = 5525 (0x1595), region = 28  ;;  %s5184_s24 = sshll.u32 (!%p8227_p11), %s145_s23, 5 }
  0x47   : > { %s146_s18 = scalar_lea.sflag (!%p8227_p11), [#allocation3], %s145_s23  ;;  %s7721_s26 = scalar_lea.vmem (!%p8227_p11), [#allocation2], %s5184_s24 }
  0x4d   : > { %7555 = dma.done.wait (%p8228_p13), %s146_s18, 512  }
  0x4e   : > { %7557 = vsyncadd (%p8228_p13), %s146_s18, 4294966784  ;;  %p8229_p3 = scmp.ne.s32.totalorder %s8222_s14, 0 }
  0x50   : > { %7559 = dma.done.wait (%p8229_p3), [#allocation5], 145536  }
  0x51   : > { %7561 = vsyncadd (%p8229_p3), [#allocation5], 4294821760  ;;  %v7584_v0 = vmov 0.0   ;;  %v186_v1 = vld [vmem:[#allocation4 + $0x8] sm:$0xff]  ;;  %v189_v2 = vld [vmem:[#allocation4 + $0x20] sm:$0xff]  ;;  %vm191_vm0 = vcmask 130048  }
  0x52   : > { %268 = vmatprep.mubr.f32.mxu0 %v7584_v0  ;;  %v187_v3 = vld [vmem:[#allocation4 + $0x10] sm:$0xff]  ;;  %v6224_v4 = vpack.c.bf16 %v189_v2, %v186_v1  ;;  %v190_v5 = vld [vmem:[#allocation4 + $0x28] sm:$0xff]  ;;  %v185_v6 = vld [vmem:[#allocation4] sm:$0xff]  ;;  %vm1111_vm7 = vcmask 261120   ;;  %vm1217_vm8 = vcmask 523264   ;;  %vm7586_vm13 = vmmov 0  }
  0x53   : > { %v188_v7 = vld [vmem:[#allocation4 + $0x18] sm:$0xff]  ;;  %v6228_v8 = vpack.c.bf16 %v190_v5, %v187_v3  ;;  %v181_v10 = vld [vmem:[%s7721_s26] sm:$0xff]  ;;  %v182_v11 = vld [vmem:[%s7721_s26 + $0x8] sm:$0xff]  ;;  %s5186_s14 = sshll.u32 %s5175_s13, 2 }
  0x54   : > { %v6226_v9 = vpack.c.bf16 %v188_v7, %v185_v6  ;;  %6225 = vmatprep.subr.bf16.mxu0 %v6224_v4  ;;  %5616 = vmatprep.mubr.msk.f32.mxu1 %vm191_vm0, %v181_v10  ;;  %v483_v12 = vld [vmem:[#allocation4 + $0x50] sm:$0xff]  ;;  %v486_v13 = vld [vmem:[#allocation4 + $0x68] sm:$0xff]  ;;  %v485_v17 = vld [vmem:[#allocation4 + $0x60] sm:$0xff]  ;;  %p176_p7 = scmp.lt.s32.totalorder %s5186_s14, 7 }
  0x55   : > { %6229 = vmatprep.subr.bf16.mxu1 %v6228_v8  ;;  %v183_v14 = vld [vmem:[%s7721_s26 + $0x10] sm:$0xff]  ;;  %v6232_v15 = vpack.c.bf16 %v486_v13, %v483_v12  ;;  %v482_v16 = vld [vmem:[#allocation4 + $0x48] sm:$0xff]  ;;  %v484_v18 = vld [vmem:[#allocation4 + $0x58] sm:$0xff] }
  0x56   : > { %6227 = vmatpush1.bf16.msra.mxu0 %v6226_v9  ;;  %6231 = vmatpush3.bf16.msra.mxu1 %v6228_v8  ;;  %v6234_v19 = vpack.c.bf16 %v485_v17, %v482_v16  ;;  %v487_v20 = vld [vmem:[#allocation4 + $0x70] sm:$0xff]  ;;  %v489_v21 = vld [vmem:[#allocation4 + $0x80] sm:$0xff]  ;;  %v492_v22 = vld [vmem:[#allocation4 + $0x98] sm:$0xff]  ;;  %s8255_s14 = smov (!%p176_p7, %s5186_s14), 7 }
  0x57   : > { %6233 = vmatprep.subr.bf16.mxu0 %v6232_v15  ;;  %v6264_v23 = vpack.c.bf16 %v487_v20, %v484_v18  ;;  %v6236_v24 = vpack.c.bf16 %v492_v22, %v489_v21  ;;  %v488_v25 = vld [vmem:[#allocation4 + $0x78] sm:$0xff]  ;;  %v491_v26 = vld [vmem:[#allocation4 + $0x90] sm:$0xff]  ;;  %v490_v27 = vld [vmem:[#allocation4 + $0x88] sm:$0xff]  ;;  %s5187_s15 = sshll.u32 %s8255_s14, 3 }
  0x58   : > { %v493_v28 = vld [vmem:[#allocation4 + $0xa0] sm:$0xff]  ;;  %v184_v29 = vld [vmem:[%s7721_s26 + $0x18] sm:$0xff]  ;;  %v6238_v30 = vpack.c.bf16 %v491_v26, %v488_v25  ;;  %v495_v32 = vld [vmem:[#allocation4 + $0xb0] sm:$0xff]  ;;  %s179_s19 = scalar_lea.vmem %s8217_s2, %s5187_s15 }
  0x59   : > { %5188 = vmatmul.mubr.msk.f32.vlgmr.msra.gmra.mrb[0].mxu0 %vm191_vm0, %v181_v10  ;;  %5617 = vmatmul.mubr.msk.f32.vlgmr.msra.gmra.mrb[0].mxu1 %vm191_vm0, %v182_v11  ;;  %v6268_v31 = vpack.c.bf16 %v493_v28, %v490_v27  ;;  %v498_v33 = vld [vmem:[#allocation4 + $0xc8] sm:$0xff]  ;;  %v497_v36 = vld [vmem:[#allocation4 + $0xc0] sm:$0xff]  ;;  %v496_v37 = vld [vmem:[#allocation4 + $0xb8] sm:$0xff] }
  0x5a   : > { %274 = vmatprep.mubr.f32.mxu0 %v7584_v0  ;;  %5619 = vmatprep.mubr.msk.f32.mxu1 %vm191_vm0, %v183_v14  ;;  %v6240_v34 = vpack.c.bf16 %v498_v33, %v495_v32  ;;  %v494_v35 = vld [vmem:[#allocation4 + $0xa8] sm:$0xff]  ;;  %v499_v39 = vld [vmem:[#allocation4 + $0xd0] sm:$0xff]  ;;  %v501_v41 = vld [vmem:[#allocation4 + $0xe0] sm:$0xff] }
  0x5b   : > { %6235 = vmatpush1.bf16.msra.mxu0 %v6234_v19  ;;  %6265 = vmatprep.subr.bf16.mxu1 %v6264_v23  ;;  %v6242_v38 = vpack.c.bf16 %v497_v36, %v494_v35  ;;  %v6272_v40 = vpack.c.bf16 %v499_v39, %v496_v37  ;;  %v504_v42 = vld [vmem:[#allocation4 + $0xf8] sm:$0xff]  ;;  %v503_v45 = vld [vmem:[#allocation4 + $0xf0] sm:$0xff]  ;;  %v502_v46 = vld [vmem:[#allocation4 + $0xe8] sm:$0xff] }
  0x5c   : > { %6237 = vmatprep.subr.bf16.mxu0 %v6236_v24  ;;  %6267 = vmatpush3.bf16.msra.mxu1 %v6264_v23  ;;  %v6244_v43 = vpack.c.bf16 %v504_v42, %v501_v41  ;;  %v500_v44 = vld [vmem:[#allocation4 + $0xd8] sm:$0xff]  ;;  %v505_v48 = vld [vmem:[#allocation4 + $0x100] sm:$0xff]  ;;  %v507_v50 = vld [vmem:[#allocation4 + $0x110] sm:$0xff] }
  0x5d   : > { %5189 = vmatmul.mubr.msk.f32.gmra.mrb[2].mxu0 %vm191_vm0, %v182_v11  ;;  %5620 = vmatmul.mubr.msk.f32.gmra.mrb[2].mxu1 %vm191_vm0, %v184_v29  ;;  %v6246_v47 = vpack.c.bf16 %v503_v45, %v500_v44  ;;  %v6276_v49 = vpack.c.bf16 %v505_v48, %v502_v46  ;;  %v510_v51 = vld [vmem:[#allocation4 + $0x128] sm:$0xff]  ;;  %v509_v54 = vld [vmem:[#allocation4 + $0x120] sm:$0xff]  ;;  %v508_v56 = vld [vmem:[#allocation4 + $0x118] sm:$0xff] }
  0x5e   : > { %280 = vmatprep.mubr.f32.mxu0 %v7584_v0  ;;  %6269 = vmatprep.subr.bf16.mxu1 %v6268_v31  ;;  %v6248_v52 = vpack.c.bf16 %v510_v51, %v507_v50  ;;  %v506_v53 = vld [vmem:[#allocation4 + $0x108] sm:$0xff]  ;;  %v511_v57 = vld [vmem:[#allocation4 + $0x130] sm:$0xff]  ;;  %v513_v59 = vld [vmem:[#allocation4 + $0x140] sm:$0xff] }
  0x5f   : > { %6239 = vmatpush1.bf16.msra.mxu0 %v6238_v30  ;;  %v6250_v55 = vpack.c.bf16 %v509_v54, %v506_v53  ;;  %v6280_v58 = vpack.c.bf16 %v511_v57, %v508_v56  ;;  %v516_v60 = vld [vmem:[#allocation4 + $0x158] sm:$0xff]  ;;  %v515_v63 = vld [vmem:[#allocation4 + $0x150] sm:$0xff]  ;;  %v514_v1 = vld [vmem:[#allocation4 + $0x148] sm:$0xff] }
  0x60   : > { %6271 = vmatpush3.bf16.msra.mxu1 %v6268_v31  ;;  %6241 = vmatprep.subr.bf16.mxu0 %v6240_v34  ;;  %v6252_v61 = vpack.c.bf16 %v516_v60, %v513_v59  ;;  %v512_v62 = vld [vmem:[#allocation4 + $0x138] sm:$0xff]  ;;  %v517_v3 = vld [vmem:[#allocation4 + $0x160] sm:$0xff]  ;;  %v519_v5 = vld [vmem:[#allocation4 + $0x170] sm:$0xff] }
  0x61   : > { %5190 = vmatmul.mubr.msk.f32.gmra.mrb[4].mxu0 %vm191_vm0, %v183_v14  ;;  %6273 = vmatprep.subr.bf16.mxu1 %v6272_v40  ;;  %v6254_v2 = vpack.c.bf16 %v515_v63, %v512_v62  ;;  %v6284_v4 = vpack.c.bf16 %v517_v3, %v514_v1  ;;  %v522_v6 = vld [vmem:[#allocation4 + $0x188] sm:$0xff]  ;;  %v521_v9 = vld [vmem:[#allocation4 + $0x180] sm:$0xff]  ;;  %v520_v10 = vld [vmem:[#allocation4 + $0x178] sm:$0xff] }
  0x62   : > { %286 = vmatprep.mubr.f32.mxu0 %v7584_v0  ;;  %v6256_v7 = vpack.c.bf16 %v522_v6, %v519_v5  ;;  %v518_v8 = vld [vmem:[#allocation4 + $0x168] sm:$0xff]  ;;  %v523_v12 = vld [vmem:[#allocation4 + $0x190] sm:$0xff]  ;;  %v525_v14 = vld [vmem:[#allocation4 + $0x1a0] sm:$0xff] }
  0x63   : > { %6243 = vmatpush1.bf16.msra.mxu0 %v6242_v38  ;;  %v6258_v11 = vpack.c.bf16 %v521_v9, %v518_v8  ;;  %v6288_v13 = vpack.c.bf16 %v523_v12, %v520_v10  ;;  %v528_v15 = vld [vmem:[#allocation4 + $0x1b8] sm:$0xff]  ;;  %v527_v18 = vld [vmem:[#allocation4 + $0x1b0] sm:$0xff]  ;;  %v526_v19 = vld [vmem:[#allocation4 + $0x1a8] sm:$0xff] }
  0x64   : > { %6275 = vmatpush3.bf16.msra.mxu1 %v6272_v40  ;;  %6245 = vmatprep.subr.bf16.mxu0 %v6244_v43  ;;  %v6260_v16 = vpack.c.bf16 %v528_v15, %v525_v14  ;;  %v524_v17 = vld [vmem:[#allocation4 + $0x198] sm:$0xff]  ;;  %v529_v21 = vld [vmem:[#allocation4 + $0x1c0] sm:$0xff]  ;;  %v746_v23 = vld [vmem:[#allocation4 + $0x1e8] sm:$0xff] }
  0x65   : > { %5191 = vmatmul.mubr.msk.f32.gmra.mrb[6].mxu0 %vm191_vm0, %v184_v29  ;;  %6277 = vmatprep.subr.bf16.mxu1 %v6276_v49  ;;  %v6262_v20 = vpack.c.bf16 %v527_v18, %v524_v17  ;;  %v6292_v22 = vpack.c.bf16 %v529_v21, %v526_v19  ;;  %v749_v24 = vld [vmem:[#allocation4 + $0x200] sm:$0xff]  ;;  %v747_v26 = vld [vmem:[#allocation4 + $0x1f0] sm:$0xff]  ;;  %v750_v27 = vld [vmem:[#allocation4 + $0x208] sm:$0xff]  ;;  %v379_v29 = vlaneseq }
  0x66   : > { %594 = vmatprep.mubr.f32.mxu0 %v7584_v0  ;;  %v6296_v25 = vpack.c.bf16 %v749_v24, %v746_v23  ;;  %v7748_v28 = vpack.c.bf16 %v750_v27, %v747_v26  ;;  %v745_v21 = vld [vmem:[#allocation4 + $0x1e0] sm:$0xff]  ;;  %v755_v26 = vld [vmem:[#allocation4 + $0x230] sm:$0xff] }
  0x67   : > { %6247 = vmatpush1.bf16.msra.mxu0 %v6246_v47  ;;  %v7751_v30 = vshrl.u32 %v379_v29, 7  ;;  %v753_v27 = vld [vmem:[#allocation4 + $0x220] sm:$0xff]  ;;  %v756_v29 = vld [vmem:[#allocation4 + $0x238] sm:$0xff]  ;;  %v5008_v5 = vld [vmem:[#allocation4 + $0x2370] ss:$0 sm:$0xff] }
  0x68   : > { %6279 = vmatpush3.bf16.msra.mxu1 %v6276_v49  ;;  %6249 = vmatprep.subr.bf16.mxu0 %v6248_v52 }
  0x69   : > { %6281 = vmatprep.subr.bf16.mxu1 %v6280_v58  ;;  %v7754_v31 = vadd.s32 8, %v7751_v30  ;;  %v382_v33 = vadd.s32 16, %v7751_v30  ;;  %vm457_vm1 = vcmp.lt.s32.totalorder %v7751_v30, 7  ;;  %vm444_vm2 = vcmp.lt.s32.totalorder %v7751_v30, 1 }
  0x6a   : > { %v383_v42 = vadd.s32 24, %v7751_v30  ;;  %v388_v62 = vand.u32 15, %v7751_v30 }
  0x6b   : > { %6251 = vmatpush1.bf16.msra.mxu0 %v6250_v55  ;;  %v395_v39 = vand.u32 15, %v7754_v31  ;;  %v402_v41 = vand.u32 15, %v382_v33 }
  0x6c   : > { %6283 = vmatpush3.bf16.msra.mxu1 %v6280_v58  ;;  %6253 = vmatprep.subr.bf16.mxu0 %v6252_v61  ;;  %v409_v56 = vand.u32 15, %v383_v42  ;;  %vm7790_vm6 = vcmp.ne.s32.totalorder %v388_v62, 0  ;;  %v770_v62 = vld [vmem:[#allocation4 + $0x2a8] sm:$0xff] }
  0x6d   : > { %6285 = vmatprep.subr.bf16.mxu1 %v6284_v4  ;;  %vm7765_vm3 = vcmp.ne.s32.totalorder %v395_v39, 15  ;;  %vm7769_vm4 = vcmp.ne.s32.totalorder %v402_v41, 0  ;;  %v754_v39 = vld [vmem:[#allocation4 + $0x228] sm:$0xff] }
  0x6e   : > { %vm7786_vm5 = vcmp.ne.s32.totalorder %v409_v56, 15  ;;  %v763_v56 = vld [vmem:[#allocation4 + $0x270] sm:$0xff] }
  0x6f   : > { %6255 = vmatpush1.bf16.msra.mxu0 %v6254_v2 }
  0x70   : > { %6287 = vmatpush3.bf16.msra.mxu1 %v6284_v4  ;;  %6257 = vmatprep.subr.bf16.mxu0 %v6256_v7 }
  0x71   : > { %6289 = vmatprep.subr.bf16.mxu1 %v6288_v13 }
  0x73   : > { %6259 = vmatpush1.bf16.msra.mxu0 %v6258_v11 }
  0x74   : > { %6291 = vmatpush3.bf16.msra.mxu1 %v6288_v13  ;;  %6261 = vmatprep.subr.bf16.mxu0 %v6260_v16  ;;  %v378_v16 = vld [vmem:[#allocation4 + $0x30] ss:$0 sm:$0xff] }
  0x75   : > { %6293 = vmatprep.subr.bf16.mxu1 %v6292_v22 }
  0x77   : > { %6263 = vmatpush1.bf16.msra.mxu0 %v6262_v20 }
  0x78   : > { %6295 = vmatpush3.bf16.msra.mxu1 %v6292_v22  ;;  %6297 = vmatprep.subr.bf16.mxu0 %v6296_v25  ;;  %v748_v22 = vld [vmem:[#allocation4 + $0x1f8] sm:$0xff] }
  0x79   : > { %6329 = vmatprep.subr.bf16.mxu1 %v7748_v28  ;;  %v752_v25 = vld [vmem:[#allocation4 + $0x218] sm:$0xff]  ;;  %v6298_v33 = vpack.c.bf16 %v748_v22, %v745_v21  ;;  %v781_v22 = vld [vmem:[#allocation4 + $0x300] sm:$0xff] }
 0x12c   : > { %v270_v32 = vpop.f32.mrb[0].mxu0  ;;  %v5618_v35 = vpop.f32.mrb[0].mxu1 }
 0x12d   : > { %v272_v34 = vpop.f32.mrb[1].mxu0  ;;  %v359_v36 = vpop.f32.mrb[1].mxu1  ;;  %v454_v37 = vrot.slane %v5618_v35, 1  ;;  %v440_v43 = vrot.slane %v270_v32, 7 }
 0x12e   : > { %v453_v38 = vrot.slane %v359_v36, 1 }
 0x130   : > { %v276_v40 = vpop.f32.mrb[2].mxu0  ;;  %v460_v44 = vsel %vm457_vm1, %v453_v38, %v454_v37  ;;  %v5621_v46 = vpop.f32.mrb[2].mxu1 }
 0x131   : > { %v441_v45 = vrot.slane %v276_v40, 7  ;;  %v278_v47 = vpop.f32.mrb[3].mxu0  ;;  %v456_v48 = vrot.slane %v5621_v46, 1  ;;  %v369_v49 = vpop.f32.mrb[3].mxu1  ;;  %v6332_v40 = vpack.c.bf16 %v756_v29, %v753_v27  ;;  %v757_v46 = vld [vmem:[#allocation4 + $0x240] sm:$0xff]  ;;  %v788_v29 = vld [vmem:[#allocation4 + $0x338] sm:$0xff] }
 0x132   : > { %v455_v52 = vrot.slane %v369_v49, 1  ;;  %v762_v49 = vld [vmem:[#allocation4 + $0x268] sm:$0xff] }
 0x133   : > { %v447_v50 = vsel %vm444_vm2, %v440_v43, %v441_v45  ;;  %v461_v57 = vsel %vm457_vm1, %v456_v48, %v453_v38  ;;  %v751_v38 = vld [vmem:[#allocation4 + $0x210] sm:$0xff] }
 0x134   : > { %v467_v53 = vadd.f32 %v447_v50, %v278_v47  ;;  %v282_v54 = vpop.f32.mrb[4].mxu0  ;;  %v459_v58 = vsel %vm457_vm1, %v454_v37, %v455_v52  ;;  %v458_v61 = vsel %vm457_vm1, %v455_v52, %v456_v48  ;;  %v465_v13 = vsel %vm7786_vm5, %v461_v57, 0.0  ;;  %v760_v47 = vld [vmem:[#allocation4 + $0x258] sm:$0xff]  ;;  %v766_v57 = vld [vmem:[#allocation4 + $0x288] sm:$0xff] }
 0x135   : > { %v442_v59 = vrot.slane %v282_v54, 7  ;;  %v284_v60 = vpop.f32.mrb[5].mxu0  ;;  %v463_v63 = vsel %vm7765_vm3, %v459_v58, 0.0  ;;  %v6300_v37 = vpack.c.bf16 %v755_v26, %v752_v25  ;;  %v6302_v41 = vpack.c.bf16 %v754_v39, %v751_v38  ;;  %v764_v52 = vld [vmem:[#allocation4 + $0x278] sm:$0xff]  ;;  %v765_v58 = vld [vmem:[#allocation4 + $0x280] sm:$0xff]  ;;  %v786_v26 = vld [vmem:[#allocation4 + $0x328] sm:$0xff] }
 0x136   : > { %v471_v1 = vadd.f32 %v467_v53, %v463_v63  ;;  %v6306_v48 = vpack.c.bf16 %v760_v47, %v757_v46  ;;  %v767_v53 = vld [vmem:[#allocation4 + $0x290] sm:$0xff]  ;;  %v773_v63 = vld [vmem:[#allocation4 + $0x2c0] sm:$0xff]  ;;  %v792_v39 = vld [vmem:[#allocation4 + $0x358] sm:$0xff] }
 0x137   : > { %v446_v2 = vsel %vm444_vm2, %v441_v45, %v442_v59  ;;  %v6308_v54 = vpack.c.bf16 %v767_v53, %v764_v52 }
 0x138   : > { %v451_v3 = vsel %vm7769_vm4, %v446_v2, 0.0  ;;  %v288_v4 = vpop.f32.mrb[6].mxu0  ;;  %v475_v20 = vadd.f32 %v471_v1, %v378_v16  ;;  %v6312_v1 = vpack.c.bf16 %v773_v63, %v770_v62  ;;  %v769_v2 = vld [vmem:[#allocation4 + $0x2a0] sm:$0xff] }
 0x139   : > { %v468_v6 = vadd.f32 %v451_v3, %v284_v60  ;;  %v443_v8 = vrot.slane %v288_v4, 7  ;;  %v290_v9 = vpop.f32.mrb[7].mxu0  ;;  %v768_v60 = vld [vmem:[#allocation4 + $0x298] sm:$0xff] }
 0x13a   : > { %v479_v35 = vmax.f32 %v475_v20, 0.0  ;;  %v772_v3 = vld [vmem:[#allocation4 + $0x2b8] sm:$0xff]  ;;  %v785_v20 = vld [vmem:[#allocation4 + $0x320] sm:$0xff] }
 0x13b   : > { %v472_v10 = vadd.f32 %v468_v6, %v458_v61  ;;  %v448_v11 = vsel %vm444_vm2, %v443_v8, %v440_v43  ;;  %v445_v12 = vsel %vm444_vm2, %v442_v59, %v443_v8  ;;  %v758_v43 = vld [vmem:[#allocation4 + $0x248] sm:$0xff]  ;;  %v6310_v59 = vpack.c.bf16 %v766_v57, %v763_v56  ;;  %v771_v6 = vld [vmem:[#allocation4 + $0x2b0] sm:$0xff] }
 0x13c   : > { %v449_v14 = vsel %vm7790_vm6, %v448_v11, 0.0  ;;  %v469_v15 = vadd.f32 %v445_v12, %v290_v9  ;;  %v6340_v61 = vpack.c.bf16 %v768_v60, %v765_v58  ;;  %v6314_v4 = vpack.c.bf16 %v772_v3, %v769_v2  ;;  %v774_v8 = vld [vmem:[#allocation4 + $0x2c8] sm:$0xff]  ;;  %v779_v11 = vld [vmem:[#allocation4 + $0x2f0] sm:$0xff] }
 0x13d   : > { %v466_v17 = vadd.f32 %v449_v14, %v272_v34  ;;  %v476_v24 = vadd.f32 %v472_v10, %v378_v16  ;;  %v6344_v9 = vpack.c.bf16 %v774_v8, %v771_v6  ;;  %v776_v10 = vld [vmem:[#allocation4 + $0x2d8] sm:$0xff]  ;;  %v778_v14 = vld [vmem:[#allocation4 + $0x2e8] sm:$0xff] }
 0x13e   : > { %v473_v18 = vadd.f32 %v469_v15, %v465_v13  ;;  %v6316_v12 = vpack.c.bf16 %v779_v11, %v776_v10  ;;  %v775_v13 = vld [vmem:[#allocation4 + $0x2d0] sm:$0xff]  ;;  %v777_v15 = vld [vmem:[#allocation4 + $0x2e0] sm:$0xff] }
 0x13f   : > { %v470_v19 = vadd.f32 %v466_v17, %v460_v44  ;;  %v480_v34 = vmax.f32 %v476_v24, 0.0  ;;  %v761_v44 = vld [vmem:[#allocation4 + $0x260] sm:$0xff]  ;;  %v780_v17 = vld [vmem:[#allocation4 + $0x2f8] sm:$0xff]  ;;  %v783_v24 = vld [vmem:[#allocation4 + $0x310] sm:$0xff] }
 0x140   : > { %v477_v36 = vadd.f32 %v473_v18, %v378_v16  ;;  %v6304_v45 = vpack.c.bf16 %v761_v44, %v758_v43  ;;  %v6348_v18 = vpack.c.bf16 %v780_v17, %v777_v15  ;;  %v6352_v27 = vpack.c.bf16 %v786_v26, %v783_v24 }
 0x141   : > { %v474_v23 = vadd.f32 %v470_v19, %v378_v16  ;;  %v6318_v16 = vpack.c.bf16 %v778_v14, %v775_v13  ;;  %v782_v19 = vld [vmem:[#allocation4 + $0x308] sm:$0xff] }
 0x142   : > { %v481_v42 = vmax.f32 %v477_v36, 0.0  ;;  %v6320_v21 = vpack.c.bf16 %v785_v20, %v782_v19  ;;  %v790_v36 = vld [vmem:[#allocation4 + $0x348] sm:$0xff] }
 0x143   : > { %v478_v32 = vmax.f32 %v474_v23, 0.0  ;;  %v784_v23 = vld [vmem:[#allocation4 + $0x318] sm:$0xff]  ;;  %v704_v19 = vld [vmem:[#allocation4 + $0x1c8] ss:$0 sm:$0xff] }
 0x144   : > { %v6322_v25 = vpack.c.bf16 %v784_v23, %v781_v22 }
 0x145   : > { %595 = vmatmul.mubr.f32.vlgmr.msra.gmra.mrb[8].mxu0 %v478_v32  ;;  %5654 = vmatprep.mubr.f32.mxu1 %v478_v32  ;;  %v791_v32 = vld [vmem:[#allocation4 + $0x350] sm:$0xff] }
 0x146   : > { %5655 = vmatmul.mubr.f32.vlgmr.msra.gmra.mrb[4].mxu1 %v479_v35  ;;  %600 = vmatprep.mubr.f32.mxu0 %v7584_v0 }
 0x147   : > { %5657 = vmatprep.mubr.f32.mxu1 %v480_v34  ;;  %6299 = vmatpush1.bf16.msra.mxu0 %v6298_v33  ;;  %v6324_v33 = vpack.c.bf16 %v791_v32, %v788_v29  ;;  %v1013_v29 = vld [vmem:[#allocation4 + $0x3f0] sm:$0xff] }
 0x148   : > { %6331 = vmatpush3.bf16.msra.mxu1 %v7748_v28  ;;  %6301 = vmatprep.subr.bf16.mxu0 %v6300_v37  ;;  %v759_v28 = vld [vmem:[#allocation4 + $0x250] sm:$0xff]  ;;  %v789_v37 = vld [vmem:[#allocation4 + $0x340] sm:$0xff] }
 0x149   : > { %601 = vmatmul.mubr.f32.gmra.mrb[10].mxu0 %v479_v35  ;;  %6333 = vmatprep.subr.bf16.mxu1 %v6332_v40  ;;  %v6336_v50 = vpack.c.bf16 %v762_v49, %v759_v28  ;;  %v787_v35 = vld [vmem:[#allocation4 + $0x330] sm:$0xff] }
 0x14a   : > { %5658 = vmatmul.mubr.f32.gmra.mrb[6].mxu1 %v481_v42  ;;  %606 = vmatprep.mubr.f32.mxu0 %v7584_v0  ;;  %v6326_v38 = vpack.c.bf16 %v790_v36, %v787_v35 }
 0x14b   : > { %6303 = vmatpush1.bf16.msra.mxu0 %v6302_v41  ;;  %v1011_v41 = vld [vmem:[#allocation4 + $0x3c0] sm:$0xff] }
 0x14c   : > { %6335 = vmatpush3.bf16.msra.mxu1 %v6332_v40  ;;  %6305 = vmatprep.subr.bf16.mxu0 %v6304_v45  ;;  %v1010_v40 = vld [vmem:[#allocation4 + $0x3a8] sm:$0xff] }
 0x14d   : > { %607 = vmatmul.mubr.f32.gmra.mrb[12].mxu0 %v480_v34  ;;  %6337 = vmatprep.subr.bf16.mxu1 %v6336_v50  ;;  %v6356_v34 = vpack.c.bf16 %v792_v39, %v789_v37  ;;  %v1014_v39 = vld [vmem:[#allocation4 + $0x408] sm:$0xff] }
 0x14e   : > { %612 = vmatprep.mubr.f32.mxu0 %v7584_v0 }
 0x14f   : > { %6307 = vmatpush1.bf16.msra.mxu0 %v6306_v48 }
 0x150   : > { %6339 = vmatpush3.bf16.msra.mxu1 %v6336_v50  ;;  %6309 = vmatprep.subr.bf16.mxu0 %v6308_v54 }
 0x151   : > { %613 = vmatmul.mubr.f32.gmra.mrb[14].mxu0 %v481_v42  ;;  %6341 = vmatprep.subr.bf16.mxu1 %v6340_v61  ;;  %v6360_v42 = vpack.c.bf16 %v1011_v41, %v1010_v40  ;;  %v1016_v41 = vld [vmem:[#allocation4 + $0x438] sm:$0xff] }
 0x152   : > { %857 = vmatprep.mubr.f32.mxu0 %v7584_v0 }
 0x153   : > { %6311 = vmatpush1.bf16.msra.mxu0 %v6310_v59 }
 0x154   : > { %6343 = vmatpush3.bf16.msra.mxu1 %v6340_v61  ;;  %6313 = vmatprep.subr.bf16.mxu0 %v6312_v1 }
 0x155   : > { %6345 = vmatprep.subr.bf16.mxu1 %v6344_v9 }
 0x157   : > { %6315 = vmatpush1.bf16.msra.mxu0 %v6314_v4 }
 0x158   : > { %6347 = vmatpush3.bf16.msra.mxu1 %v6344_v9  ;;  %6317 = vmatprep.subr.bf16.mxu0 %v6316_v12 }
 0x159   : > { %6349 = vmatprep.subr.bf16.mxu1 %v6348_v18 }
 0x15b   : > { %6319 = vmatpush1.bf16.msra.mxu0 %v6318_v16 }
 0x15c   : > { %6351 = vmatpush3.bf16.msra.mxu1 %v6348_v18  ;;  %6321 = vmatprep.subr.bf16.mxu0 %v6320_v21 }
 0x15d   : > { %6353 = vmatprep.subr.bf16.mxu1 %v6352_v27 }
 0x15f   : > { %6323 = vmatpush1.bf16.msra.mxu0 %v6322_v25 }
 0x160   : > { %6355 = vmatpush3.bf16.msra.mxu1 %v6352_v27  ;;  %6325 = vmatprep.subr.bf16.mxu0 %v6324_v33  ;;  %v1012_v27 = vld [vmem:[#allocation4 + $0x3d8] sm:$0xff] }
 0x161   : > { %6357 = vmatprep.subr.bf16.mxu1 %v6356_v34  ;;  %v6364_v36 = vpack.c.bf16 %v1013_v29, %v1012_v27 }
 0x163   : > { %6327 = vmatpush1.bf16.msra.mxu0 %v6326_v38 }
 0x164   : > { %6359 = vmatpush3.bf16.msra.mxu1 %v6356_v34  ;;  %6361 = vmatprep.subr.bf16.mxu0 %v6360_v42  ;;  %v1015_v34 = vld [vmem:[#allocation4 + $0x420] sm:$0xff] }
 0x165   : > { %v6368_v40 = vpack.c.bf16 %v1015_v34, %v1014_v39 }
 0x218   : > { %v596_v43 = vpop.f32.mrb[8].mxu0 }
 0x219   : > { %v598_v44 = vpop.f32.mrb[9].mxu0  ;;  %v5656_v45 = vpop.f32.mrb[4].mxu1  ;;  %v705_v49 = vrot.slane %v596_v43, 7  ;;  %v1017_v43 = vld [vmem:[#allocation4 + $0x450] sm:$0xff] }
 0x21a   : > { %v718_v46 = vrot.slane %v5656_v45, 1  ;;  %v685_v47 = vpop.f32.mrb[5].mxu1  ;;  %v1019_v45 = vld [vmem:[#allocation4 + $0x480] sm:$0xff] }
 0x21b   : > { %v717_v28 = vrot.slane %v685_v47, 1  ;;  %v1020_v47 = vld [vmem:[#allocation4 + $0x498] sm:$0xff] }
 0x21c   : > { %v602_v48 = vpop.f32.mrb[10].mxu0 }
 0x21d   : > { %v723_v50 = vsel %vm457_vm1, %v717_v28, %v718_v46  ;;  %v706_v52 = vrot.slane %v602_v48, 7  ;;  %v604_v53 = vpop.f32.mrb[11].mxu0  ;;  %v5659_v54 = vpop.f32.mrb[6].mxu1 }
 0x21e   : > { %v720_v56 = vrot.slane %v5659_v54, 1  ;;  %v695_v57 = vpop.f32.mrb[7].mxu1  ;;  %v1025_v54 = vld [vmem:[#allocation4 + $0x510] sm:$0xff] }
 0x21f   : > { %v711_v58 = vsel %vm444_vm2, %v705_v49, %v706_v52  ;;  %v719_v59 = vrot.slane %v695_v57, 1 }
 0x220   : > { %v730_v60 = vadd.f32 %v711_v58, %v604_v53  ;;  %v608_v61 = vpop.f32.mrb[12].mxu0  ;;  %v724_v62 = vsel %vm457_vm1, %v720_v56, %v717_v28  ;;  %v1021_v28 = vld [vmem:[#allocation4 + $0x4b0] sm:$0xff]  ;;  %v1024_v53 = vld [vmem:[#allocation4 + $0x4f8] sm:$0xff] }
 0x221   : > { %v722_v63 = vsel %vm457_vm1, %v718_v46, %v719_v59  ;;  %v707_v1 = vrot.slane %v608_v61, 7  ;;  %v610_v2 = vpop.f32.mrb[13].mxu0  ;;  %v721_v3 = vsel %vm457_vm1, %v719_v59, %v720_v56  ;;  %v728_v21 = vsel %vm7786_vm5, %v724_v62, 0.0 }
 0x222   : > { %v726_v4 = vsel %vm7765_vm3, %v722_v63, 0.0  ;;  %v6380_v48 = vpack.c.bf16 %v1021_v28, %v1020_v47  ;;  %v6388_v56 = vpack.c.bf16 %v1025_v54, %v1024_v53  ;;  %v1008_v28 = vld [vmem:[#allocation4 + $0x378] sm:$0xff]  ;;  %v1197_v53 = vld [vmem:[#allocation4 + $0x548] sm:$0xff] }
 0x223   : > { %v734_v6 = vadd.f32 %v730_v60, %v726_v4  ;;  %v710_v8 = vsel %vm444_vm2, %v706_v52, %v707_v1 }
 0x224   : > { %v715_v9 = vsel %vm7769_vm4, %v710_v8, 0.0  ;;  %v614_v10 = vpop.f32.mrb[14].mxu0 }
 0x225   : > { %v731_v11 = vadd.f32 %v715_v9, %v610_v2  ;;  %v708_v12 = vrot.slane %v614_v10, 7  ;;  %v616_v13 = vpop.f32.mrb[15].mxu0  ;;  %v738_v24 = vadd.f32 %v734_v6, %v704_v19 }
 0x227   : > { %v735_v14 = vadd.f32 %v731_v11, %v721_v3  ;;  %v712_v15 = vsel %vm444_vm2, %v708_v12, %v705_v49  ;;  %v709_v16 = vsel %vm444_vm2, %v707_v1, %v708_v12  ;;  %v742_v33 = vmax.f32 %v738_v24, 0.0  ;;  %v1022_v49 = vld [vmem:[#allocation4 + $0x4c8] sm:$0xff] }
 0x228   : > { %v713_v17 = vsel %vm7790_vm6, %v712_v15, 0.0  ;;  %v732_v18 = vadd.f32 %v709_v16, %v616_v13 }
 0x229   : > { %v729_v20 = vadd.f32 %v713_v17, %v598_v44  ;;  %v739_v26 = vadd.f32 %v735_v14, %v704_v19  ;;  %v6372_v44 = vpack.c.bf16 %v1017_v43, %v1016_v41 }
 0x22a   : > { %v736_v22 = vadd.f32 %v732_v18, %v728_v21 }
 0x22b   : > { %v733_v23 = vadd.f32 %v729_v20, %v723_v50  ;;  %v743_v37 = vmax.f32 %v739_v26, 0.0  ;;  %v1023_v50 = vld [vmem:[#allocation4 + $0x4e0] sm:$0xff] }
 0x22c   : > { %v740_v35 = vadd.f32 %v736_v22, %v704_v19  ;;  %v6384_v52 = vpack.c.bf16 %v1023_v50, %v1022_v49 }
 0x22d   : > { %v737_v25 = vadd.f32 %v733_v23, %v704_v19 }
 0x22e   : > { %v744_v38 = vmax.f32 %v740_v35, 0.0 }
 0x22f   : > { %v741_v32 = vmax.f32 %v737_v25, 0.0 }
 0x231   : > { %858 = vmatmul.mubr.f32.vlgmr.msra.gmra.mrb[16].mxu0 %v741_v32  ;;  %5692 = vmatprep.mubr.f32.mxu1 %v741_v32 }
 0x232   : > { %5693 = vmatmul.mubr.f32.vlgmr.msra.gmra.mrb[8].mxu1 %v742_v33  ;;  %863 = vmatprep.mubr.f32.mxu0 %v7584_v0 }
 0x233   : > { %5695 = vmatprep.mubr.f32.mxu1 %v743_v37  ;;  %6363 = vmatpush3.bf16.msra.mxu0 %v6360_v42  ;;  %v1018_v42 = vld [vmem:[#allocation4 + $0x468] sm:$0xff] }
 0x234   : > { %6365 = vmatprep.subr.bf16.mxu0 %v6364_v36  ;;  %v6376_v46 = vpack.c.bf16 %v1019_v45, %v1018_v42 }
 0x235   : > { %864 = vmatmul.mubr.f32.gmra.mrb[18].mxu0 %v742_v33 }
 0x236   : > { %5696 = vmatmul.mubr.f32.gmra.mrb[10].mxu1 %v744_v38  ;;  %869 = vmatprep.mubr.f32.mxu0 %v7584_v0 }
 0x237   : > { %6367 = vmatpush3.bf16.msra.mxu0 %v6364_v36  ;;  %5744 = vmatprep.mubr.msk.f32.mxu1 %vm1111_vm7, %v1008_v28  ;;  %v1216_v28 = vld [vmem:[#allocation4 + $0x5e0] sm:$0xff] }
 0x238   : > { %6369 = vmatprep.subr.bf16.mxu0 %v6368_v40 }
 0x239   : > { %870 = vmatmul.mubr.f32.gmra.mrb[20].mxu0 %v743_v37 }
 0x23a   : > { %875 = vmatprep.mubr.f32.mxu0 %v7584_v0 }
 0x23b   : > { %6371 = vmatpush3.bf16.msra.mxu0 %v6368_v40 }
 0x23c   : > { %6373 = vmatprep.subr.bf16.mxu0 %v6372_v44 }
 0x23d   : > { %876 = vmatmul.mubr.f32.gmra.mrb[22].mxu0 %v744_v38  ;;  %v967_v38 = vld [vmem:[#allocation4 + $0x360] ss:$0 sm:$0xff] }
 0x23f   : > { %6375 = vmatpush3.bf16.msra.mxu0 %v6372_v44 }
 0x240   : > { %6377 = vmatprep.subr.bf16.mxu0 %v6376_v46 }
 0x243   : > { %6379 = vmatpush3.bf16.msra.mxu0 %v6376_v46 }
 0x244   : > { %6381 = vmatprep.subr.bf16.mxu0 %v6380_v48 }
 0x247   : > { %6383 = vmatpush3.bf16.msra.mxu0 %v6380_v48 }
 0x248   : > { %6385 = vmatprep.subr.bf16.mxu0 %v6384_v52 }
 0x24b   : > { %6387 = vmatpush3.bf16.msra.mxu0 %v6384_v52  ;;  %v1194_v52 = vld [vmem:[#allocation4 + $0x530] sm:$0xff] }
 0x24c   : > { %6389 = vmatprep.subr.bf16.mxu0 %v6388_v56 }
 0x24f   : > { %6391 = vmatpush3.bf16.msra.mxu0 %v6388_v56 }
 0x304   : > { %v859_v57 = vpop.f32.mrb[16].mxu0 }
 0x305   : > { %v861_v58 = vpop.f32.mrb[17].mxu0  ;;  %v5694_v59 = vpop.f32.mrb[8].mxu1  ;;  %v968_v1 = vrot.slane %v859_v57, 7 }
 0x306   : > { %v981_v60 = vrot.slane %v5694_v59, 1  ;;  %v948_v61 = vpop.f32.mrb[9].mxu1  ;;  %v1193_v59 = vld [vmem:[#allocation4 + $0x528] sm:$0xff] }
 0x307   : > { %v980_v62 = vrot.slane %v948_v61, 1  ;;  %v1200_v61 = vld [vmem:[#allocation4 + $0x560] sm:$0xff] }
 0x308   : > { %v865_v63 = vpop.f32.mrb[18].mxu0 }
 0x309   : > { %v986_v2 = vsel %vm457_vm1, %v980_v62, %v981_v60  ;;  %v969_v3 = vrot.slane %v865_v63, 7  ;;  %v867_v4 = vpop.f32.mrb[19].mxu0  ;;  %v5697_v6 = vpop.f32.mrb[10].mxu1  ;;  %v1009_v63 = vld [vmem:[#allocation4 + $0x390] sm:$0xff] }
 0x30a   : > { %v983_v8 = vrot.slane %v5697_v6, 1  ;;  %v958_v9 = vpop.f32.mrb[11].mxu1  ;;  %v1206_v6 = vld [vmem:[#allocation4 + $0x590] sm:$0xff] }
 0x30b   : > { %v974_v10 = vsel %vm444_vm2, %v968_v1, %v969_v3  ;;  %v982_v11 = vrot.slane %v958_v9, 1 }
 0x30c   : > { %v993_v12 = vadd.f32 %v974_v10, %v867_v4  ;;  %v871_v13 = vpop.f32.mrb[20].mxu0  ;;  %v987_v14 = vsel %vm457_vm1, %v983_v8, %v980_v62  ;;  %v1203_v62 = vld [vmem:[#allocation4 + $0x578] sm:$0xff]  ;;  %v1202_v4 = vld [vmem:[#allocation4 + $0x570] sm:$0xff] }
 0x30d   : > { %v985_v15 = vsel %vm457_vm1, %v981_v60, %v982_v11  ;;  %v970_v16 = vrot.slane %v871_v13, 7  ;;  %v873_v17 = vpop.f32.mrb[21].mxu0  ;;  %v984_v18 = vsel %vm457_vm1, %v982_v11, %v983_v8  ;;  %v991_v37 = vsel %vm7786_vm5, %v987_v14, 0.0  ;;  %v1196_v60 = vld [vmem:[#allocation4 + $0x540] sm:$0xff]  ;;  %v1209_v8 = vld [vmem:[#allocation4 + $0x5a8] sm:$0xff]  ;;  %v1215_v14 = vld [vmem:[#allocation4 + $0x5d8] sm:$0xff] }
 0x30e   : > { %v989_v19 = vsel %vm7765_vm3, %v985_v15, 0.0  ;;  %v6408_v10 = vpack.c.bf16 %v1209_v8, %v1206_v6  ;;  %v1205_v11 = vld [vmem:[#allocation4 + $0x588] sm:$0xff]  ;;  %v1212_v13 = vld [vmem:[#allocation4 + $0x5c0] sm:$0xff]  ;;  %v1444_v8 = vld [vmem:[#allocation4 + $0x698] sm:$0xff] }
 0x30f   : > { %v997_v20 = vadd.f32 %v993_v12, %v989_v19  ;;  %v973_v21 = vsel %vm444_vm2, %v969_v3, %v970_v16  ;;  %v1199_v3 = vld [vmem:[#allocation4 + $0x558] sm:$0xff]  ;;  %v1208_v12 = vld [vmem:[#allocation4 + $0x5a0] sm:$0xff] }
 0x310   : > { %v978_v22 = vsel %vm7769_vm4, %v973_v21, 0.0  ;;  %v877_v23 = vpop.f32.mrb[22].mxu0  ;;  %v6406_v9 = vpack.c.bf16 %v1202_v4, %v1199_v3  ;;  %v6410_v15 = vpack.c.bf16 %v1208_v12, %v1205_v11  ;;  %v1198_v21 = vld [vmem:[#allocation4 + $0x550] sm:$0xff]  ;;  %v1442_v4 = vld [vmem:[#allocation4 + $0x688] sm:$0xff] }
 0x311   : > { %v994_v24 = vadd.f32 %v978_v22, %v873_v17  ;;  %v971_v25 = vrot.slane %v877_v23, 7  ;;  %v879_v26 = vpop.f32.mrb[23].mxu0  ;;  %v1001_v40 = vadd.f32 %v997_v20, %v967_v38  ;;  %v1211_v17 = vld [vmem:[#allocation4 + $0x5b8] sm:$0xff]  ;;  %v1426_v23 = vld [vmem:[#allocation4 + $0x608] sm:$0xff]  ;;  %v1443_v11 = vld [vmem:[#allocation4 + $0x690] sm:$0xff] }
 0x312   : > { %v1195_v20 = vld [vmem:[#allocation4 + $0x538] sm:$0xff]  ;;  %v1446_v12 = vld [vmem:[#allocation4 + $0x6a8] sm:$0xff] }
 0x313   : > { %v998_v27 = vadd.f32 %v994_v24, %v984_v18  ;;  %v975_v29 = vsel %vm444_vm2, %v971_v25, %v968_v1  ;;  %v972_v32 = vsel %vm444_vm2, %v970_v16, %v971_v25  ;;  %v7860_v42 = vmax.f32 %v1001_v40, 0.0  ;;  %v1214_v18 = vld [vmem:[#allocation4 + $0x5d0] sm:$0xff]  ;;  %v1429_v24 = vld [vmem:[#allocation4 + $0x620] sm:$0xff]  ;;  %v1207_v40 = vld [vmem:[#allocation4 + $0x598] sm:$0xff] }
 0x314   : > { %v976_v33 = vsel %vm7790_vm6, %v975_v29, 0.0  ;;  %v995_v35 = vadd.f32 %v972_v32, %v879_v26  ;;  %v6402_v1 = vpack.c.bf16 %v1196_v60, %v1193_v59  ;;  %v6412_v16 = vpack.c.bf16 %v1215_v14, %v1212_v13  ;;  %v1425_v25 = vld [vmem:[#allocation4 + $0x600] sm:$0xff]  ;;  %v1432_v32 = vld [vmem:[#allocation4 + $0x638] sm:$0xff]  ;;  %v1438_v60 = vld [vmem:[#allocation4 + $0x668] sm:$0xff] }
 0x315   : > { %v992_v36 = vadd.f32 %v976_v33, %v861_v58  ;;  %v1002_v43 = vadd.f32 %v998_v27, %v967_v38  ;;  %v6400_v58 = vpack.c.bf16 %v1197_v53, %v1194_v52  ;;  %v6414_v19 = vpack.c.bf16 %v1214_v18, %v1211_v17  ;;  %v1428_v27 = vld [vmem:[#allocation4 + $0x618] sm:$0xff]  ;;  %v1435_v33 = vld [vmem:[#allocation4 + $0x650] sm:$0xff]  ;;  %v1445_v13 = vld [vmem:[#allocation4 + $0x6a0] sm:$0xff] }
 0x316   : > { %v999_v39 = vadd.f32 %v995_v35, %v991_v37  ;;  %v6416_v22 = vpack.c.bf16 %v1198_v21, %v1195_v20  ;;  %v6432_v26 = vpack.c.bf16 %v1429_v24, %v1426_v23  ;;  %v6434_v29 = vpack.c.bf16 %v1428_v27, %v1425_v25  ;;  %v1204_v37 = vld [vmem:[#allocation4 + $0x580] sm:$0xff]  ;;  %v1431_v53 = vld [vmem:[#allocation4 + $0x630] sm:$0xff]  ;;  %v1450_v17 = vld [vmem:[#allocation4 + $0x6c8] sm:$0xff] }
 0x317   : > { %v996_v34 = vadd.f32 %v992_v36, %v986_v2  ;;  %v7863_v46 = vmax.f32 %v1002_v43, 0.0  ;;  %v6404_v2 = vpack.c.bf16 %v1203_v62, %v1200_v61  ;;  %v6436_v35 = vpack.c.bf16 %v1435_v33, %v1432_v32  ;;  %v1201_v36 = vld [vmem:[#allocation4 + $0x568] sm:$0xff]  ;;  %v1441_v61 = vld [vmem:[#allocation4 + $0x680] sm:$0xff]  ;;  %v1452_v21 = vld [vmem:[#allocation4 + $0x6d8] sm:$0xff] }
 0x318   : > { %v1003_v45 = vadd.f32 %v999_v39, %v967_v38  ;;  %6433 = vmatprep.subr.bf16.mxu0 %v6432_v26  ;;  %v6420_v39 = vpack.c.bf16 %v1204_v37, %v1201_v36  ;;  %v6440_v62 = vpack.c.bf16 %v1441_v61, %v1438_v60  ;;  %v6446_v14 = vpack.c.bf16 %v1446_v12, %v1443_v11  ;;  %v1453_v18 = vld [vmem:[#allocation4 + $0x6e0] sm:$0xff]  ;;  %v1454_v23 = vld [vmem:[#allocation4 + $0x6e8] sm:$0xff]  ;;  %v1456_v26 = vld [vmem:[#allocation4 + $0x6f8] sm:$0xff] }
 0x319   : > { %v1000_v41 = vadd.f32 %v996_v34, %v967_v38  ;;  %v6448_v20 = vpack.c.bf16 %v1453_v18, %v1450_v17  ;;  %v1459_v27 = vld [vmem:[#allocation4 + $0x710] sm:$0xff]  ;;  %v1458_v33 = vld [vmem:[#allocation4 + $0x708] sm:$0xff]  ;;  %v1460_v37 = vld [vmem:[#allocation4 + $0x718] sm:$0xff] }
 0x31a   : > { %v7867_v47 = vmax.f32 %v1003_v45, 0.0  ;;  %v1213_v45 = vld [vmem:[#allocation4 + $0x5c8] sm:$0xff]  ;;  %v1455_v32 = vld [vmem:[#allocation4 + $0x6f0] sm:$0xff]  ;;  %v1647_v61 = vld [vmem:[#allocation4 + $0x7a0] sm:$0xff] }
 0x31b   : > { %v7858_v44 = vmax.f32 %v1000_v41, 0.0  ;;  %v1210_v41 = vld [vmem:[#allocation4 + $0x5b0] sm:$0xff]  ;;  %v6454_v36 = vpack.c.bf16 %v1458_v33, %v1455_v32  ;;  %v1376_v32 = vld [vmem:[#allocation4 + $0x5e8] ss:$0 sm:$0xff] }
 0x31c   : > { %v6424_v43 = vpack.c.bf16 %v1210_v41, %v1207_v40  ;;  %v1461_v41 = vld [vmem:[#allocation4 + $0x720] sm:$0xff] }
 0x31d   : > { %5730 = vmatprep.mubr.f32.mxu0 %v7858_v44 }
 0x31e   : > { %5731 = vmatmul.mubr.f32.vlgmr.msra.gmra.mrb[24].mxu0 %v7860_v42 }
 0x31f   : > { %5733 = vmatprep.mubr.f32.mxu0 %v7863_v46  ;;  %6435 = vmatpush1.bf16.msra.mxu0 %v6434_v29  ;;  %v6452_v29 = vpack.c.bf16 %v1459_v27, %v1456_v26 }
 0x320   : > { %6437 = vmatprep.subr.bf16.mxu0 %v6436_v35  ;;  %v1457_v35 = vld [vmem:[#allocation4 + $0x700] sm:$0xff] }
 0x322   : > { %5734 = vmatmul.mubr.f32.gmra.mrb[26].mxu0 %v7867_v47 }
 0x323   : > { %1537 = vmatprep.mubr.f32.mxu0 %v7584_v0 }
 0x3f1   : > { %v5732_v48 = vpop.f32.mrb[24].mxu0 }
 0x3f2   : > { %v1092_v49 = vpop.f32.mrb[25].mxu0 }
 0x3f3   : > { %v6392_v50 = vpack.c.bf16 %v5732_v48, %v1092_v49  ;;  %v6428_v48 = vpack.c.bf16 %v1216_v28, %v1213_v45  ;;  %v1427_v49 = vld [vmem:[#allocation4 + $0x610] sm:$0xff] }
 0x3f4   : > { %v1463_v45 = vld [vmem:[#allocation4 + $0x730] sm:$0xff] }
 0x3f5   : > { %v5735_v54 = vpop.f32.mrb[26].mxu0  ;;  %6393 = vmatprep.subr.bf16.mxu1 %v6392_v50 }
 0x3f6   : > { %v1102_v56 = vpop.f32.mrb[27].mxu0  ;;  %6395 = vmatpush3.bf16.msra.mxu1 %v6392_v50  ;;  %v1430_v50 = vld [vmem:[#allocation4 + $0x628] sm:$0xff] }
 0x3f7   : > { %v6396_v57 = vpack.c.bf16 %v5735_v54, %v1102_v56  ;;  %v6464_v52 = vpack.c.bf16 %v1430_v50, %v1427_v49  ;;  %v1434_v54 = vld [vmem:[#allocation4 + $0x648] sm:$0xff]  ;;  %v1433_v56 = vld [vmem:[#allocation4 + $0x640] sm:$0xff]  ;;  %v1468_v50 = vld [vmem:[#allocation4 + $0x758] sm:$0xff] }
 0x3f9   : > { %6397 = vmatprep.subr.bf16.mxu1 %v6396_v57 }
 0x3fa   : > { %6399 = vmatpush3.bf16.msra.mxu1 %v6396_v57  ;;  %v6438_v57 = vpack.c.bf16 %v1434_v54, %v1431_v53  ;;  %v1467_v54 = vld [vmem:[#allocation4 + $0x750] sm:$0xff] }
 0x3fb   : > { %6401 = vmatprep.subr.bf16.mxu1 %v6400_v58  ;;  %v1436_v58 = vld [vmem:[#allocation4 + $0x658] sm:$0xff] }
 0x3fc   : > { %v6468_v59 = vpack.c.bf16 %v1436_v58, %v1433_v56  ;;  %6439 = vmatpush1.bf16.msra.mxu0 %v6438_v57  ;;  %v1470_v56 = vld [vmem:[#allocation4 + $0x768] sm:$0xff]  ;;  %v1469_v57 = vld [vmem:[#allocation4 + $0x760] sm:$0xff] }
 0x3fd   : > { %5745 = vmatmul.mubr.msk.f32.vlgmr.msra.gmra.mrb[12].mxu1 %vm1111_vm7, %v1009_v63  ;;  %v1437_v63 = vld [vmem:[#allocation4 + $0x660] sm:$0xff]  ;;  %6441 = vmatprep.subr.bf16.mxu0 %v6440_v62  ;;  %v6462_v58 = vpack.c.bf16 %v1470_v56, %v1467_v54  ;;  %v1650_v62 = vld [vmem:[#allocation4 + $0x7b8] sm:$0xff]  ;;  %vm2724_vm7 = vcmask 64512  }
 0x3fe   : > { %6403 = vmatpush1.bf16.msra.mxu1 %v6402_v1  ;;  %1288 = vmatprep.mubr.f32.mxu1 %v7584_v0  ;;  %v1440_v1 = vld [vmem:[#allocation4 + $0x678] sm:$0xff]  ;;  %v1655_v54 = vld [vmem:[#allocation4 + $0x7e0] sm:$0xff] }
 0x3ff   : > { %6405 = vmatprep.subr.bf16.mxu1 %v6404_v2  ;;  %v1439_v2 = vld [vmem:[#allocation4 + $0x670] sm:$0xff]  ;;  %v6442_v3 = vpack.c.bf16 %v1440_v1, %v1437_v63  ;;  %v6496_v63 = vpack.c.bf16 %v1650_v62, %v1647_v61  ;;  %v1648_v1 = vld [vmem:[#allocation4 + $0x7a8] sm:$0xff] }
 0x400   : > { %v6472_v6 = vpack.c.bf16 %v1442_v4, %v1439_v2  ;;  %v1651_v2 = vld [vmem:[#allocation4 + $0x7c0] sm:$0xff] }
 0x401   : > { %6443 = vmatpush1.bf16.msra.mxu0 %v6442_v3  ;;  %v6528_v3 = vpack.c.bf16 %v1651_v2, %v1648_v1  ;;  %v1661_v1 = vld [vmem:[#allocation4 + $0x810] sm:$0xff] }
 0x402   : > { %6407 = vmatpush1.bf16.msra.mxu1 %v6406_v9  ;;  %v1447_v9 = vld [vmem:[#allocation4 + $0x6b0] sm:$0xff] }
 0x403   : > { %6409 = vmatprep.subr.bf16.mxu1 %v6408_v10  ;;  %v6444_v10 = vpack.c.bf16 %v1447_v9, %v1444_v8  ;;  %v1381_v8 = vand.u32 7, %v7751_v30  ;;  %v1388_v9 = vand.u32 7, %v7754_v31 }
 0x405   : > { %6445 = vmatprep.subr.bf16.mxu0 %v6444_v10  ;;  %vm7881_vm9 = vcmp.ne.s32.totalorder %v1381_v8, 0  ;;  %vm7885_vm10 = vcmp.ne.s32.totalorder %v1388_v9, 0  ;;  %vm7897_vm11 = vcmp.ne.s32.totalorder %v1388_v9, 7  ;;  %vm7901_vm12 = vcmp.ne.s32.totalorder %v1381_v8, 7  ;;  %v1666_v8 = vld [vmem:[#allocation4 + $0x838] sm:$0xff]  ;;  %v1669_v9 = vld [vmem:[#allocation4 + $0x850] sm:$0xff] }
 0x406   : > { %6411 = vmatpush1.bf16.msra.mxu1 %v6410_v15  ;;  %v1448_v15 = vld [vmem:[#allocation4 + $0x6b8] sm:$0xff]  ;;  %6447 = vmatpush1.bf16.msra.mxu0 %v6446_v14 }
 0x407   : > { %6413 = vmatprep.subr.bf16.mxu1 %v6412_v16  ;;  %v6476_v16 = vpack.c.bf16 %v1448_v15, %v1445_v13  ;;  %6449 = vmatprep.subr.bf16.mxu0 %v6448_v20  ;;  %v4046_v15 = vld [vmem:[#allocation4 + $0x1db0] sm:$0xff] }
 0x40a   : > { %6415 = vmatpush1.bf16.msra.mxu1 %v6414_v19  ;;  %v1449_v19 = vld [vmem:[#allocation4 + $0x6c0] sm:$0xff] }
 0x40b   : > { %6417 = vmatprep.subr.bf16.mxu1 %v6416_v22  ;;  %v6450_v24 = vpack.c.bf16 %v1452_v21, %v1449_v19 }
 0x40d   : > { %6451 = vmatpush1.bf16.msra.mxu0 %v6450_v24  ;;  %v4052_v24 = vld [vmem:[#allocation4 + $0x1de0] sm:$0xff] }
 0x40e   : > { %6453 = vmatprep.subr.bf16.mxu0 %v6452_v29 }
 0x411   : > { %6455 = vmatpush1.bf16.msra.mxu0 %v6454_v36 }
 0x4d0   : > { %v5746_v38 = vpop.f32.mrb[12].mxu1 }
 0x4d1   : > { %v1184_v34 = vpop.f32.mrb[13].mxu1 }
 0x4d2   : > { %5198 = vmatmul.mubr.msk.f32.vlgmr.msra.gmra.mrb[14].mxu1 %vm1217_vm8, %v1184_v34 }
 0x4d3   : > { %6419 = vmatpush3.bf16.msra.mxu1 %v6416_v22  ;;  %1294 = vmatprep.mubr.f32.mxu1 %v7584_v0  ;;  %v1451_v22 = vld [vmem:[#allocation4 + $0x6d0] sm:$0xff] }
 0x4d4   : > { %6421 = vmatprep.subr.bf16.mxu1 %v6420_v39  ;;  %v6480_v25 = vpack.c.bf16 %v1454_v23, %v1451_v22 }
 0x4d6   : > { %5199 = vmatmul.mubr.msk.f32.gmra.mrb[16].mxu1 %vm1217_vm8, %v5746_v38 }
 0x4d7   : > { %6423 = vmatpush3.bf16.msra.mxu1 %v6420_v39  ;;  %5763 = vmatprep.mubr.msk.f32.mxu1 %vm1217_vm8, %v1184_v34  ;;  %v1462_v39 = vld [vmem:[#allocation4 + $0x728] sm:$0xff]  ;;  %v1465_v34 = vld [vmem:[#allocation4 + $0x740] sm:$0xff] }
 0x4d8   : > { %6425 = vmatprep.subr.bf16.mxu1 %v6424_v43  ;;  %v6456_v40 = vpack.c.bf16 %v1465_v34, %v1462_v39  ;;  %v1649_v39 = vld [vmem:[#allocation4 + $0x7b0] sm:$0xff] }
 0x4d9   : > { %v1653_v34 = vld [vmem:[#allocation4 + $0x7d0] sm:$0xff] }
 0x4da   : > { %6457 = vmatprep.subr.bf16.mxu0 %v6456_v40 }
 0x4db   : > { %6427 = vmatpush3.bf16.msra.mxu1 %v6424_v43  ;;  %v1464_v43 = vld [vmem:[#allocation4 + $0x738] sm:$0xff] }
 0x4dc   : > { %6429 = vmatprep.subr.bf16.mxu1 %v6428_v48  ;;  %v6458_v28 = vpack.c.bf16 %v1464_v43, %v1461_v41  ;;  %v1656_v43 = vld [vmem:[#allocation4 + $0x7e8] sm:$0xff] }
 0x4de   : > { %6459 = vmatpush1.bf16.msra.mxu0 %v6458_v28  ;;  %v1657_v28 = vld [vmem:[#allocation4 + $0x7f0] sm:$0xff] }
 0x4df   : > { %6431 = vmatpush3.bf16.msra.mxu1 %v6428_v48  ;;  %v1466_v48 = vld [vmem:[#allocation4 + $0x748] sm:$0xff] }
 0x4e0   : > { %6465 = vmatprep.subr.bf16.mxu1 %v6464_v52  ;;  %v6488_v49 = vpack.c.bf16 %v1466_v48, %v1463_v45  ;;  %v1654_v45 = vld [vmem:[#allocation4 + $0x7d8] sm:$0xff] }
 0x4e1   : > { %v6532_v56 = vpack.c.bf16 %v1657_v28, %v1654_v45  ;;  %v1685_v45 = vld [vmem:[#allocation4 + $0x8d0] sm:$0xff]  ;;  %v1684_v28 = vld [vmem:[#allocation4 + $0x8c8] sm:$0xff] }
 0x4e2   : > { %5764 = vmatmul.mubr.msk.f32.vlgmr.msra.gmra.mrb[18].mxu1 %vm1217_vm8, %v5746_v38  ;;  %v6484_v38 = vpack.c.bf16 %v1460_v37, %v1457_v35 }
 0x4e3   : > { %6467 = vmatpush3.bf16.msra.mxu1 %v6464_v52  ;;  %v1471_v52 = vld [vmem:[#allocation4 + $0x770] sm:$0xff] }
 0x4e4   : > { %6469 = vmatprep.subr.bf16.mxu1 %v6468_v59  ;;  %v6460_v53 = vpack.c.bf16 %v1471_v52, %v1468_v50  ;;  %v6500_v52 = vpack.c.bf16 %v1656_v43, %v1653_v34  ;;  %v1683_v34 = vld [vmem:[#allocation4 + $0x8c0] sm:$0xff]  ;;  %v1682_v43 = vld [vmem:[#allocation4 + $0x8b8] sm:$0xff] }
 0x4e6   : > { %6461 = vmatprep.subr.bf16.mxu0 %v6460_v53  ;;  %v1652_v53 = vld [vmem:[#allocation4 + $0x7c8] sm:$0xff] }
 0x4e7   : > { %6471 = vmatpush3.bf16.msra.mxu1 %v6468_v59  ;;  %v1472_v59 = vld [vmem:[#allocation4 + $0x778] sm:$0xff]  ;;  %6463 = vmatpush1.bf16.msra.mxu0 %v6462_v58  ;;  %v6502_v61 = vpack.c.bf16 %v1655_v54, %v1652_v53  ;;  %v1692_v53 = vld [vmem:[#allocation4 + $0x908] sm:$0xff] }
 0x4e8   : > { %6473 = vmatprep.subr.bf16.mxu1 %v6472_v6  ;;  %v6492_v60 = vpack.c.bf16 %v1472_v59, %v1469_v57  ;;  %6497 = vmatprep.subr.bf16.mxu0 %v6496_v63  ;;  %v1659_v57 = vld [vmem:[#allocation4 + $0x800] sm:$0xff]  ;;  %v1662_v58 = vld [vmem:[#allocation4 + $0x818] sm:$0xff]  ;;  %v1660_v59 = vld [vmem:[#allocation4 + $0x808] sm:$0xff] }
 0x4e9   : > { %v6504_v62 = vpack.c.bf16 %v1662_v58, %v1659_v57  ;;  %v1658_v63 = vld [vmem:[#allocation4 + $0x7f8] sm:$0xff]  ;;  %v1691_v57 = vld [vmem:[#allocation4 + $0x900] sm:$0xff] }
 0x4ea   : > { %v1690_v58 = vld [vmem:[#allocation4 + $0x8f8] sm:$0xff] }
 0x4eb   : > { %6475 = vmatpush3.bf16.msra.mxu1 %v6472_v6 }
 0x4ec   : > { %6477 = vmatprep.subr.bf16.mxu1 %v6476_v16 }
 0x4ef   : > { %6479 = vmatpush3.bf16.msra.mxu1 %v6476_v16 }
 0x4f0   : > { %6481 = vmatprep.subr.bf16.mxu1 %v6480_v25 }
 0x4f3   : > { %6483 = vmatpush3.bf16.msra.mxu1 %v6480_v25 }
 0x4f4   : > { %6485 = vmatprep.subr.bf16.mxu1 %v6484_v38 }
 0x4f7   : > { %6487 = vmatpush3.bf16.msra.mxu1 %v6484_v38  ;;  %v1646_v38 = vld [vmem:[#allocation4 + $0x798] sm:$0xff] }
 0x4f8   : > { %6489 = vmatprep.subr.bf16.mxu1 %v6488_v49  ;;  %v6498_v50 = vpack.c.bf16 %v1649_v39, %v1646_v38  ;;  %v1681_v38 = vld [vmem:[#allocation4 + $0x8b0] sm:$0xff] }
 0x4fb   : > { %6491 = vmatpush3.bf16.msra.mxu1 %v6488_v49 }
 0x4fc   : > { %6493 = vmatprep.subr.bf16.mxu1 %v6492_v60 }
 0x4ff   : > { %6495 = vmatpush3.bf16.msra.mxu1 %v6492_v60  ;;  %v1663_v60 = vld [vmem:[#allocation4 + $0x820] sm:$0xff] }
 0x500   : > { %6529 = vmatprep.subr.bf16.mxu1 %v6528_v3  ;;  %v6536_v2 = vpack.c.bf16 %v1663_v60, %v1660_v59  ;;  %v1693_v60 = vld [vmem:[#allocation4 + $0x910] sm:$0xff] }
 0x5a5   : > { %v1290_v4 = vpop.f32.mrb[14].mxu1 }
 0x5a6   : > { %v1292_v6 = vpop.f32.mrb[15].mxu1  ;;  %v1405_v11 = vrot.slane %v1290_v4, 7  ;;  %v1665_v4 = vld [vmem:[#allocation4 + $0x830] sm:$0xff] }
 0x5a9   : > { %v1296_v10 = vpop.f32.mrb[16].mxu1 }
 0x5aa   : > { %v1406_v13 = vrot.slane %v1296_v10, 7  ;;  %v1298_v14 = vpop.f32.mrb[17].mxu1  ;;  %v6506_v10 = vpack.c.bf16 %v1661_v1, %v1658_v63  ;;  %v1869_v63 = vld [vmem:[#allocation4 + $0x960] sm:$0xff] }
 0x5ac   : > { %v1408_v16 = vsel %vm444_vm2, %v1406_v13, %v1405_v11  ;;  %v1407_v17 = vsel %vm444_vm2, %v1405_v11, %v1406_v13  ;;  %v1664_v11 = vld [vmem:[#allocation4 + $0x828] sm:$0xff]  ;;  %v1667_v13 = vld [vmem:[#allocation4 + $0x840] sm:$0xff] }
 0x5ad   : > { %v1409_v31 = vsel %vm7881_vm9, %v1408_v16, 0.0  ;;  %v1410_v18 = vsel %vm7885_vm10, %v1407_v17, 0.0  ;;  %v6510_v16 = vpack.c.bf16 %v1667_v13, %v1664_v11  ;;  %v1671_v17 = vld [vmem:[#allocation4 + $0x860] sm:$0xff] }
 0x5ae   : > { %v1417_v19 = vadd.f32 %v1409_v31, %v1292_v6  ;;  %v1418_v20 = vadd.f32 %v1410_v18, %v1298_v14  ;;  %v1668_v6 = vld [vmem:[#allocation4 + $0x848] sm:$0xff]  ;;  %v6540_v14 = vpack.c.bf16 %v1669_v9, %v1666_v8  ;;  %v1674_v31 = vld [vmem:[#allocation4 + $0x878] sm:$0xff] }
 0x5af   : > { %v6512_v18 = vpack.c.bf16 %v1674_v31, %v1671_v17 }
 0x5b5   : > { %v5765_v21 = vpop.f32.mrb[18].mxu1 }
 0x5b6   : > { %v1412_v22 = vrot.slane %v5765_v21, 1  ;;  %v1367_v23 = vpop.f32.mrb[19].mxu1  ;;  %v1672_v21 = vld [vmem:[#allocation4 + $0x868] sm:$0xff] }
 0x5b7   : > { %v1411_v26 = vrot.slane %v1367_v23, 1  ;;  %v1675_v23 = vld [vmem:[#allocation4 + $0x880] sm:$0xff] }
 0x5b9   : > { %v1413_v27 = vsel %vm457_vm1, %v1411_v26, %v1412_v22  ;;  %v1414_v29 = vsel %vm457_vm1, %v1412_v22, %v1411_v26  ;;  %v6544_v26 = vpack.c.bf16 %v1675_v23, %v1672_v21 }
 0x5ba   : > { %v1415_v33 = vsel %vm7901_vm12, %v1413_v27, 0.0  ;;  %v1416_v35 = vsel %vm7897_vm11, %v1414_v29, 0.0  ;;  %v1677_v27 = vld [vmem:[#allocation4 + $0x890] sm:$0xff]  ;;  %v1680_v29 = vld [vmem:[#allocation4 + $0x8a8] sm:$0xff] }
 0x5bb   : > { %v1419_v36 = vadd.f32 %v1417_v19, %v1415_v33  ;;  %v1420_v37 = vadd.f32 %v1418_v20, %v1416_v35  ;;  %v1670_v19 = vld [vmem:[#allocation4 + $0x858] sm:$0xff]  ;;  %v1673_v20 = vld [vmem:[#allocation4 + $0x870] sm:$0xff]  ;;  %v1676_v33 = vld [vmem:[#allocation4 + $0x888] sm:$0xff] }
 0x5bc   : > { %v6514_v22 = vpack.c.bf16 %v1673_v20, %v1670_v19  ;;  %v1679_v35 = vld [vmem:[#allocation4 + $0x8a0] sm:$0xff] }
 0x5bd   : > { %v1421_v40 = vadd.f32 %v1419_v36, %v1376_v32  ;;  %v1422_v41 = vadd.f32 %v1420_v37, %v1376_v32  ;;  %v6516_v32 = vpack.c.bf16 %v1680_v29, %v1677_v27  ;;  %v1678_v36 = vld [vmem:[#allocation4 + $0x898] sm:$0xff]  ;;  %v6518_v37 = vpack.c.bf16 %v1679_v35, %v1676_v33 }
 0x5be   : > { %v6548_v39 = vpack.c.bf16 %v1681_v38, %v1678_v36  ;;  %v1870_v36 = vld [vmem:[#allocation4 + $0x978] sm:$0xff] }
 0x5bf   : > { %v1423_v48 = vmax.f32 %v1421_v40, 0.0  ;;  %v1424_v49 = vmax.f32 %v1422_v41, 0.0  ;;  %v1686_v40 = vld [vmem:[#allocation4 + $0x8d8] sm:$0xff] }
 0x5c0   : > { %v6520_v41 = vpack.c.bf16 %v1686_v40, %v1683_v34  ;;  %v1872_v40 = vld [vmem:[#allocation4 + $0x9a8] sm:$0xff] }
 0x5c1   : > { %1538 = vmatmul.mubr.f32.vlgmr.msra.gmra.mrb[28].mxu0 %v1423_v48  ;;  %5798 = vmatprep.mubr.f32.mxu1 %v1423_v48  ;;  %v6522_v48 = vpack.c.bf16 %v1685_v45, %v1682_v43  ;;  %v1874_v45 = vld [vmem:[#allocation4 + $0x9d8] sm:$0xff] }
 0x5c2   : > { %5799 = vmatmul.mubr.f32.vlgmr.msra.gmra.mrb[20].mxu1 %v1424_v49  ;;  %1543 = vmatprep.mubr.f32.mxu0 %v7584_v0 }
 0x5c3   : > { %6499 = vmatpush1.bf16.msra.mxu0 %v6498_v50  ;;  %6531 = vmatpush3.bf16.msra.mxu1 %v6528_v3  ;;  %v6508_v3 = vpack.c.bf16 %v1668_v6, %v1665_v4 }
 0x5c4   : > { %6501 = vmatprep.subr.bf16.mxu0 %v6500_v52  ;;  %6533 = vmatprep.subr.bf16.mxu1 %v6532_v56  ;;  %v1689_v52 = vld [vmem:[#allocation4 + $0x8f0] sm:$0xff] }
 0x5c5   : > { %1544 = vmatmul.mubr.f32.gmra.mrb[30].mxu0 %v1424_v49  ;;  %v1687_v49 = vld [vmem:[#allocation4 + $0x8e0] sm:$0xff]  ;;  %v6524_v54 = vpack.c.bf16 %v1692_v53, %v1689_v52  ;;  %v1878_v53 = vld [vmem:[#allocation4 + $0xa38] sm:$0xff] }
 0x5c6   : > { %1758 = vmatprep.mubr.f32.mxu0 %v7584_v0  ;;  %v6552_v50 = vpack.c.bf16 %v1687_v49, %v1684_v28  ;;  %v1875_v28 = vld [vmem:[#allocation4 + $0x9f0] sm:$0xff]  ;;  %v1876_v49 = vld [vmem:[#allocation4 + $0xa08] sm:$0xff] }
 0x5c7   : > { %6503 = vmatpush1.bf16.msra.mxu0 %v6502_v61  ;;  %6535 = vmatpush3.bf16.msra.mxu1 %v6532_v56  ;;  %v1688_v56 = vld [vmem:[#allocation4 + $0x8e8] sm:$0xff]  ;;  %v6556_v61 = vpack.c.bf16 %v1693_v60, %v1690_v58  ;;  %v1881_v58 = vld [vmem:[#allocation4 + $0xa80] sm:$0xff]  ;;  %v1882_v60 = vld [vmem:[#allocation4 + $0xa98] sm:$0xff] }
 0x5c8   : > { %6505 = vmatprep.subr.bf16.mxu0 %v6504_v62  ;;  %6537 = vmatprep.subr.bf16.mxu1 %v6536_v2  ;;  %v6526_v59 = vpack.c.bf16 %v1691_v57, %v1688_v56  ;;  %v1868_v62 = vld [vmem:[#allocation4 + $0x948] sm:$0xff] }
 0x5c9   : > { %v6560_v1 = vpack.c.bf16 %v1869_v63, %v1868_v62  ;;  %v1880_v57 = vld [vmem:[#allocation4 + $0xa68] sm:$0xff] }
 0x5cb   : > { %6507 = vmatpush1.bf16.msra.mxu0 %v6506_v10  ;;  %6539 = vmatpush3.bf16.msra.mxu1 %v6536_v2 }
 0x5cc   : > { %6509 = vmatprep.subr.bf16.mxu0 %v6508_v3  ;;  %6541 = vmatprep.subr.bf16.mxu1 %v6540_v14 }
 0x5cf   : > { %6511 = vmatpush1.bf16.msra.mxu0 %v6510_v16  ;;  %6543 = vmatpush3.bf16.msra.mxu1 %v6540_v14 }
 0x5d0   : > { %6513 = vmatprep.subr.bf16.mxu0 %v6512_v18  ;;  %6545 = vmatprep.subr.bf16.mxu1 %v6544_v26 }
 0x5d3   : > { %6515 = vmatpush1.bf16.msra.mxu0 %v6514_v22  ;;  %6547 = vmatpush3.bf16.msra.mxu1 %v6544_v26  ;;  %v1625_v26 = vld [vmem:[#allocation4 + $0x780] ss:$0 sm:$0xff] }
 0x5d4   : > { %6517 = vmatprep.subr.bf16.mxu0 %v6516_v32  ;;  %6549 = vmatprep.subr.bf16.mxu1 %v6548_v39 }
 0x5d7   : > { %6519 = vmatpush1.bf16.msra.mxu0 %v6518_v37  ;;  %6551 = vmatpush3.bf16.msra.mxu1 %v6548_v39  ;;  %v1871_v37 = vld [vmem:[#allocation4 + $0x990] sm:$0xff] }
 0x5d8   : > { %6521 = vmatprep.subr.bf16.mxu0 %v6520_v41  ;;  %6553 = vmatprep.subr.bf16.mxu1 %v6552_v50  ;;  %v6564_v34 = vpack.c.bf16 %v1871_v37, %v1870_v36  ;;  %v1873_v41 = vld [vmem:[#allocation4 + $0x9c0] sm:$0xff]  ;;  %v7585_v36 = vmov 0.0|0.0   ;;  %v2033_v37 = vld [vmem:[#allocation4 + $0xad0] sm:$0xff] }
 0x5d9   : > { %v6568_v43 = vpack.c.bf16 %v1873_v41, %v1872_v40  ;;  %v2032_v41 = vld [vmem:[#allocation4 + $0xac8] sm:$0xff] }
 0x5db   : > { %6523 = vmatpush1.bf16.msra.mxu0 %v6522_v48  ;;  %6555 = vmatpush3.bf16.msra.mxu1 %v6552_v50  ;;  %v6572_v48 = vpack.c.bf16 %v1875_v28, %v1874_v45  ;;  %v1877_v50 = vld [vmem:[#allocation4 + $0xa20] sm:$0xff] }
 0x5dc   : > { %6525 = vmatprep.subr.bf16.mxu0 %v6524_v54  ;;  %6557 = vmatprep.subr.bf16.mxu1 %v6556_v61  ;;  %v6576_v52 = vpack.c.bf16 %v1877_v50, %v1876_v49  ;;  %v1879_v54 = vld [vmem:[#allocation4 + $0xa50] sm:$0xff]  ;;  %v2039_v28 = vld [vmem:[#allocation4 + $0xb00] sm:$0xff] }
 0x5dd   : > { %v6580_v56 = vpack.c.bf16 %v1879_v54, %v1878_v53  ;;  %v1867_v49 = vld [vmem:[#allocation4 + $0x930] sm:$0xff]  ;;  %v2038_v53 = vld [vmem:[#allocation4 + $0xaf8] sm:$0xff] }
 0x5de   : > { %v2041_v54 = vld [vmem:[#allocation4 + $0xb10] sm:$0xff] }
 0x5df   : > { %6527 = vmatpush1.bf16.msra.mxu0 %v6526_v59  ;;  %6559 = vmatpush3.bf16.msra.mxu1 %v6556_v61  ;;  %v6584_v59 = vpack.c.bf16 %v1881_v58, %v1880_v57  ;;  %v1883_v61 = vld [vmem:[#allocation4 + $0xab0] sm:$0xff]  ;;  %v2048_v57 = vld [vmem:[#allocation4 + $0xb48] sm:$0xff]  ;;  %v6601_v58 = vpack.c.bf16 %v2041_v54, %v2038_v53  ;;  %v2239_v54 = vld [vmem:[#allocation4 + $0xc20] sm:$0xff] }
 0x5e0   : > { %6561 = vmatprep.subr.bf16.mxu0 %v6560_v1  ;;  %v6588_v62 = vpack.c.bf16 %v1883_v61, %v1882_v60  ;;  %6592 = vmatprep.subr.bf16.mxu1 %v7585_v36  ;;  %v2044_v60 = vld [vmem:[#allocation4 + $0xb28] sm:$0xff]  ;;  %v2047_v61 = vld [vmem:[#allocation4 + $0xb40] sm:$0xff] }
 0x5e1   : > { %v2236_v53 = vld [vmem:[#allocation4 + $0xc08] sm:$0xff] }
 0x694   : > { %v1539_v2 = vpop.f32.mrb[28].mxu0 }
 0x695   : > { %v1541_v4 = vpop.f32.mrb[29].mxu0  ;;  %v5800_v6 = vpop.f32.mrb[20].mxu1  ;;  %v1626_v11 = vrot.slane %v1539_v2, 7 }
 0x696   : > { %v1633_v8 = vrot.slane %v5800_v6, 1  ;;  %v1616_v9 = vpop.f32.mrb[21].mxu1 }
 0x697   : > { %v1632_v10 = vrot.slane %v1616_v9, 1 }
 0x698   : > { %v1545_v3 = vpop.f32.mrb[30].mxu0 }
 0x699   : > { %v1634_v13 = vsel %vm457_vm1, %v1632_v10, %v1633_v8  ;;  %v1627_v14 = vrot.slane %v1545_v3, 7  ;;  %v1547_v16 = vpop.f32.mrb[31].mxu0  ;;  %v1635_v17 = vsel %vm457_vm1, %v1633_v8, %v1632_v10 }
 0x69a   : > { %v1636_v23 = vsel %vm7901_vm12, %v1634_v13, 0.0  ;;  %v1637_v27 = vsel %vm7897_vm11, %v1635_v17, 0.0 }
 0x69b   : > { %v1629_v31 = vsel %vm444_vm2, %v1627_v14, %v1626_v11  ;;  %v1628_v18 = vsel %vm444_vm2, %v1626_v11, %v1627_v14 }
 0x69c   : > { %v1630_v19 = vsel %vm7881_vm9, %v1629_v31, 0.0  ;;  %v1631_v20 = vsel %vm7885_vm10, %v1628_v18, 0.0 }
 0x69d   : > { %v1638_v21 = vadd.f32 %v1630_v19, %v1541_v4  ;;  %v1639_v22 = vadd.f32 %v1631_v20, %v1547_v16 }
 0x69f   : > { %v1640_v29 = vadd.f32 %v1638_v21, %v1636_v23  ;;  %v1641_v32 = vadd.f32 %v1639_v22, %v1637_v27  ;;  %v1846_v22 = vld [vmem:[#allocation4 + $0x918] ss:$0 sm:$0xff] }
 0x6a1   : > { %v1642_v33 = vadd.f32 %v1640_v29, %v1625_v26  ;;  %v1643_v35 = vadd.f32 %v1641_v32, %v1625_v26 }
 0x6a3   : > { %v1644_v38 = vmax.f32 %v1642_v33, 0.0  ;;  %v1645_v39 = vmax.f32 %v1643_v35, 0.0 }
 0x6a5   : > { %1759 = vmatmul.mubr.f32.vlgmr.msra.gmra.mrb[32].mxu0 %v1644_v38  ;;  %5833 = vmatprep.mubr.f32.mxu1 %v1644_v38  ;;  %v2036_v38 = vld [vmem:[#allocation4 + $0xae8] sm:$0xff] }
 0x6a6   : > { %5834 = vmatmul.mubr.f32.vlgmr.msra.gmra.mrb[22].mxu1 %v1645_v39  ;;  %1764 = vmatprep.mubr.f32.mxu0 %v7584_v0  ;;  %v6595_v40 = vpack.c.bf16 %v2036_v38, %v2033_v37  ;;  %v2046_v38 = vld [vmem:[#allocation4 + $0xb38] sm:$0xff] }
 0x6a7   : > { %6563 = vmatpush3.bf16.msra.mxu0 %v6560_v1  ;;  %5875 = vmatprep.mubr.msk.f32.mxu1 %vm7586_vm13, %v7584_v0 }
 0x6a8   : > { %6565 = vmatprep.subr.bf16.mxu0 %v6564_v34 }
 0x6a9   : > { %1765 = vmatmul.mubr.f32.gmra.mrb[34].mxu0 %v1645_v39 }
 0x6ab   : > { %6567 = vmatpush3.bf16.msra.mxu0 %v6564_v34 }
 0x6ac   : > { %6569 = vmatprep.subr.bf16.mxu0 %v6568_v43 }
 0x6af   : > { %6571 = vmatpush3.bf16.msra.mxu0 %v6568_v43  ;;  %v2035_v43 = vld [vmem:[#allocation4 + $0xae0] sm:$0xff] }
 0x6b0   : > { %6573 = vmatprep.subr.bf16.mxu0 %v6572_v48  ;;  %v6597_v50 = vpack.c.bf16 %v2035_v43, %v2032_v41  ;;  %v2055_v41 = vld [vmem:[#allocation4 + $0xb80] sm:$0xff] }
 0x6b3   : > { %6575 = vmatpush3.bf16.msra.mxu0 %v6572_v48  ;;  %v2042_v48 = vld [vmem:[#allocation4 + $0xb18] sm:$0xff] }
 0x6b4   : > { %6577 = vmatprep.subr.bf16.mxu0 %v6576_v52 }
 0x6b7   : > { %6579 = vmatpush3.bf16.msra.mxu0 %v6576_v52  ;;  %v6599_v52 = vpack.c.bf16 %v2042_v48, %v2039_v28  ;;  %v2228_v28 = vld [vmem:[#allocation4 + $0xbc8] sm:$0xff] }
 0x6b8   : > { %6581 = vmatprep.subr.bf16.mxu0 %v6580_v56 }
 0x6bb   : > { %6583 = vmatpush3.bf16.msra.mxu0 %v6580_v56  ;;  %v2045_v56 = vld [vmem:[#allocation4 + $0xb30] sm:$0xff] }
 0x6bc   : > { %6585 = vmatprep.subr.bf16.mxu0 %v6584_v59 }
 0x6bf   : > { %6587 = vmatpush3.bf16.msra.mxu0 %v6584_v59  ;;  %v6603_v59 = vpack.c.bf16 %v2048_v57, %v2045_v56  ;;  %v6631_v56 = vpack.c.bf16 %v2239_v54, %v2236_v53  ;;  %v2235_v57 = vld [vmem:[#allocation4 + $0xc00] sm:$0xff]  ;;  %v2265_v54 = vld [vmem:[#allocation4 + $0xcf0] sm:$0xff] }
 0x6c0   : > { %6589 = vmatprep.subr.bf16.mxu0 %v6588_v62 }
 0x6c3   : > { %6591 = vmatpush3.bf16.msra.mxu0 %v6588_v62  ;;  %v2051_v62 = vld [vmem:[#allocation4 + $0xb60] sm:$0xff] }
 0x778   : > { %v1760_v63 = vpop.f32.mrb[32].mxu0 }
 0x779   : > { %v1762_v1 = vpop.f32.mrb[33].mxu0  ;;  %v5835_v2 = vpop.f32.mrb[22].mxu1  ;;  %v1847_v10 = vrot.slane %v1760_v63, 7  ;;  %v2054_v63 = vld [vmem:[#allocation4 + $0xb78] sm:$0xff] }
 0x77a   : > { %v1854_v4 = vrot.slane %v5835_v2, 1  ;;  %v1837_v6 = vpop.f32.mrb[23].mxu1  ;;  %v6607_v2 = vpack.c.bf16 %v2054_v63, %v2051_v62  ;;  %v2242_v63 = vld [vmem:[#allocation4 + $0xc38] sm:$0xff] }
 0x77b   : > { %v1853_v8 = vrot.slane %v1837_v6, 1  ;;  %v2053_v6 = vld [vmem:[#allocation4 + $0xb70] sm:$0xff] }
 0x77c   : > { %v1766_v9 = vpop.f32.mrb[34].mxu0 }
 0x77d   : > { %v1855_v3 = vsel %vm457_vm1, %v1853_v8, %v1854_v4  ;;  %v1848_v11 = vrot.slane %v1766_v9, 7  ;;  %v1768_v13 = vpop.f32.mrb[35].mxu0  ;;  %v1856_v14 = vsel %vm457_vm1, %v1854_v4, %v1853_v8  ;;  %v2050_v4 = vld [vmem:[#allocation4 + $0xb58] sm:$0xff]  ;;  %v2224_v9 = vld [vmem:[#allocation4 + $0xba8] sm:$0xff] }
 0x77e   : > { %v1857_v21 = vsel %vm7901_vm12, %v1855_v3, 0.0  ;;  %v1858_v23 = vsel %vm7897_vm11, %v1856_v14, 0.0  ;;  %v6609_v8 = vpack.c.bf16 %v2053_v6, %v2050_v4  ;;  %v2223_v3 = vld [vmem:[#allocation4 + $0xba0] sm:$0xff]  ;;  %v2241_v4 = vld [vmem:[#allocation4 + $0xc30] sm:$0xff]  ;;  %v2244_v6 = vld [vmem:[#allocation4 + $0xc48] sm:$0xff] }
 0x77f   : > { %v1850_v16 = vsel %vm444_vm2, %v1848_v11, %v1847_v10  ;;  %v1849_v17 = vsel %vm444_vm2, %v1847_v10, %v1848_v11  ;;  %v2227_v10 = vld [vmem:[#allocation4 + $0xbc0] sm:$0xff] }
 0x780   : > { %v1851_v31 = vsel %vm7881_vm9, %v1850_v16, 0.0  ;;  %v1852_v18 = vsel %vm7885_vm10, %v1849_v17, 0.0  ;;  %v6623_v11 = vpack.c.bf16 %v2227_v10, %v2224_v9  ;;  %v2230_v16 = vld [vmem:[#allocation4 + $0xbd8] sm:$0xff]  ;;  %v2233_v17 = vld [vmem:[#allocation4 + $0xbf0] sm:$0xff]  ;;  %v6637_v9 = vpack.c.bf16 %v2244_v6, %v2241_v4 }
 0x781   : > { %v1859_v19 = vadd.f32 %v1851_v31, %v1762_v1  ;;  %v1860_v20 = vadd.f32 %v1852_v18, %v1768_v13  ;;  %v6605_v1 = vpack.c.bf16 %v2047_v61, %v2044_v60  ;;  %v2226_v13 = vld [vmem:[#allocation4 + $0xbb8] sm:$0xff]  ;;  %v2229_v31 = vld [vmem:[#allocation4 + $0xbd0] sm:$0xff]  ;;  %v6627_v18 = vpack.c.bf16 %v2233_v17, %v2230_v16  ;;  %v2240_v61 = vld [vmem:[#allocation4 + $0xc28] sm:$0xff] }
 0x782   : > { %v6625_v14 = vpack.c.bf16 %v2226_v13, %v2223_v3  ;;  %6624 = vmatprep.subr.bf16.mxu0 %v6623_v11  ;;  %v2246_v10 = vld [vmem:[#allocation4 + $0xc58] sm:$0xff]  ;;  %v2248_v3 = vld [vmem:[#allocation4 + $0xc68] sm:$0xff]  ;;  %v2251_v11 = vld [vmem:[#allocation4 + $0xc80] sm:$0xff] }
 0x783   : > { %v1862_v26 = vadd.f32 %v1860_v20, %v1858_v23  ;;  %v1861_v27 = vadd.f32 %v1859_v19, %v1857_v21  ;;  %v2232_v19 = vld [vmem:[#allocation4 + $0xbe8] sm:$0xff]  ;;  %v2034_v21 = vld [vmem:[#allocation4 + $0xad8] sm:$0xff]  ;;  %v2247_v16 = vld [vmem:[#allocation4 + $0xc60] sm:$0xff] }
 0x784   : > { %v6629_v20 = vpack.c.bf16 %v2232_v19, %v2229_v31  ;;  %v2250_v17 = vld [vmem:[#allocation4 + $0xc78] sm:$0xff]  ;;  %v2249_v31 = vld [vmem:[#allocation4 + $0xc70] sm:$0xff]  ;;  %v2252_v19 = vld [vmem:[#allocation4 + $0xc88] sm:$0xff] }
 0x785   : > { %v1864_v29 = vadd.f32 %v1862_v26, %v1846_v22  ;;  %v1863_v32 = vadd.f32 %v1861_v27, %v1846_v22  ;;  %v2037_v22 = vld [vmem:[#allocation4 + $0xaf0] sm:$0xff]  ;;  %v2040_v26 = vld [vmem:[#allocation4 + $0xb08] sm:$0xff]  ;;  %v2043_v27 = vld [vmem:[#allocation4 + $0xb20] sm:$0xff] }
 0x786   : > { %v6612_v23 = vpack.c.bf16 %v2037_v22, %v2034_v21  ;;  %v6615_v37 = vpack.c.bf16 %v2043_v27, %v2040_v26  ;;  %v2257_v21 = vld [vmem:[#allocation4 + $0xcb0] sm:$0xff]  ;;  %v6668_v22 = vpack.c.bf16 %v2252_v19, %v2249_v31  ;;  %v2256_v27 = vld [vmem:[#allocation4 + $0xca8] sm:$0xff]  ;;  %v2421_v31 = vld [vmem:[#allocation4 + $0xd38] sm:$0xff] }
 0x787   : > { %v7948_v33 = vmax.f32 %v1864_v29, 0.0  ;;  %v7950_v35 = vmax.f32 %v1863_v32, 0.0  ;;  %v2253_v26 = vld [vmem:[#allocation4 + $0xc90] sm:$0xff] }
 0x788   : > { %v2424_v19 = vld [vmem:[#allocation4 + $0xd50] sm:$0xff] }
 0x789   : > { %5868 = vmatprep.mubr.f32.mxu0 %v7950_v35 }
 0x78a   : > { %5869 = vmatmul.mubr.f32.vlgmr.msra.gmra.mrb[36].mxu0 %v7948_v33 }
 0x78b   : > { %2335 = vmatprep.mubr.f32.mxu0 %v7584_v0  ;;  %6626 = vmatpush1.bf16.msra.mxu0 %v6625_v14  ;;  %v6639_v14 = vpack.c.bf16 %v2251_v11, %v2248_v3 }
 0x78c   : > { %6628 = vmatprep.subr.bf16.mxu0 %v6627_v18  ;;  %v6641_v18 = vpack.c.bf16 %v2250_v17, %v2247_v16  ;;  %v2200_v16 = vld [vmem:[#allocation4 + $0xb88] ss:$0 sm:$0xff] }
 0x78f   : > { %6630 = vmatpush1.bf16.msra.mxu0 %v6629_v20  ;;  %v2254_v20 = vld [vmem:[#allocation4 + $0xc98] sm:$0xff] }
 0x790   : > { %6632 = vmatprep.subr.bf16.mxu0 %v6631_v56  ;;  %v2268_v56 = vld [vmem:[#allocation4 + $0xd08] sm:$0xff] }
 0x85d   : > { %v5870_v39 = vpop.f32.mrb[36].mxu0 }
 0x85e   : > { %v1950_v34 = vpop.f32.mrb[37].mxu0 }
 0x85f   : > { %v6593_v45 = vpack.c.bf16 %v5870_v39, %v1950_v34  ;;  %v2049_v39 = vld [vmem:[#allocation4 + $0xb50] sm:$0xff] }
 0x860   : > { %v6618_v34 = vpack.c.bf16 %v2049_v39, %v2046_v38  ;;  %v2260_v39 = vld [vmem:[#allocation4 + $0xcc8] sm:$0xff] }
 0x861   : > { %6594 = vmatpush3.bf16.msra.mxu1 %v6593_v45  ;;  %v2225_v45 = vld [vmem:[#allocation4 + $0xbb0] sm:$0xff] }
 0x862   : > { %6596 = vmatprep.subr.bf16.mxu1 %v6595_v40  ;;  %v2052_v40 = vld [vmem:[#allocation4 + $0xb68] sm:$0xff]  ;;  %v6656_v48 = vpack.c.bf16 %v2228_v28, %v2225_v45  ;;  %v2261_v28 = vld [vmem:[#allocation4 + $0xcd0] sm:$0xff] }
 0x863   : > { %v6621_v43 = vpack.c.bf16 %v2055_v41, %v2052_v40  ;;  %v2259_v41 = vld [vmem:[#allocation4 + $0xcc0] sm:$0xff] }
 0x864   : > { %5876 = vmatmul.mubr.msk.f32.vlgmr.msra.gmra.mrb[24].mxu1 %vm191_vm0, %v1867_v49  ;;  %v2231_v49 = vld [vmem:[#allocation4 + $0xbe0] sm:$0xff] }
 0x865   : > { %6598 = vmatpush1.bf16.msra.mxu1 %v6597_v50  ;;  %2123 = vmatprep.mubr.f32.mxu1 %v7584_v0  ;;  %v2234_v50 = vld [vmem:[#allocation4 + $0xbf8] sm:$0xff] }
 0x866   : > { %6600 = vmatprep.subr.bf16.mxu1 %v6599_v52  ;;  %v6659_v52 = vpack.c.bf16 %v2234_v50, %v2231_v49  ;;  %v2266_v50 = vld [vmem:[#allocation4 + $0xcf8] sm:$0xff] }
 0x869   : > { %6602 = vmatpush1.bf16.msra.mxu1 %v6601_v58  ;;  %v2238_v58 = vld [vmem:[#allocation4 + $0xc18] sm:$0xff] }
 0x86a   : > { %6604 = vmatprep.subr.bf16.mxu1 %v6603_v59  ;;  %v2237_v59 = vld [vmem:[#allocation4 + $0xc10] sm:$0xff]  ;;  %v6633_v60 = vpack.c.bf16 %v2238_v58, %v2235_v57  ;;  %v2267_v57 = vld [vmem:[#allocation4 + $0xd00] sm:$0xff]  ;;  %v6653_v58 = vpack.c.bf16 %v2268_v56, %v2265_v54  ;;  %v2443_v56 = vld [vmem:[#allocation4 + $0xde8] sm:$0xff] }
 0x86b   : > { %v6662_v62 = vpack.c.bf16 %v2240_v61, %v2237_v59  ;;  %v2270_v59 = vld [vmem:[#allocation4 + $0xd18] sm:$0xff]  ;;  %v2422_v61 = vld [vmem:[#allocation4 + $0xd40] sm:$0xff]  ;;  %v2440_v54 = vld [vmem:[#allocation4 + $0xdd0] sm:$0xff] }
 0x86c   : > { %6634 = vmatpush1.bf16.msra.mxu0 %v6633_v60  ;;  %v6677_v60 = vpack.c.bf16 %v2270_v59, %v2267_v57  ;;  %v2439_v59 = vld [vmem:[#allocation4 + $0xdc8] sm:$0xff] }
 0x86d   : > { %6606 = vmatpush1.bf16.msra.mxu1 %v6605_v1  ;;  %v2245_v1 = vld [vmem:[#allocation4 + $0xc50] sm:$0xff] }
 0x86e   : > { %6608 = vmatprep.subr.bf16.mxu1 %v6607_v2  ;;  %v6635_v2 = vpack.c.bf16 %v2245_v1, %v2242_v63  ;;  %v2205_v1 = vand.u32 3, %v7751_v30 }
 0x870   : > { %6636 = vmatprep.subr.bf16.mxu0 %v6635_v2  ;;  %vm7980_vm14 = vcmp.ne.s32.totalorder %v2205_v1, 0  ;;  %vm7986_vm15 = vcmp.ne.s32.totalorder %v2205_v1, 3  ;;  %v2446_v1 = vld [vmem:[#allocation4 + $0xe00] sm:$0xff] }
 0x871   : > { %6610 = vmatpush1.bf16.msra.mxu1 %v6609_v8  ;;  %v2243_v8 = vld [vmem:[#allocation4 + $0xc40] sm:$0xff]  ;;  %6638 = vmatpush1.bf16.msra.mxu0 %v6637_v9 }
 0x872   : > { %6611 = vmatprep.subr.bf16.mxu1 %v7585_v36  ;;  %v6665_v13 = vpack.c.bf16 %v2246_v10, %v2243_v8  ;;  %6640 = vmatprep.subr.bf16.mxu0 %v6639_v14 }
 0x875   : > { %6642 = vmatpush1.bf16.msra.mxu0 %v6641_v18 }
 0x937   : > { %v2028_v29 = vpop.f32.mrb[24].mxu1 }
 0x938   : > { %v5877_v32 = vpop.f32.mrb[25].mxu1  ;;  %5203 = vmatmul.mubr.msk.f32.vlgmr.msra.gmra.mrb[26].mxu1 %vm1217_vm8, %v2028_v29 }
 0x939   : > { %6613 = vmatpush3.bf16.msra.mxu1 %v6612_v23  ;;  %5894 = vmatprep.mubr.msk.f32.mxu1 %vm7586_vm13, %v7584_v0  ;;  %v6643_v23 = vpack.c.bf16 %v2257_v21, %v2254_v20  ;;  %v2258_v32 = vld [vmem:[#allocation4 + $0xcb8] sm:$0xff]  ;;  %v2423_v20 = vld [vmem:[#allocation4 + $0xd48] sm:$0xff]  ;;  %v2426_v21 = vld [vmem:[#allocation4 + $0xd60] sm:$0xff] }
 0x93a   : > { %6614 = vmatprep.subr.bf16.mxu1 %v7585_v36 }
 0x93b   : > { %6644 = vmatprep.subr.bf16.mxu0 %v6643_v23  ;;  %v2431_v23 = vld [vmem:[#allocation4 + $0xd88] sm:$0xff] }
 0x93d   : > { %6616 = vmatpush3.bf16.msra.mxu1 %v6615_v37  ;;  %v6645_v37 = vpack.c.bf16 %v2256_v27, %v2253_v26  ;;  %v6681_v27 = vpack.c.bf16 %v2424_v19, %v2421_v31  ;;  %v2452_v31 = vld [vmem:[#allocation4 + $0xe30] sm:$0xff] }
 0x93e   : > { %6617 = vmatprep.subr.bf16.mxu1 %v7585_v36 }
 0x93f   : > { %6646 = vmatpush1.bf16.msra.mxu0 %v6645_v37 }
 0x941   : > { %6619 = vmatpush3.bf16.msra.mxu1 %v6618_v34  ;;  %v2263_v34 = vld [vmem:[#allocation4 + $0xce0] sm:$0xff] }
 0x942   : > { %6620 = vmatprep.subr.bf16.mxu1 %v7585_v36  ;;  %v6647_v40 = vpack.c.bf16 %v2263_v34, %v2260_v39  ;;  %v2430_v39 = vld [vmem:[#allocation4 + $0xd80] sm:$0xff]  ;;  %v2429_v34 = vld [vmem:[#allocation4 + $0xd78] sm:$0xff] }
 0x944   : > { %6648 = vmatprep.subr.bf16.mxu0 %v6647_v40  ;;  %v2432_v40 = vld [vmem:[#allocation4 + $0xd90] sm:$0xff] }
 0x945   : > { %6622 = vmatpush3.bf16.msra.mxu1 %v6621_v43  ;;  %v2262_v43 = vld [vmem:[#allocation4 + $0xcd8] sm:$0xff] }
 0x946   : > { %6655 = vmatprep.subr.bf16.mxu1 %v7585_v36  ;;  %v6649_v45 = vpack.c.bf16 %v2262_v43, %v2259_v41  ;;  %v2434_v41 = vld [vmem:[#allocation4 + $0xda0] sm:$0xff]  ;;  %v2437_v43 = vld [vmem:[#allocation4 + $0xdb8] sm:$0xff] }
 0x948   : > { %5895 = vmatmul.mubr.msk.f32.vlgmr.msra.gmra.mrb[28].mxu1 %vm1217_vm8, %v2028_v29  ;;  %v2255_v29 = vld [vmem:[#allocation4 + $0xca0] sm:$0xff]  ;;  %6650 = vmatpush1.bf16.msra.mxu0 %v6649_v45 }
 0x949   : > { %6657 = vmatpush3.bf16.msra.mxu1 %v6656_v48  ;;  %5929 = vmatprep.mubr.msk.f32.mxu1 %vm7586_vm13, %v7584_v0  ;;  %v6671_v38 = vpack.c.bf16 %v2258_v32, %v2255_v29  ;;  %v2264_v48 = vld [vmem:[#allocation4 + $0xce8] sm:$0xff]  ;;  %v6712_v29 = vpack.c.bf16 %v2426_v21, %v2423_v20  ;;  %v2454_v21 = vld [vmem:[#allocation4 + $0xe40] sm:$0xff] }
 0x94a   : > { %6658 = vmatprep.subr.bf16.mxu1 %v7585_v36  ;;  %v6674_v49 = vpack.c.bf16 %v2264_v48, %v2261_v28  ;;  %v2427_v32 = vld [vmem:[#allocation4 + $0xd68] sm:$0xff]  ;;  %v6715_v28 = vpack.c.bf16 %v2432_v40, %v2429_v34  ;;  %v2433_v48 = vld [vmem:[#allocation4 + $0xd98] sm:$0xff] }
 0x94b   : > { %v6685_v45 = vpack.c.bf16 %v2430_v39, %v2427_v32  ;;  %v2451_v20 = vld [vmem:[#allocation4 + $0xe28] sm:$0xff]  ;;  %v2461_v32 = vld [vmem:[#allocation4 + $0xe78] sm:$0xff]  ;;  %v2460_v39 = vld [vmem:[#allocation4 + $0xe70] sm:$0xff] }
 0x94c   : > { %v2459_v34 = vld [vmem:[#allocation4 + $0xe68] sm:$0xff] }
 0x94d   : > { %6660 = vmatpush3.bf16.msra.mxu1 %v6659_v52  ;;  %v2269_v52 = vld [vmem:[#allocation4 + $0xd10] sm:$0xff] }
 0x94e   : > { %6661 = vmatprep.subr.bf16.mxu1 %v7585_v36  ;;  %v6651_v53 = vpack.c.bf16 %v2269_v52, %v2266_v50  ;;  %v2436_v50 = vld [vmem:[#allocation4 + $0xdb0] sm:$0xff]  ;;  %v2435_v52 = vld [vmem:[#allocation4 + $0xda8] sm:$0xff] }
 0x94f   : > { %v6689_v57 = vpack.c.bf16 %v2436_v50, %v2433_v48  ;;  %v2466_v50 = vld [vmem:[#allocation4 + $0xea0] sm:$0xff] }
 0x950   : > { %6652 = vmatprep.subr.bf16.mxu0 %v6651_v53  ;;  %v2438_v53 = vld [vmem:[#allocation4 + $0xdc0] sm:$0xff] }
 0x951   : > { %6663 = vmatpush3.bf16.msra.mxu1 %v6662_v62  ;;  %6654 = vmatpush1.bf16.msra.mxu0 %v6653_v58  ;;  %v2425_v62 = vld [vmem:[#allocation4 + $0xd58] sm:$0xff]  ;;  %v6718_v58 = vpack.c.bf16 %v2438_v53, %v2435_v52 }
 0x952   : > { %6664 = vmatprep.subr.bf16.mxu1 %v7585_v36  ;;  %v6679_v63 = vpack.c.bf16 %v2425_v62, %v2422_v61  ;;  %v2442_v61 = vld [vmem:[#allocation4 + $0xde0] sm:$0xff]  ;;  %v2441_v62 = vld [vmem:[#allocation4 + $0xdd8] sm:$0xff] }
 0x953   : > { %v2465_v52 = vld [vmem:[#allocation4 + $0xe98] sm:$0xff] }
 0x954   : > { %6680 = vmatprep.subr.bf16.mxu0 %v6679_v63  ;;  %v2444_v63 = vld [vmem:[#allocation4 + $0xdf0] sm:$0xff] }
 0x955   : > { %6666 = vmatpush3.bf16.msra.mxu1 %v6665_v13 }
 0x956   : > { %6667 = vmatprep.subr.bf16.mxu1 %v7585_v36 }
 0x959   : > { %6669 = vmatpush3.bf16.msra.mxu1 %v6668_v22  ;;  %v2428_v22 = vld [vmem:[#allocation4 + $0xd70] sm:$0xff] }
 0x95a   : > { %6670 = vmatprep.subr.bf16.mxu1 %v7585_v36 }
 0x95d   : > { %6672 = vmatpush3.bf16.msra.mxu1 %v6671_v38  ;;  %v6683_v38 = vpack.c.bf16 %v2431_v23, %v2428_v22  ;;  %v2453_v22 = vld [vmem:[#allocation4 + $0xe38] sm:$0xff]  ;;  %v6701_v23 = vpack.c.bf16 %v2454_v21, %v2451_v20  ;;  %v2625_v20 = vld [vmem:[#allocation4 + $0xf30] sm:$0xff]  ;;  %v2627_v21 = vld [vmem:[#allocation4 + $0xf48] sm:$0xff] }
 0x95e   : > { %6673 = vmatprep.subr.bf16.mxu1 %v7585_v36 }
 0x961   : > { %6675 = vmatpush3.bf16.msra.mxu1 %v6674_v49  ;;  %v6687_v49 = vpack.c.bf16 %v2437_v43, %v2434_v41  ;;  %v2462_v41 = vld [vmem:[#allocation4 + $0xe80] sm:$0xff] }
 0x962   : > { %6676 = vmatprep.subr.bf16.mxu1 %v7585_v36  ;;  %v6730_v43 = vpack.c.bf16 %v2462_v41, %v2459_v34  ;;  %v2635_v41 = vld [vmem:[#allocation4 + $0xfa8] sm:$0xff] }
 0x965   : > { %6678 = vmatpush3.bf16.msra.mxu1 %v6677_v60  ;;  %v6691_v60 = vpack.c.bf16 %v2443_v56, %v2440_v54  ;;  %v2468_v54 = vld [vmem:[#allocation4 + $0xeb0] sm:$0xff] }
 0x966   : > { %6711 = vmatprep.subr.bf16.mxu1 %v7585_v36  ;;  %v6733_v56 = vpack.c.bf16 %v2468_v54, %v2465_v52  ;;  %v2642_v52 = vld [vmem:[#allocation4 + $0xff8] sm:$0xff] }
 0xa0b   : > { %v2125_v2 = vpop.f32.mrb[26].mxu1 }
 0xa0c   : > { %v2215_v6 = vrot.slane %v2125_v2, 7  ;;  %v2127_v8 = vpop.f32.mrb[27].mxu1  ;;  %v2449_v2 = vld [vmem:[#allocation4 + $0xe18] sm:$0xff] }
 0xa0e   : > { %v2216_v9 = vsel %vm7980_vm14, %v2215_v6, 0.0  ;;  %v6693_v6 = vpack.c.bf16 %v2442_v61, %v2439_v59 }
 0xa0f   : > { %v2219_v10 = vadd.f32 %v2216_v9, %v2127_v8  ;;  %v6721_v8 = vpack.c.bf16 %v2444_v63, %v2441_v62  ;;  %v2445_v9 = vld [vmem:[#allocation4 + $0xdf8] sm:$0xff] }
 0xa1b   : > { %v2196_v3 = vpop.f32.mrb[28].mxu1 }
 0xa1c   : > { %v2217_v13 = vrot.slane %v2196_v3, 1  ;;  %v5896_v14 = vpop.f32.mrb[29].mxu1  ;;  %v2448_v3 = vld [vmem:[#allocation4 + $0xe10] sm:$0xff] }
 0xa1d   : > { %v2450_v14 = vld [vmem:[#allocation4 + $0xe20] sm:$0xff] }
 0xa1e   : > { %v2218_v17 = vsel %vm7986_vm15, %v2217_v13, 0.0  ;;  %v2447_v13 = vld [vmem:[#allocation4 + $0xe08] sm:$0xff] }
 0xa1f   : > { %v2220_v18 = vadd.f32 %v2219_v10, %v2218_v17  ;;  %v6695_v10 = vpack.c.bf16 %v2449_v2, %v2446_v1  ;;  %v6724_v17 = vpack.c.bf16 %v2450_v14, %v2447_v13  ;;  %v2623_v13 = vld [vmem:[#allocation4 + $0xf18] sm:$0xff] }
 0xa20   : > { %v2626_v14 = vld [vmem:[#allocation4 + $0xf38] sm:$0xff] }
 0xa21   : > { %v2221_v26 = vadd.f32 %v2220_v18, %v2200_v16  ;;  %v6697_v16 = vpack.c.bf16 %v2448_v3, %v2445_v9  ;;  %v2455_v18 = vld [vmem:[#allocation4 + $0xe48] sm:$0xff]  ;;  %v2412_v9 = vld [vmem:[#allocation4 + $0xd20] ss:$0 sm:$0xff] }
 0xa22   : > { %v6699_v19 = vpack.c.bf16 %v2455_v18, %v2452_v31  ;;  %v2621_v3 = vld [vmem:[#allocation4 + $0xf00] sm:$0xff] }
 0xa23   : > { %v2222_v37 = vmax.f32 %v2221_v26, 0.0  ;;  %v2456_v26 = vld [vmem:[#allocation4 + $0xe50] sm:$0xff]  ;;  %v6737_v31 = vpack.c.bf16 %v2623_v13, %v2621_v3 }
 0xa24   : > { %v2906_v13 = vld [vmem:[#allocation4 + $0x1390] sm:$0xff] }
 0xa25   : > { %2336 = vmatmul.mubr.f32.vlgmr.msra.gmra.mrb[38].mxu0 %v2222_v37  ;;  %5930 = vmatmul.mubr.f32.vlgmr.msra.gmra.mrb[30].mxu1 %v2222_v37 }
 0xa26   : > { %6682 = vmatpush1.bf16.msra.mxu0 %v6681_v27  ;;  %6713 = vmatpush3.bf16.msra.mxu1 %v6712_v29  ;;  %v6727_v27 = vpack.c.bf16 %v2456_v26, %v2453_v22  ;;  %v2458_v29 = vld [vmem:[#allocation4 + $0xe60] sm:$0xff]  ;;  %v2630_v22 = vld [vmem:[#allocation4 + $0xf68] sm:$0xff]  ;;  %v6741_v26 = vpack.c.bf16 %v2627_v21, %v2625_v20 }
 0xa27   : > { %6684 = vmatprep.subr.bf16.mxu0 %v6683_v38  ;;  %6714 = vmatprep.subr.bf16.mxu1 %v7585_v36  ;;  %v6703_v37 = vpack.c.bf16 %v2461_v32, %v2458_v29  ;;  %v2457_v38 = vld [vmem:[#allocation4 + $0xe58] sm:$0xff]  ;;  %v2629_v29 = vld [vmem:[#allocation4 + $0xf60] sm:$0xff] }
 0xa28   : > { %2533 = vmatprep.mubr.f32.mxu0 %v7584_v0  ;;  %5964 = vmatprep.mubr.msk.f32.mxu1 %vm7586_vm13, %v7584_v0  ;;  %v6705_v40 = vpack.c.bf16 %v2460_v39, %v2457_v38  ;;  %v2631_v32 = vld [vmem:[#allocation4 + $0xf78] sm:$0xff]  ;;  %v2636_v38 = vld [vmem:[#allocation4 + $0xfb0] sm:$0xff] }
 0xa29   : > { %v6745_v39 = vpack.c.bf16 %v2631_v32, %v2629_v29  ;;  %v2912_v32 = vld [vmem:[#allocation4 + $0x13c0] sm:$0xff] }
 0xa2a   : > { %6686 = vmatpush1.bf16.msra.mxu0 %v6685_v45  ;;  %6716 = vmatpush3.bf16.msra.mxu1 %v6715_v28  ;;  %v2464_v45 = vld [vmem:[#allocation4 + $0xe90] sm:$0xff]  ;;  %v2467_v28 = vld [vmem:[#allocation4 + $0xea8] sm:$0xff] }
 0xa2b   : > { %6688 = vmatprep.subr.bf16.mxu0 %v6687_v49  ;;  %6717 = vmatprep.subr.bf16.mxu1 %v7585_v36  ;;  %v6707_v48 = vpack.c.bf16 %v2467_v28, %v2464_v45  ;;  %v2463_v49 = vld [vmem:[#allocation4 + $0xe88] sm:$0xff]  ;;  %v2640_v45 = vld [vmem:[#allocation4 + $0xfe0] sm:$0xff] }
 0xa2c   : > { %v6709_v53 = vpack.c.bf16 %v2466_v50, %v2463_v49  ;;  %v2637_v49 = vld [vmem:[#allocation4 + $0xfc0] sm:$0xff]  ;;  %v2639_v50 = vld [vmem:[#allocation4 + $0xfd8] sm:$0xff] }
 0xa2d   : > { %v6753_v54 = vpack.c.bf16 %v2639_v50, %v2637_v49  ;;  %v2936_v50 = vld [vmem:[#allocation4 + $0x1480] sm:$0xff] }
 0xa2e   : > { %6690 = vmatpush1.bf16.msra.mxu0 %v6689_v57  ;;  %6719 = vmatpush3.bf16.msra.mxu1 %v6718_v58  ;;  %v2622_v57 = vld [vmem:[#allocation4 + $0xf08] sm:$0xff]  ;;  %v2624_v58 = vld [vmem:[#allocation4 + $0xf20] sm:$0xff] }
 0xa2f   : > { %6692 = vmatprep.subr.bf16.mxu0 %v6691_v60  ;;  %6720 = vmatprep.subr.bf16.mxu1 %v7585_v36  ;;  %v6735_v59 = vpack.c.bf16 %v2624_v58, %v2622_v57  ;;  %v2641_v57 = vld [vmem:[#allocation4 + $0xff0] sm:$0xff]  ;;  %v2643_v58 = vld [vmem:[#allocation4 + $0x1008] sm:$0xff] }
 0xa32   : > { %6694 = vmatpush1.bf16.msra.mxu0 %v6693_v6  ;;  %6722 = vmatpush3.bf16.msra.mxu1 %v6721_v8 }
 0xa33   : > { %6696 = vmatprep.subr.bf16.mxu0 %v6695_v10  ;;  %6723 = vmatprep.subr.bf16.mxu1 %v7585_v36 }
 0xa36   : > { %6698 = vmatpush1.bf16.msra.mxu0 %v6697_v16  ;;  %6725 = vmatpush3.bf16.msra.mxu1 %v6724_v17  ;;  %v2628_v16 = vld [vmem:[#allocation4 + $0xf50] sm:$0xff] }
 0xa37   : > { %6726 = vmatprep.subr.bf16.mxu1 %v7585_v36  ;;  %6700 = vmatprep.subr.bf16.mxu0 %v6699_v19  ;;  %v6739_v19 = vpack.c.bf16 %v2628_v16, %v2626_v14  ;;  %v2909_v14 = vld [vmem:[#allocation4 + $0x13a8] sm:$0xff] }
 0xa38   : > { %v6799_v16 = vpack.c.bf16 %v2909_v14, %v2906_v13  ;;  %v2870_v14 = vld [vmem:[#allocation4 + $0x1270] sm:$0xff] }
 0xa3a   : > { %6702 = vmatpush1.bf16.msra.mxu0 %v6701_v23  ;;  %6728 = vmatpush3.bf16.msra.mxu1 %v6727_v27  ;;  %v2632_v23 = vld [vmem:[#allocation4 + $0xf80] sm:$0xff] }
 0xa3b   : > { %6729 = vmatprep.subr.bf16.mxu1 %v7585_v36  ;;  %6704 = vmatprep.subr.bf16.mxu0 %v6703_v37  ;;  %v6743_v27 = vpack.c.bf16 %v2632_v23, %v2630_v22  ;;  %v2634_v37 = vld [vmem:[#allocation4 + $0xf98] sm:$0xff] }
 0xa3c   : > { %v6747_v34 = vpack.c.bf16 %v2636_v38, %v2634_v37  ;;  %v2915_v37 = vld [vmem:[#allocation4 + $0x13d8] sm:$0xff] }
 0xa3e   : > { %6706 = vmatpush1.bf16.msra.mxu0 %v6705_v40  ;;  %6731 = vmatpush3.bf16.msra.mxu1 %v6730_v43  ;;  %v2633_v40 = vld [vmem:[#allocation4 + $0xf90] sm:$0xff]  ;;  %v2638_v43 = vld [vmem:[#allocation4 + $0xfc8] sm:$0xff] }
 0xa3f   : > { %6732 = vmatprep.subr.bf16.mxu1 %v7585_v36  ;;  %6708 = vmatprep.subr.bf16.mxu0 %v6707_v48  ;;  %v6749_v28 = vpack.c.bf16 %v2635_v41, %v2633_v40  ;;  %v6751_v48 = vpack.c.bf16 %v2640_v45, %v2638_v43  ;;  %v2918_v40 = vld [vmem:[#allocation4 + $0x13f0] sm:$0xff]  ;;  %v2921_v41 = vld [vmem:[#allocation4 + $0x1408] sm:$0xff]  ;;  %v2924_v43 = vld [vmem:[#allocation4 + $0x1420] sm:$0xff] }
 0xa40   : > { %v6807_v4 = vpack.c.bf16 %v2921_v41, %v2918_v40  ;;  %v2927_v45 = vld [vmem:[#allocation4 + $0x1438] sm:$0xff]  ;;  %v2888_v40 = vld [vmem:[#allocation4 + $0x1300] sm:$0xff] }
 0xa41   : > { %v6811_v11 = vpack.c.bf16 %v2927_v45, %v2924_v43  ;;  %v2891_v41 = vld [vmem:[#allocation4 + $0x1318] sm:$0xff]  ;;  %v2840_v43 = vld [vmem:[#allocation4 + $0x1180] sm:$0xff] }
 0xa42   : > { %6710 = vmatpush1.bf16.msra.mxu0 %v6709_v53  ;;  %6734 = vmatpush3.bf16.msra.mxu1 %v6733_v56  ;;  %v2644_v53 = vld [vmem:[#allocation4 + $0x1010] sm:$0xff]  ;;  %v2843_v45 = vld [vmem:[#allocation4 + $0x1198] sm:$0xff] }
 0xa43   : > { %6736 = vmatprep.subr.bf16.mxu0 %v6735_v59  ;;  %v6755_v56 = vpack.c.bf16 %v2644_v53, %v2642_v52  ;;  %v6757_v59 = vpack.c.bf16 %v2643_v58, %v2641_v57  ;;  %v2939_v52 = vld [vmem:[#allocation4 + $0x1498] sm:$0xff]  ;;  %v2948_v58 = vld [vmem:[#allocation4 + $0x14e0] sm:$0xff] }
 0xa44   : > { %v6819_v53 = vpack.c.bf16 %v2939_v52, %v2936_v50  ;;  %v2846_v50 = vld [vmem:[#allocation4 + $0x11b0] sm:$0xff]  ;;  %v2849_v52 = vld [vmem:[#allocation4 + $0x11c8] sm:$0xff] }
 0xaf8   : > { %v2337_v60 = vpop.f32.mrb[38].mxu0  ;;  %v2408_v61 = vpop.f32.mrb[30].mxu1 }
 0xaf9   : > { %v2413_v62 = vrot.slane %v2337_v60, 7  ;;  %v2415_v63 = vrot.slane %v2408_v61, 1  ;;  %v2339_v1 = vpop.f32.mrb[39].mxu0  ;;  %v5931_v2 = vpop.f32.mrb[31].mxu1  ;;  %v2646_v60 = vld [vmem:[#allocation4 + $0x1028] sm:$0xff]  ;;  %v2648_v61 = vld [vmem:[#allocation4 + $0x1040] sm:$0xff] }
 0xafb   : > { %v2414_v6 = vsel %vm7980_vm14, %v2413_v62, 0.0  ;;  %v2416_v8 = vsel %vm7986_vm15, %v2415_v63, 0.0  ;;  %v6759_v62 = vpack.c.bf16 %v2648_v61, %v2646_v60  ;;  %v2645_v63 = vld [vmem:[#allocation4 + $0x1020] sm:$0xff]  ;;  %v2858_v61 = vld [vmem:[#allocation4 + $0x1210] sm:$0xff] }
 0xafc   : > { %v2417_v36 = vadd.f32 %v2414_v6, %v2339_v1  ;;  %v2647_v1 = vld [vmem:[#allocation4 + $0x1038] sm:$0xff] }
 0xafd   : > { %v6761_v2 = vpack.c.bf16 %v2647_v1, %v2645_v63  ;;  %v2650_v6 = vld [vmem:[#allocation4 + $0x1058] sm:$0xff]  ;;  %v2810_v1 = vld [vmem:[#allocation4 + $0x1090] sm:$0xff] }
 0xafe   : > { %v2418_v10 = vadd.f32 %v2417_v36, %v2416_v8  ;;  %v2652_v36 = vld [vmem:[#allocation4 + $0x1070] sm:$0xff] }
 0xaff   : > { %v6763_v8 = vpack.c.bf16 %v2652_v36, %v2650_v6  ;;  %v2864_v36 = vld [vmem:[#allocation4 + $0x1240] sm:$0xff] }
 0xb00   : > { %v2419_v17 = vadd.f32 %v2418_v10, %v2412_v9  ;;  %v2649_v9 = vld [vmem:[#allocation4 + $0x1050] sm:$0xff]  ;;  %v2651_v10 = vld [vmem:[#allocation4 + $0x1068] sm:$0xff] }
 0xb01   : > { %v6765_v3 = vpack.c.bf16 %v2651_v10, %v2649_v9  ;;  %v2816_v10 = vld [vmem:[#allocation4 + $0x10c0] sm:$0xff] }
 0xb02   : > { %v2420_v18 = vmax.f32 %v2419_v17, 0.0 }
 0xb04   : > { %2534 = vmatmul.mubr.f32.vlgmr.msra.gmra.mrb[40].mxu0 %v2420_v18  ;;  %5965 = vmatmul.mubr.f32.vlgmr.msra.gmra.mrb[32].mxu1 %v2420_v18 }
 0xb05   : > { %6738 = vmatpush1.bf16.msra.mxu0 %v6737_v31  ;;  %2717 = vmatprep.mubr.f32.mxu0 %v7584_v0 }
 0xb06   : > { %6740 = vmatprep.subr.bf16.mxu0 %v6739_v19  ;;  %2795 = vmatprep.mubr.f32.mxu1 %v7584_v0 }
 0xb09   : > { %6742 = vmatpush1.bf16.msra.mxu0 %v6741_v26 }
 0xb0a   : > { %6744 = vmatprep.subr.bf16.mxu0 %v6743_v27  ;;  %v2610_v27 = vld [vmem:[#allocation4 + $0xeb8] ss:$0 sm:$0xff] }
 0xb0d   : > { %6746 = vmatpush1.bf16.msra.mxu0 %v6745_v39 }
 0xb0e   : > { %6748 = vmatprep.subr.bf16.mxu0 %v6747_v34  ;;  %v6803_v34 = vpack.c.bf16 %v2915_v37, %v2912_v32  ;;  %v2885_v32 = vld [vmem:[#allocation4 + $0x12e8] sm:$0xff] }
 0xb11   : > { %6750 = vmatpush1.bf16.msra.mxu0 %v6749_v28  ;;  %v2930_v28 = vld [vmem:[#allocation4 + $0x1450] sm:$0xff] }
 0xb12   : > { %6752 = vmatprep.subr.bf16.mxu0 %v6751_v48  ;;  %v2933_v48 = vld [vmem:[#allocation4 + $0x1468] sm:$0xff] }
 0xb13   : > { %v6815_v49 = vpack.c.bf16 %v2933_v48, %v2930_v28  ;;  %v2894_v28 = vld [vmem:[#allocation4 + $0x1330] sm:$0xff]  ;;  %v2897_v48 = vld [vmem:[#allocation4 + $0x1348] sm:$0xff] }
 0xb15   : > { %6754 = vmatpush1.bf16.msra.mxu0 %v6753_v54  ;;  %v2942_v54 = vld [vmem:[#allocation4 + $0x14b0] sm:$0xff] }
 0xb16   : > { %6756 = vmatprep.subr.bf16.mxu0 %v6755_v56  ;;  %v2945_v56 = vld [vmem:[#allocation4 + $0x14c8] sm:$0xff] }
 0xb17   : > { %v6823_v57 = vpack.c.bf16 %v2945_v56, %v2942_v54  ;;  %v2900_v54 = vld [vmem:[#allocation4 + $0x1360] sm:$0xff]  ;;  %v2903_v56 = vld [vmem:[#allocation4 + $0x1378] sm:$0xff] }
 0xb19   : > { %6758 = vmatpush1.bf16.msra.mxu0 %v6757_v59  ;;  %v2951_v59 = vld [vmem:[#allocation4 + $0x14f8] sm:$0xff] }
 0xb1a   : > { %6760 = vmatprep.subr.bf16.mxu0 %v6759_v62  ;;  %v6827_v60 = vpack.c.bf16 %v2951_v59, %v2948_v58  ;;  %v2861_v62 = vld [vmem:[#allocation4 + $0x1228] sm:$0xff]  ;;  %v2908_v59 = vld [vmem:[#allocation4 + $0x13a0] sm:$0xff] }
 0xb1b   : > { %v6895_v63 = vpack.c.bf16 %v2861_v62, %v2858_v61  ;;  %v2905_v58 = vld [vmem:[#allocation4 + $0x1388] sm:$0xff]  ;;  %v2907_v61 = vld [vmem:[#allocation4 + $0x1398] sm:$0xff] }
 0xb1c   : > { %v2911_v62 = vld [vmem:[#allocation4 + $0x13b8] sm:$0xff] }
 0xb1d   : > { %6762 = vmatpush1.bf16.msra.mxu0 %v6761_v2  ;;  %v2813_v2 = vld [vmem:[#allocation4 + $0x10a8] sm:$0xff] }
 0xb1e   : > { %6764 = vmatprep.subr.bf16.mxu0 %v6763_v8  ;;  %v6897_v6 = vpack.c.bf16 %v2813_v2, %v2810_v1  ;;  %v2867_v8 = vld [vmem:[#allocation4 + $0x1258] sm:$0xff]  ;;  %v6767_v2 = vpack.c.bf16 %v2908_v59, %v2905_v58  ;;  %v2946_v59 = vld [vmem:[#allocation4 + $0x14d0] sm:$0xff] }
 0xb1f   : > { %v6899_v9 = vpack.c.bf16 %v2867_v8, %v2864_v36  ;;  %v2619_v36 = vld [vmem:[#allocation4 + $0xed0] sm:$0xff] }
 0xb21   : > { %6766 = vmatpush1.bf16.msra.mxu0 %v6765_v3  ;;  %v2819_v3 = vld [vmem:[#allocation4 + $0x10d8] sm:$0xff] }
 0xb22   : > { %6800 = vmatprep.subr.bf16.mxu0 %v6799_v16  ;;  %v6901_v13 = vpack.c.bf16 %v2819_v3, %v2816_v10  ;;  %v2910_v10 = vld [vmem:[#allocation4 + $0x13b0] sm:$0xff]  ;;  %v2913_v3 = vld [vmem:[#allocation4 + $0x13c8] sm:$0xff] }
 0xbd7   : > { %v2535_v17 = vpop.f32.mrb[40].mxu0  ;;  %v2606_v31 = vpop.f32.mrb[32].mxu1 }
 0xbd8   : > { %v2611_v18 = vrot.slane %v2535_v17, 7  ;;  %v2613_v19 = vrot.slane %v2606_v31, 1  ;;  %v2537_v20 = vpop.f32.mrb[41].mxu0  ;;  %v5966_v21 = vpop.f32.mrb[33].mxu1  ;;  %v2822_v31 = vld [vmem:[#allocation4 + $0x10f0] sm:$0xff] }
 0xbd9   : > { %v2879_v21 = vld [vmem:[#allocation4 + $0x12b8] sm:$0xff] }
 0xbda   : > { %v2612_v22 = vsel %vm7980_vm14, %v2611_v18, 0.0  ;;  %v2614_v26 = vsel %vm7986_vm15, %v2613_v19, 0.0  ;;  %v2825_v18 = vld [vmem:[#allocation4 + $0x1108] sm:$0xff] }
 0xbdb   : > { %v2615_v23 = vadd.f32 %v2612_v22, %v2537_v20  ;;  %v6905_v19 = vpack.c.bf16 %v2825_v18, %v2822_v31  ;;  %v2876_v20 = vld [vmem:[#allocation4 + $0x12a0] sm:$0xff] }
 0xbdc   : > { %v6907_v22 = vpack.c.bf16 %v2879_v21, %v2876_v20  ;;  %v2916_v18 = vld [vmem:[#allocation4 + $0x13e0] sm:$0xff]  ;;  %v2923_v20 = vld [vmem:[#allocation4 + $0x1418] sm:$0xff]  ;;  %v2926_v21 = vld [vmem:[#allocation4 + $0x1430] sm:$0xff] }
 0xbdd   : > { %v2616_v29 = vadd.f32 %v2615_v23, %v2614_v26  ;;  %v2828_v23 = vld [vmem:[#allocation4 + $0x1120] sm:$0xff]  ;;  %v2831_v26 = vld [vmem:[#allocation4 + $0x1138] sm:$0xff] }
 0xbdf   : > { %v2617_v38 = vadd.f32 %v2616_v29, %v2610_v27  ;;  %v6909_v27 = vpack.c.bf16 %v2831_v26, %v2828_v23  ;;  %v2882_v29 = vld [vmem:[#allocation4 + $0x12d0] sm:$0xff]  ;;  %v6779_v23 = vpack.c.bf16 %v2926_v21, %v2923_v20  ;;  %v2820_v20 = vld [vmem:[#allocation4 + $0x10e0] sm:$0xff]  ;;  %v2823_v21 = vld [vmem:[#allocation4 + $0x10f8] sm:$0xff] }
 0xbe0   : > { %v6911_v37 = vpack.c.bf16 %v2885_v32, %v2882_v29  ;;  %v2922_v26 = vld [vmem:[#allocation4 + $0x1410] sm:$0xff]  ;;  %v2929_v29 = vld [vmem:[#allocation4 + $0x1448] sm:$0xff]  ;;  %v2932_v32 = vld [vmem:[#allocation4 + $0x1460] sm:$0xff] }
 0xbe1   : > { %v2618_v39 = vmax.f32 %v2617_v38, 0.0  ;;  %v2834_v38 = vld [vmem:[#allocation4 + $0x1150] sm:$0xff] }
 0xbe3   : > { %2718 = vmatmul.mubr.f32.vlgmr.msra.gmra.mrb[42].mxu0 %v2618_v39  ;;  %v2837_v39 = vld [vmem:[#allocation4 + $0x1168] sm:$0xff] }
 0xbe4   : > { %6802 = vmatpush3.bf16.msra.mxu0 %v6799_v16  ;;  %5999 = vmatprep.mubr.f32.mxu0 %v7950_v35  ;;  %v2873_v16 = vld [vmem:[#allocation4 + $0x1288] sm:$0xff] }
 0xbe5   : > { %6804 = vmatprep.subr.bf16.mxu0 %v6803_v34  ;;  %v6903_v17 = vpack.c.bf16 %v2873_v16, %v2870_v14  ;;  %v2920_v14 = vld [vmem:[#allocation4 + $0x1400] sm:$0xff]  ;;  %v2620_v16 = vld [vmem:[#allocation4 + $0xee8] sm:$0xff] }
 0xbe8   : > { %6806 = vmatpush3.bf16.msra.mxu0 %v6803_v34  ;;  %v6913_v34 = vpack.c.bf16 %v2837_v39, %v2834_v38  ;;  %v6783_v38 = vpack.c.bf16 %v2932_v32, %v2929_v29  ;;  %v2928_v39 = vld [vmem:[#allocation4 + $0x1440] sm:$0xff]  ;;  %v2826_v29 = vld [vmem:[#allocation4 + $0x1110] sm:$0xff]  ;;  %v2829_v32 = vld [vmem:[#allocation4 + $0x1128] sm:$0xff] }
 0xbe9   : > { %6808 = vmatprep.subr.bf16.mxu0 %v6807_v4 }
 0xbec   : > { %6810 = vmatpush3.bf16.msra.mxu0 %v6807_v4  ;;  %v6915_v4 = vpack.c.bf16 %v2891_v41, %v2888_v40  ;;  %v2935_v40 = vld [vmem:[#allocation4 + $0x1478] sm:$0xff]  ;;  %v2938_v41 = vld [vmem:[#allocation4 + $0x1490] sm:$0xff] }
 0xbed   : > { %6812 = vmatprep.subr.bf16.mxu0 %v6811_v11 }
 0xbf0   : > { %6814 = vmatpush3.bf16.msra.mxu0 %v6811_v11  ;;  %v6917_v11 = vpack.c.bf16 %v2843_v45, %v2840_v43  ;;  %v6787_v43 = vpack.c.bf16 %v2938_v41, %v2935_v40  ;;  %v2934_v45 = vld [vmem:[#allocation4 + $0x1470] sm:$0xff]  ;;  %v2835_v40 = vld [vmem:[#allocation4 + $0x1158] sm:$0xff] }
 0xbf1   : > { %6816 = vmatprep.subr.bf16.mxu0 %v6815_v49  ;;  %v2839_v41 = vld [vmem:[#allocation4 + $0x1178] sm:$0xff] }
 0xbf4   : > { %6818 = vmatpush3.bf16.msra.mxu0 %v6815_v49  ;;  %v6919_v49 = vpack.c.bf16 %v2897_v48, %v2894_v28  ;;  %v2941_v28 = vld [vmem:[#allocation4 + $0x14a8] sm:$0xff]  ;;  %v2944_v48 = vld [vmem:[#allocation4 + $0x14c0] sm:$0xff] }
 0xbf5   : > { %6820 = vmatprep.subr.bf16.mxu0 %v6819_v53 }
 0xbf8   : > { %6822 = vmatpush3.bf16.msra.mxu0 %v6819_v53  ;;  %v6921_v53 = vpack.c.bf16 %v2849_v52, %v2846_v50  ;;  %v6791_v50 = vpack.c.bf16 %v2944_v48, %v2941_v28  ;;  %v2940_v52 = vld [vmem:[#allocation4 + $0x14a0] sm:$0xff]  ;;  %v2845_v28 = vld [vmem:[#allocation4 + $0x11a8] sm:$0xff] }
 0xbf9   : > { %6824 = vmatprep.subr.bf16.mxu0 %v6823_v57  ;;  %v2848_v48 = vld [vmem:[#allocation4 + $0x11c0] sm:$0xff] }
 0xbfc   : > { %6826 = vmatpush3.bf16.msra.mxu0 %v6823_v57  ;;  %v6923_v57 = vpack.c.bf16 %v2903_v56, %v2900_v54  ;;  %v2947_v54 = vld [vmem:[#allocation4 + $0x14d8] sm:$0xff]  ;;  %v2950_v56 = vld [vmem:[#allocation4 + $0x14f0] sm:$0xff] }
 0xbfd   : > { %6828 = vmatprep.subr.bf16.mxu0 %v6827_v60  ;;  %v6795_v58 = vpack.c.bf16 %v2950_v56, %v2947_v54  ;;  %v2851_v54 = vld [vmem:[#allocation4 + $0x11d8] sm:$0xff]  ;;  %v2854_v56 = vld [vmem:[#allocation4 + $0x11f0] sm:$0xff] }
 0xc00   : > { %6830 = vmatpush3.bf16.msra.mxu0 %v6827_v60  ;;  %v2904_v60 = vld [vmem:[#allocation4 + $0x1380] sm:$0xff] }
 0xc01   : > { %6896 = vmatprep.subr.bf16.mxu0 %v6895_v63  ;;  %v2914_v63 = vld [vmem:[#allocation4 + $0x13d0] sm:$0xff]  ;;  %v6769_v8 = vpack.c.bf16 %v2907_v61, %v2904_v60  ;;  %v2949_v60 = vld [vmem:[#allocation4 + $0x14e8] sm:$0xff] }
 0xc02   : > { %v2809_v61 = vld [vmem:[#allocation4 + $0x1088] sm:$0xff] }
 0xc03   : > { %6000 = vmatmul.mubr.f32.vlgmr.msra.gmra.mrb[44].mxu0 %v7948_v33 }
 0xc04   : > { %6898 = vmatpush3.bf16.msra.mxu0 %v6897_v6 }
 0xc05   : > { %6900 = vmatprep.subr.bf16.mxu0 %v6899_v9  ;;  %v6771_v9 = vpack.c.bf16 %v2914_v63, %v2911_v62  ;;  %v2812_v62 = vld [vmem:[#allocation4 + $0x10a0] sm:$0xff]  ;;  %v6797_v63 = vpack.c.bf16 %v2949_v60, %v2946_v59  ;;  %v2850_v59 = vld [vmem:[#allocation4 + $0x11d0] sm:$0xff]  ;;  %v2853_v60 = vld [vmem:[#allocation4 + $0x11e8] sm:$0xff] }
 0xc08   : > { %6902 = vmatpush3.bf16.msra.mxu0 %v6901_v13  ;;  %v2917_v13 = vld [vmem:[#allocation4 + $0x13e8] sm:$0xff] }
 0xc09   : > { %6904 = vmatprep.subr.bf16.mxu0 %v6903_v17  ;;  %v6773_v17 = vpack.c.bf16 %v2913_v3, %v2910_v10  ;;  %v6775_v31 = vpack.c.bf16 %v2920_v14, %v2917_v13  ;;  %v2814_v14 = vld [vmem:[#allocation4 + $0x10b0] sm:$0xff] }
 0xc0c   : > { %6906 = vmatpush3.bf16.msra.mxu0 %v6905_v19  ;;  %v2919_v19 = vld [vmem:[#allocation4 + $0x13f8] sm:$0xff] }
 0xc0d   : > { %6908 = vmatprep.subr.bf16.mxu0 %v6907_v22  ;;  %v6777_v22 = vpack.c.bf16 %v2919_v19, %v2916_v18 }
 0xc10   : > { %6910 = vmatpush3.bf16.msra.mxu0 %v6909_v27  ;;  %v2925_v27 = vld [vmem:[#allocation4 + $0x1428] sm:$0xff] }
 0xc11   : > { %6912 = vmatprep.subr.bf16.mxu0 %v6911_v37  ;;  %v6781_v37 = vpack.c.bf16 %v2925_v27, %v2922_v26  ;;  %v6841_v26 = vpack.c.bf16 %v2823_v21, %v2820_v20  ;;  %v2868_v20 = vld [vmem:[#allocation4 + $0x1260] sm:$0xff]  ;;  %v2871_v21 = vld [vmem:[#allocation4 + $0x1278] sm:$0xff] }
 0xc14   : > { %6914 = vmatpush3.bf16.msra.mxu0 %v6913_v34  ;;  %v2931_v34 = vld [vmem:[#allocation4 + $0x1458] sm:$0xff] }
 0xc15   : > { %6916 = vmatprep.subr.bf16.mxu0 %v6915_v4  ;;  %v6785_v4 = vpack.c.bf16 %v2931_v34, %v2928_v39  ;;  %v2832_v34 = vld [vmem:[#allocation4 + $0x1140] sm:$0xff] }
 0xc18   : > { %6918 = vmatpush3.bf16.msra.mxu0 %v6917_v11  ;;  %v2937_v11 = vld [vmem:[#allocation4 + $0x1488] sm:$0xff] }
 0xc19   : > { %6920 = vmatprep.subr.bf16.mxu0 %v6919_v49  ;;  %v6789_v49 = vpack.c.bf16 %v2937_v11, %v2934_v45  ;;  %v2838_v45 = vld [vmem:[#allocation4 + $0x1170] sm:$0xff]  ;;  %v2841_v11 = vld [vmem:[#allocation4 + $0x1188] sm:$0xff] }
 0xc1c   : > { %6922 = vmatpush3.bf16.msra.mxu0 %v6921_v53  ;;  %v2943_v53 = vld [vmem:[#allocation4 + $0x14b8] sm:$0xff] }
 0xc1d   : > { %6924 = vmatprep.subr.bf16.mxu0 %v6923_v57  ;;  %v6793_v57 = vpack.c.bf16 %v2943_v53, %v2940_v52  ;;  %v2844_v52 = vld [vmem:[#allocation4 + $0x11a0] sm:$0xff]  ;;  %v2847_v53 = vld [vmem:[#allocation4 + $0x11b8] sm:$0xff] }
 0xcb6   : > { %v2719_v1 = vpop.f32.mrb[42].mxu0 }
 0xcb7   : > { %v2721_v6 = vpop.f32.mrb[43].mxu0 }
 0xcb8   : > { %2731 = vmatprep.subr.mxu1 %v2721_v6  ;;  %v2811_v6 = vld [vmem:[#allocation4 + $0x1098] sm:$0xff] }
 0xcb9   : > { %2732 = vmatpush1.msra.mxu1 %v2719_v1  ;;  %v6831_v1 = vpack.c.bf16 %v2812_v62, %v2809_v61  ;;  %v2857_v61 = vld [vmem:[#allocation4 + $0x1208] sm:$0xff]  ;;  %v2860_v62 = vld [vmem:[#allocation4 + $0x1220] sm:$0xff] }
 0xcba   : > { %5205 = vmatmul.mubr.msk.f32.vlgmr.msra.gmra.mrb[34].mxu1 %vm2724_vm7, %v2619_v36  ;;  %6768 = vmatprep.subr.bf16.mxu1 %v6767_v2  ;;  %v2808_v2 = vld [vmem:[#allocation4 + $0x1080] sm:$0xff]  ;;  %v2815_v36 = vld [vmem:[#allocation4 + $0x10b8] sm:$0xff] }
 0xcbb   : > { %6770 = vmatpush1.bf16.msra.mxu1 %v6769_v8  ;;  %2801 = vmatprep.mubr.f32.mxu1 %v7584_v0  ;;  %v2818_v8 = vld [vmem:[#allocation4 + $0x10d0] sm:$0xff]  ;;  %v6833_v3 = vpack.c.bf16 %v2811_v6, %v2808_v2  ;;  %v2856_v2 = vld [vmem:[#allocation4 + $0x1200] sm:$0xff]  ;;  %v2859_v6 = vld [vmem:[#allocation4 + $0x1218] sm:$0xff] }
 0xcbc   : > { %6772 = vmatprep.subr.bf16.mxu1 %v6771_v9  ;;  %v6835_v13 = vpack.c.bf16 %v2818_v8, %v2815_v36  ;;  %v2863_v36 = vld [vmem:[#allocation4 + $0x1238] sm:$0xff]  ;;  %v2866_v8 = vld [vmem:[#allocation4 + $0x1250] sm:$0xff] }
 0xcbe   : > { %5206 = vmatmul.mubr.msk.f32.gmra.mrb[36].mxu1 %vm2724_vm7, %v2620_v16  ;;  %v2817_v16 = vld [vmem:[#allocation4 + $0x10c8] sm:$0xff] }
 0xcbf   : > { %6774 = vmatpush1.bf16.msra.mxu1 %v6773_v17  ;;  %3016 = vmatprep.mubr.f32.mxu1 %v7584_v0  ;;  %v2821_v17 = vld [vmem:[#allocation4 + $0x10e8] sm:$0xff]  ;;  %v6837_v18 = vpack.c.bf16 %v2817_v16, %v2814_v14  ;;  %v2862_v14 = vld [vmem:[#allocation4 + $0x1230] sm:$0xff] }
 0xcc0   : > { %6776 = vmatprep.subr.bf16.mxu1 %v6775_v31  ;;  %v2824_v31 = vld [vmem:[#allocation4 + $0x1100] sm:$0xff]  ;;  %v2865_v16 = vld [vmem:[#allocation4 + $0x1248] sm:$0xff] }
 0xcc1   : > { %v6839_v19 = vpack.c.bf16 %v2824_v31, %v2821_v17  ;;  %v2869_v17 = vld [vmem:[#allocation4 + $0x1268] sm:$0xff]  ;;  %v2872_v31 = vld [vmem:[#allocation4 + $0x1280] sm:$0xff] }
 0xcc3   : > { %6778 = vmatpush1.bf16.msra.mxu1 %v6777_v22  ;;  %v2827_v22 = vld [vmem:[#allocation4 + $0x1118] sm:$0xff] }
 0xcc4   : > { %6780 = vmatprep.subr.bf16.mxu1 %v6779_v23  ;;  %v2830_v23 = vld [vmem:[#allocation4 + $0x1130] sm:$0xff] }
 0xcc5   : > { %v6843_v27 = vpack.c.bf16 %v2830_v23, %v2827_v22  ;;  %v2875_v22 = vld [vmem:[#allocation4 + $0x1298] sm:$0xff]  ;;  %v2878_v23 = vld [vmem:[#allocation4 + $0x12b0] sm:$0xff] }
 0xcc7   : > { %6782 = vmatpush1.bf16.msra.mxu1 %v6781_v37  ;;  %v2833_v37 = vld [vmem:[#allocation4 + $0x1148] sm:$0xff] }
 0xcc8   : > { %6784 = vmatprep.subr.bf16.mxu1 %v6783_v38  ;;  %v6845_v38 = vpack.c.bf16 %v2829_v32, %v2826_v29  ;;  %v2874_v29 = vld [vmem:[#allocation4 + $0x1290] sm:$0xff]  ;;  %v2877_v32 = vld [vmem:[#allocation4 + $0x12a8] sm:$0xff] }
 0xccb   : > { %6786 = vmatpush1.bf16.msra.mxu1 %v6785_v4  ;;  %v2842_v4 = vld [vmem:[#allocation4 + $0x1190] sm:$0xff] }
 0xccc   : > { %6788 = vmatprep.subr.bf16.mxu1 %v6787_v43  ;;  %v6849_v43 = vpack.c.bf16 %v2835_v40, %v2832_v34  ;;  %v2880_v34 = vld [vmem:[#allocation4 + $0x12c0] sm:$0xff]  ;;  %v2883_v40 = vld [vmem:[#allocation4 + $0x12d8] sm:$0xff] }
 0xccf   : > { %6790 = vmatpush1.bf16.msra.mxu1 %v6789_v49  ;;  %v6853_v49 = vpack.c.bf16 %v2841_v11, %v2838_v45  ;;  %v2886_v45 = vld [vmem:[#allocation4 + $0x12f0] sm:$0xff]  ;;  %v2889_v11 = vld [vmem:[#allocation4 + $0x1308] sm:$0xff] }
 0xcd0   : > { %6792 = vmatprep.subr.bf16.mxu1 %v6791_v50  ;;  %v6855_v50 = vpack.c.bf16 %v2848_v48, %v2845_v28  ;;  %v2893_v28 = vld [vmem:[#allocation4 + $0x1328] sm:$0xff]  ;;  %v2896_v48 = vld [vmem:[#allocation4 + $0x1340] sm:$0xff] }
 0xcd3   : > { %6794 = vmatpush1.bf16.msra.mxu1 %v6793_v57  ;;  %v6857_v57 = vpack.c.bf16 %v2847_v53, %v2844_v52  ;;  %v6887_v52 = vpack.c.bf16 %v2896_v48, %v2893_v28  ;;  %v2892_v53 = vld [vmem:[#allocation4 + $0x1320] sm:$0xff]  ;;  %v3299_v28 = vld [vmem:[#allocation4 + $0x15c8] sm:$0xff] }
 0xcd4   : > { %6796 = vmatprep.subr.bf16.mxu1 %v6795_v58  ;;  %v6859_v58 = vpack.c.bf16 %v2854_v56, %v2851_v54  ;;  %v2895_v54 = vld [vmem:[#allocation4 + $0x1338] sm:$0xff] }
 0xcd5   : > { %v2855_v56 = vld [vmem:[#allocation4 + $0x11f8] sm:$0xff] }
 0xcd6   : > { %v8018_v9 = vpop.f32.mrb[44].mxu0 }
 0xcd7   : > { %v8020_v10 = vpop.f32.mrb[45].mxu0  ;;  %6798 = vmatpush1.bf16.msra.mxu1 %v6797_v63  ;;  %v6861_v63 = vpack.c.bf16 %v2853_v60, %v2850_v59  ;;  %v6889_v60 = vpack.c.bf16 %v2895_v54, %v2892_v53  ;;  %v3300_v54 = vld [vmem:[#allocation4 + $0x15d0] sm:$0xff] }
 0xcd8   : > { %6832 = vmatprep.subr.bf16.mxu1 %v6831_v1  ;;  %v6863_v1 = vpack.c.bf16 %v2860_v62, %v2857_v61  ;;  %v2898_v62 = vld [vmem:[#allocation4 + $0x1350] sm:$0xff] }
 0xcda   : > { %3017 = vmatmul.mubr.f32.vlgmr.msra.gmra.mrb[38].mxu1 %v7950_v35  ;;  %v2836_v35 = vld [vmem:[#allocation4 + $0x1160] sm:$0xff] }
 0xcdb   : > { %3022 = vmatprep.mubr.f32.mxu1 %v7584_v0  ;;  %6834 = vmatpush1.bf16.msra.mxu1 %v6833_v3  ;;  %v6847_v39 = vpack.c.bf16 %v2836_v35, %v2833_v37  ;;  %v6865_v3 = vpack.c.bf16 %v2859_v6, %v2856_v2  ;;  %v2881_v37 = vld [vmem:[#allocation4 + $0x12c8] sm:$0xff]  ;;  %v2884_v35 = vld [vmem:[#allocation4 + $0x12e0] sm:$0xff]  ;;  %v3281_v6 = vld [vmem:[#allocation4 + $0x1538] sm:$0xff] }
 0xcdc   : > { %6836 = vmatprep.subr.bf16.mxu1 %v6835_v13  ;;  %v6867_v13 = vpack.c.bf16 %v2866_v8, %v2863_v36  ;;  %v3278_v2 = vld [vmem:[#allocation4 + $0x1520] sm:$0xff]  ;;  %v3279_v8 = vld [vmem:[#allocation4 + $0x1528] sm:$0xff] }
 0xcdd   : > { %v6927_v36 = vpack.c.bf16 %v3281_v6, %v3278_v2  ;;  %v3308_v6 = vld [vmem:[#allocation4 + $0x1610] sm:$0xff] }
 0xcde   : > { %3023 = vmatmul.mubr.f32.gmra.mrb[40].mxu1 %v7948_v33  ;;  %v6851_v33 = vpack.c.bf16 %v2842_v4, %v2839_v41  ;;  %v2887_v41 = vld [vmem:[#allocation4 + $0x12f8] sm:$0xff]  ;;  %v2890_v4 = vld [vmem:[#allocation4 + $0x1310] sm:$0xff] }
 0xcdf   : > { %6838 = vmatpush1.bf16.msra.mxu1 %v6837_v18  ;;  %v6869_v18 = vpack.c.bf16 %v2865_v16, %v2862_v14  ;;  %v3277_v14 = vld [vmem:[#allocation4 + $0x1518] sm:$0xff]  ;;  %v3280_v16 = vld [vmem:[#allocation4 + $0x1530] sm:$0xff] }
 0xce0   : > { %6840 = vmatprep.subr.bf16.mxu1 %v6839_v19  ;;  %v6871_v19 = vpack.c.bf16 %v2872_v31, %v2869_v17  ;;  %v3284_v17 = vld [vmem:[#allocation4 + $0x1550] sm:$0xff]  ;;  %v3287_v31 = vld [vmem:[#allocation4 + $0x1568] sm:$0xff] }
 0xce3   : > { %6842 = vmatpush1.bf16.msra.mxu1 %v6841_v26  ;;  %v6873_v26 = vpack.c.bf16 %v2871_v21, %v2868_v20  ;;  %v6929_v21 = vpack.c.bf16 %v3280_v16, %v3277_v14  ;;  %v3309_v14 = vld [vmem:[#allocation4 + $0x1618] sm:$0xff] }
 0xce4   : > { %6844 = vmatprep.subr.bf16.mxu1 %v6843_v27  ;;  %v6875_v27 = vpack.c.bf16 %v2878_v23, %v2875_v22  ;;  %v6931_v23 = vpack.c.bf16 %v3287_v31, %v3284_v17  ;;  %v3312_v17 = vld [vmem:[#allocation4 + $0x1630] sm:$0xff] }
 0xce5   : > { %v6979_v31 = vpack.c.bf16 %v3312_v17, %v3309_v14 }
 0xce7   : > { %6846 = vmatpush1.bf16.msra.mxu1 %v6845_v38  ;;  %v6877_v38 = vpack.c.bf16 %v2877_v32, %v2874_v29  ;;  %v3290_v32 = vld [vmem:[#allocation4 + $0x1580] sm:$0xff] }
 0xce8   : > { %6848 = vmatprep.subr.bf16.mxu1 %v6847_v39  ;;  %v6879_v39 = vpack.c.bf16 %v2884_v35, %v2881_v37  ;;  %v3293_v37 = vld [vmem:[#allocation4 + $0x1598] sm:$0xff]  ;;  %v3291_v35 = vld [vmem:[#allocation4 + $0x1588] sm:$0xff] }
 0xceb   : > { %6850 = vmatpush1.bf16.msra.mxu1 %v6849_v43  ;;  %v6881_v43 = vpack.c.bf16 %v2883_v40, %v2880_v34 }
 0xcec   : > { %6852 = vmatprep.subr.bf16.mxu1 %v6851_v33  ;;  %v6883_v33 = vpack.c.bf16 %v2890_v4, %v2887_v41  ;;  %v6935_v41 = vpack.c.bf16 %v3293_v37, %v3290_v32  ;;  %v3289_v4 = vld [vmem:[#allocation4 + $0x1578] sm:$0xff]  ;;  %v3320_v32 = vld [vmem:[#allocation4 + $0x1670] sm:$0xff]  ;;  %v3323_v37 = vld [vmem:[#allocation4 + $0x1688] sm:$0xff] }
 0xcef   : > { %6854 = vmatpush1.bf16.msra.mxu1 %v6853_v49  ;;  %v6885_v49 = vpack.c.bf16 %v2889_v11, %v2886_v45  ;;  %v3296_v11 = vld [vmem:[#allocation4 + $0x15b0] sm:$0xff] }
 0xcf0   : > { %6856 = vmatprep.subr.bf16.mxu1 %v6855_v50  ;;  %v2852_v50 = vld [vmem:[#allocation4 + $0x11e0] sm:$0xff]  ;;  %v6939_v48 = vpack.c.bf16 %v3299_v28, %v3296_v11  ;;  %v3503_v28 = vld [vmem:[#allocation4 + $0x16d8] sm:$0xff] }
 0xcf1   : > { %v6925_v59 = vpack.c.bf16 %v2855_v56, %v2852_v50  ;;  %v3298_v50 = vld [vmem:[#allocation4 + $0x15c0] sm:$0xff] }
 0xcf2   : > { %v3500_v11 = vld [vmem:[#allocation4 + $0x16c0] sm:$0xff] }
 0xcf3   : > { %6858 = vmatpush1.bf16.msra.mxu1 %v6857_v57  ;;  %v2899_v57 = vld [vmem:[#allocation4 + $0x1358] sm:$0xff]  ;;  %6926 = vmatpush3.bf16.msra.mxu0 %v6925_v59 }
 0xcf4   : > { %6860 = vmatprep.subr.bf16.mxu1 %v6859_v58  ;;  %v2902_v58 = vld [vmem:[#allocation4 + $0x1370] sm:$0xff]  ;;  %6928 = vmatprep.subr.bf16.mxu0 %v6927_v36  ;;  %v3311_v36 = vld [vmem:[#allocation4 + $0x1628] sm:$0xff] }
 0xcf5   : > { %v6891_v61 = vpack.c.bf16 %v2902_v58, %v2899_v57  ;;  %v3302_v57 = vld [vmem:[#allocation4 + $0x15e0] sm:$0xff]  ;;  %v3305_v58 = vld [vmem:[#allocation4 + $0x15f8] sm:$0xff] }
 0xcf6   : > { %v6943_v59 = vpack.c.bf16 %v3305_v58, %v3302_v57 }
 0xcf7   : > { %6862 = vmatpush1.bf16.msra.mxu1 %v6861_v63  ;;  %v2901_v63 = vld [vmem:[#allocation4 + $0x1368] sm:$0xff] }
 0xcf8   : > { %6864 = vmatprep.subr.bf16.mxu1 %v6863_v1  ;;  %v6893_v1 = vpack.c.bf16 %v2901_v63, %v2898_v62  ;;  %v3303_v62 = vld [vmem:[#allocation4 + $0x15e8] sm:$0xff] }
 0xcfb   : > { %6866 = vmatpush1.bf16.msra.mxu1 %v6865_v3  ;;  %v3282_v3 = vld [vmem:[#allocation4 + $0x1540] sm:$0xff] }
 0xcfc   : > { %6868 = vmatprep.subr.bf16.mxu1 %v6867_v13  ;;  %v6959_v13 = vpack.c.bf16 %v3282_v3, %v3279_v8  ;;  %v6947_v8 = vpack.c.bf16 %v3311_v36, %v3308_v6  ;;  %v3307_v3 = vld [vmem:[#allocation4 + $0x1608] sm:$0xff] }
 0xcff   : > { %6870 = vmatpush1.bf16.msra.mxu1 %v6869_v18  ;;  %v3285_v18 = vld [vmem:[#allocation4 + $0x1558] sm:$0xff] }
 0xd00   : > { %6872 = vmatprep.subr.bf16.mxu1 %v6871_v19  ;;  %v3288_v19 = vld [vmem:[#allocation4 + $0x1570] sm:$0xff] }
 0xd01   : > { %v6963_v29 = vpack.c.bf16 %v3288_v19, %v3285_v18  ;;  %v3314_v18 = vld [vmem:[#allocation4 + $0x1640] sm:$0xff]  ;;  %v3317_v19 = vld [vmem:[#allocation4 + $0x1658] sm:$0xff] }
 0xd03   : > { %6874 = vmatpush1.bf16.msra.mxu1 %v6873_v26  ;;  %v3283_v26 = vld [vmem:[#allocation4 + $0x1548] sm:$0xff] }
 0xd04   : > { %6876 = vmatprep.subr.bf16.mxu1 %v6875_v27  ;;  %v3286_v27 = vld [vmem:[#allocation4 + $0x1560] sm:$0xff] }
 0xd05   : > { %v6933_v34 = vpack.c.bf16 %v3286_v27, %v3283_v26  ;;  %v3318_v27 = vld [vmem:[#allocation4 + $0x1660] sm:$0xff] }
 0xd07   : > { %6878 = vmatpush1.bf16.msra.mxu1 %v6877_v38  ;;  %v3294_v38 = vld [vmem:[#allocation4 + $0x15a0] sm:$0xff] }
 0xd08   : > { %6880 = vmatprep.subr.bf16.mxu1 %v6879_v39 }
 0xd0b   : > { %6882 = vmatpush1.bf16.msra.mxu1 %v6881_v43  ;;  %v3292_v43 = vld [vmem:[#allocation4 + $0x1590] sm:$0xff] }
 0xd0c   : > { %6884 = vmatprep.subr.bf16.mxu1 %v6883_v33  ;;  %v6967_v33 = vpack.c.bf16 %v3294_v38, %v3291_v35  ;;  %v6937_v45 = vpack.c.bf16 %v3292_v43, %v3289_v4  ;;  %v6955_v35 = vpack.c.bf16 %v3323_v37, %v3320_v32  ;;  %v3319_v38 = vld [vmem:[#allocation4 + $0x1668] sm:$0xff]  ;;  %v3499_v43 = vld [vmem:[#allocation4 + $0x16b8] sm:$0xff]  ;;  %v3506_v32 = vld [vmem:[#allocation4 + $0x16f0] sm:$0xff] }
 0xd0d   : > { %v3509_v37 = vld [vmem:[#allocation4 + $0x1708] sm:$0xff] }
 0xd0f   : > { %6886 = vmatpush1.bf16.msra.mxu1 %v6885_v49  ;;  %v3295_v49 = vld [vmem:[#allocation4 + $0x15a8] sm:$0xff] }
 0xd10   : > { %6888 = vmatprep.subr.bf16.mxu1 %v6887_v52  ;;  %v3297_v52 = vld [vmem:[#allocation4 + $0x15b8] sm:$0xff]  ;;  %v6941_v53 = vpack.c.bf16 %v3298_v50, %v3295_v49 }
 0xd11   : > { %v6971_v56 = vpack.c.bf16 %v3300_v54, %v3297_v52 }
 0xd13   : > { %6890 = vmatpush1.bf16.msra.mxu1 %v6889_v60  ;;  %v3301_v60 = vld [vmem:[#allocation4 + $0x15d8] sm:$0xff] }
 0xd14   : > { %6892 = vmatprep.subr.bf16.mxu1 %v6891_v61  ;;  %v3304_v61 = vld [vmem:[#allocation4 + $0x15f0] sm:$0xff] }
 0xd15   : > { %v6945_v63 = vpack.c.bf16 %v3304_v61, %v3301_v60 }
 0xd17   : > { %6894 = vmatpush1.bf16.msra.mxu1 %v6893_v1  ;;  %v3306_v1 = vld [vmem:[#allocation4 + $0x1600] sm:$0xff] }
 0xd18   : > { %6960 = vmatprep.subr.bf16.mxu1 %v6959_v13  ;;  %v6975_v2 = vpack.c.bf16 %v3306_v1, %v3303_v62 }
 0xd8d   : > { %v2797_v20 = vpop.f32.mrb[34].mxu1 }
 0xd8e   : > { %v2799_v22 = vpop.f32.mrb[35].mxu1 }
 0xd8f   : > { %3168 = vmatprep.mubr.f32.mxu1 %v2799_v22  ;;  %3245 = vmatprep.mubr.f32.mxu0 %v2799_v22  ;;  %v3316_v22 = vld [vmem:[#allocation4 + $0x1650] sm:$0xff] }
 0xd90   : > { %3169 = vmatmul.mubr.f32.vlgmr.msra.gmra.mrb[38].mxu1 %v2797_v20  ;;  %3246 = vmatmul.mubr.f32.vlgmr.msra.gmra.mrb[46].mxu0 %v2797_v20  ;;  %v6951_v20 = vpack.c.bf16 %v3317_v19, %v3314_v18 }
 0xd91   : > { %v2803_v39 = vpop.f32.mrb[36].mxu1  ;;  %6930 = vmatpush1.bf16.msra.mxu0 %v6929_v21  ;;  %6962 = vmatpush3.bf16.msra.mxu1 %v6959_v13  ;;  %v3310_v13 = vld [vmem:[#allocation4 + $0x1620] sm:$0xff]  ;;  %v3313_v21 = vld [vmem:[#allocation4 + $0x1638] sm:$0xff] }
 0xd92   : > { %v2805_v40 = vpop.f32.mrb[37].mxu1  ;;  %6932 = vmatprep.subr.bf16.mxu0 %v6931_v23  ;;  %6964 = vmatprep.subr.bf16.mxu1 %v6963_v29  ;;  %v6949_v16 = vpack.c.bf16 %v3310_v13, %v3307_v3  ;;  %v3315_v23 = vld [vmem:[#allocation4 + $0x1648] sm:$0xff]  ;;  %v6953_v26 = vpack.c.bf16 %v3316_v22, %v3313_v21 }
 0xd93   : > { %3174 = vmatprep.mubr.f32.mxu1 %v2805_v40  ;;  %3250 = vmatprep.mubr.f32.mxu0 %v2805_v40  ;;  %v3501_v22 = vld [vmem:[#allocation4 + $0x16c8] sm:$0xff] }
 0xd94   : > { %3175 = vmatmul.mubr.f32.gmra.mrb[40].mxu1 %v2803_v39  ;;  %3251 = vmatmul.mubr.f32.gmra.mrb[48].mxu0 %v2803_v39  ;;  %v3322_v39 = vld [vmem:[#allocation4 + $0x1680] sm:$0xff] }
 0xd95   : > { %6934 = vmatpush1.bf16.msra.mxu0 %v6933_v34  ;;  %6966 = vmatpush3.bf16.msra.mxu1 %v6963_v29  ;;  %v6983_v29 = vpack.c.bf16 %v3318_v27, %v3315_v23  ;;  %v3321_v34 = vld [vmem:[#allocation4 + $0x1678] sm:$0xff]  ;;  %v6957_v40 = vpack.c.bf16 %v3322_v39, %v3319_v38  ;;  %v3505_v23 = vld [vmem:[#allocation4 + $0x16e8] sm:$0xff] }
 0xd96   : > { %6936 = vmatprep.subr.bf16.mxu0 %v6935_v41  ;;  %6968 = vmatprep.subr.bf16.mxu1 %v6967_v33  ;;  %v3324_v41 = vld [vmem:[#allocation4 + $0x1690] sm:$0xff] }
 0xd97   : > { %3389 = vmatprep.mubr.f32.mxu0 %v7584_v0  ;;  %v6987_v4 = vpack.c.bf16 %v3324_v41, %v3321_v34  ;;  %v3507_v41 = vld [vmem:[#allocation4 + $0x16f8] sm:$0xff] }
 0xd99   : > { %6938 = vmatpush1.bf16.msra.mxu0 %v6937_v45  ;;  %6970 = vmatpush3.bf16.msra.mxu1 %v6967_v33  ;;  %v3502_v33 = vld [vmem:[#allocation4 + $0x16d0] sm:$0xff] }
 0xd9a   : > { %6940 = vmatprep.subr.bf16.mxu0 %v6939_v48  ;;  %6972 = vmatprep.subr.bf16.mxu1 %v6971_v56  ;;  %v6991_v45 = vpack.c.bf16 %v3502_v33, %v3499_v43  ;;  %v7023_v48 = vpack.c.bf16 %v3503_v28, %v3500_v11  ;;  %v3511_v43 = vld [vmem:[#allocation4 + $0x1718] sm:$0xff]  ;;  %v3514_v33 = vld [vmem:[#allocation4 + $0x1730] sm:$0xff] }
 0xd9b   : > { %v3515_v11 = vld [vmem:[#allocation4 + $0x1738] sm:$0xff] }
 0xd9d   : > { %6942 = vmatpush1.bf16.msra.mxu0 %v6941_v53  ;;  %6974 = vmatpush3.bf16.msra.mxu1 %v6971_v56 }
 0xd9e   : > { %6944 = vmatprep.subr.bf16.mxu0 %v6943_v59  ;;  %6976 = vmatprep.subr.bf16.mxu1 %v6975_v2 }
 0xda1   : > { %6946 = vmatpush1.bf16.msra.mxu0 %v6945_v63  ;;  %6978 = vmatpush3.bf16.msra.mxu1 %v6975_v2 }
 0xda2   : > { %6948 = vmatprep.subr.bf16.mxu0 %v6947_v8  ;;  %6980 = vmatprep.subr.bf16.mxu1 %v6979_v31 }
 0xda5   : > { %6950 = vmatpush1.bf16.msra.mxu0 %v6949_v16  ;;  %6982 = vmatpush3.bf16.msra.mxu1 %v6979_v31  ;;  %v3256_v31 = vld [vmem:[#allocation4 + $0x1500] ss:$0 sm:$0xff] }
 0xda6   : > { %6952 = vmatprep.subr.bf16.mxu0 %v6951_v20  ;;  %6984 = vmatprep.subr.bf16.mxu1 %v6983_v29 }
 0xda9   : > { %6954 = vmatpush1.bf16.msra.mxu0 %v6953_v26  ;;  %6986 = vmatpush3.bf16.msra.mxu1 %v6983_v29  ;;  %v3508_v29 = vld [vmem:[#allocation4 + $0x1700] sm:$0xff] }
 0xdaa   : > { %6956 = vmatprep.subr.bf16.mxu0 %v6955_v35  ;;  %6988 = vmatprep.subr.bf16.mxu1 %v6987_v4  ;;  %v6995_v34 = vpack.c.bf16 %v3508_v29, %v3505_v23  ;;  %v3535_v23 = vld [vmem:[#allocation4 + $0x17d8] sm:$0xff]  ;;  %v3534_v29 = vld [vmem:[#allocation4 + $0x17d0] sm:$0xff] }
 0xdad   : > { %6958 = vmatpush1.bf16.msra.mxu0 %v6957_v40  ;;  %6990 = vmatpush3.bf16.msra.mxu1 %v6987_v4  ;;  %v3504_v40 = vld [vmem:[#allocation4 + $0x16e0] sm:$0xff]  ;;  %v7027_v4 = vpack.c.bf16 %v3509_v37, %v3506_v32  ;;  %v3537_v32 = vld [vmem:[#allocation4 + $0x17e8] sm:$0xff] }
 0xdae   : > { %6992 = vmatprep.subr.bf16.mxu0 %v6991_v45  ;;  %7024 = vmatprep.subr.bf16.mxu1 %v7023_v48  ;;  %v3512_v45 = vld [vmem:[#allocation4 + $0x1720] sm:$0xff]  ;;  %v6997_v28 = vpack.c.bf16 %v3507_v41, %v3504_v40 }
 0xdaf   : > { %v3536_v37 = vld [vmem:[#allocation4 + $0x17e0] sm:$0xff] }
 0xdb0   : > { %v3544_v40 = vld [vmem:[#allocation4 + $0x1820] sm:$0xff] }
 0xe63   : > { %v3170_v49 = vpop.f32.mrb[38].mxu1  ;;  %v5446_v50 = vpop.f32.mrb[46].mxu0 }
 0xe64   : > { %v3172_v52 = vpop.f32.mrb[39].mxu1  ;;  %v5447_v53 = vpop.f32.mrb[47].mxu0  ;;  %v3257_v59 = vrot.slane %v3170_v49, 7  ;;  %v6999_v49 = vpack.c.bf16 %v3514_v33, %v3511_v43  ;;  %v3543_v43 = vld [vmem:[#allocation4 + $0x1818] sm:$0xff]  ;;  %v3542_v33 = vld [vmem:[#allocation4 + $0x1810] sm:$0xff] }
 0xe65   : > { %v5448_v54 = vadd.f32 %v5447_v53, %v5446_v50  ;;  %v3510_v50 = vld [vmem:[#allocation4 + $0x1710] sm:$0xff]  ;;  %v7031_v53 = vpack.c.bf16 %v3515_v11, %v3512_v45  ;;  %v3545_v11 = vld [vmem:[#allocation4 + $0x1828] sm:$0xff] }
 0xe67   : > { %v3248_v56 = vadd.f32 %v5448_v54, %v8020_v10  ;;  %v3176_v57 = vpop.f32.mrb[40].mxu1  ;;  %v5449_v58 = vpop.f32.mrb[48].mxu0  ;;  %v3517_v54 = vld [vmem:[#allocation4 + $0x1748] sm:$0xff] }
 0xe68   : > { %v3258_v60 = vrot.slane %v3176_v57, 7  ;;  %v3178_v61 = vpop.f32.mrb[41].mxu1  ;;  %v5450_v62 = vpop.f32.mrb[49].mxu0  ;;  %v3518_v57 = vld [vmem:[#allocation4 + $0x1750] sm:$0xff] }
 0xe69   : > { %v5451_v63 = vadd.f32 %v5450_v62, %v5449_v58  ;;  %v3263_v13 = vrot.slane %v3248_v56, 1  ;;  %v3520_v56 = vld [vmem:[#allocation4 + $0x1760] sm:$0xff]  ;;  %v3521_v58 = vld [vmem:[#allocation4 + $0x1768] sm:$0xff] }
 0xe6a   : > { %v3260_v1 = vsel %vm444_vm2, %v3258_v60, %v3257_v59  ;;  %v3259_v2 = vsel %vm444_vm2, %v3257_v59, %v3258_v60  ;;  %v3516_v60 = vld [vmem:[#allocation4 + $0x1740] sm:$0xff]  ;;  %v7035_v62 = vpack.c.bf16 %v3521_v58, %v3518_v57 }
 0xe6b   : > { %v3261_v6 = vsel %vm7881_vm9, %v3260_v1, 0.0  ;;  %v3262_v36 = vsel %vm7885_vm10, %v3259_v2, 0.0  ;;  %v3253_v10 = vadd.f32 %v8018_v9, %v5451_v63  ;;  %v3498_v9 = vld [vmem:[#allocation4 + $0x16b0] sm:$0xff]  ;;  %v3523_v1 = vld [vmem:[#allocation4 + $0x1778] sm:$0xff] }
 0xe6c   : > { %v3269_v8 = vadd.f32 %v3261_v6, %v3172_v52  ;;  %v3270_v3 = vadd.f32 %v3262_v36, %v3178_v61  ;;  %v6993_v39 = vpack.c.bf16 %v3501_v22, %v3498_v9  ;;  %v3513_v52 = vld [vmem:[#allocation4 + $0x1728] sm:$0xff]  ;;  %v3519_v61 = vld [vmem:[#allocation4 + $0x1758] sm:$0xff]  ;;  %v3526_v2 = vld [vmem:[#allocation4 + $0x1790] sm:$0xff] }
 0xe6d   : > { %v3264_v14 = vrot.slane %v3253_v10, 1  ;;  %v7001_v59 = vpack.c.bf16 %v3513_v52, %v3510_v50  ;;  %v7005_v63 = vpack.c.bf16 %v3519_v61, %v3516_v60  ;;  %v7007_v6 = vpack.c.bf16 %v3526_v2, %v3523_v1  ;;  %v3522_v36 = vld [vmem:[#allocation4 + $0x1770] sm:$0xff]  ;;  %v3525_v10 = vld [vmem:[#allocation4 + $0x1788] sm:$0xff] }
 0xe6e   : > { %v3533_v9 = vld [vmem:[#allocation4 + $0x17c8] sm:$0xff] }
 0xe6f   : > { %v3265_v16 = vsel %vm457_vm1, %v3263_v13, %v3264_v14  ;;  %v3266_v17 = vsel %vm457_vm1, %v3264_v14, %v3263_v13  ;;  %v3527_v13 = vld [vmem:[#allocation4 + $0x1798] sm:$0xff]  ;;  %v3726_v50 = vld [vmem:[#allocation4 + $0x18c8] sm:$0xff] }
 0xe70   : > { %v3267_v18 = vsel %vm7901_vm12, %v3265_v16, 0.0  ;;  %v3268_v19 = vsel %vm7897_vm11, %v3266_v17, 0.0  ;;  %v3529_v16 = vld [vmem:[#allocation4 + $0x17a8] sm:$0xff]  ;;  %v3532_v17 = vld [vmem:[#allocation4 + $0x17c0] sm:$0xff] }
 0xe71   : > { %v3271_v20 = vadd.f32 %v3269_v8, %v3267_v18  ;;  %v3272_v21 = vadd.f32 %v3270_v3, %v3268_v19  ;;  %v3524_v8 = vld [vmem:[#allocation4 + $0x1780] sm:$0xff]  ;;  %v7009_v3 = vpack.c.bf16 %v3525_v10, %v3522_v36  ;;  %v3531_v19 = vld [vmem:[#allocation4 + $0x17b8] sm:$0xff] }
 0xe72   : > { %v7039_v14 = vpack.c.bf16 %v3527_v13, %v3524_v8  ;;  %v3528_v18 = vld [vmem:[#allocation4 + $0x17a0] sm:$0xff] }
 0xe73   : > { %v3273_v26 = vadd.f32 %v3271_v20, %v3256_v31  ;;  %v3274_v27 = vadd.f32 %v3272_v21, %v3256_v31  ;;  %v7011_v31 = vpack.c.bf16 %v3532_v17, %v3529_v16  ;;  %v3530_v20 = vld [vmem:[#allocation4 + $0x17b0] sm:$0xff]  ;;  %v7013_v21 = vpack.c.bf16 %v3531_v19, %v3528_v18  ;;  %v3723_v18 = vld [vmem:[#allocation4 + $0x18a8] sm:$0xff]  ;;  %v3725_v19 = vld [vmem:[#allocation4 + $0x18c0] sm:$0xff] }
 0xe74   : > { %v7043_v22 = vpack.c.bf16 %v3533_v9, %v3530_v20  ;;  %v3728_v9 = vld [vmem:[#allocation4 + $0x18e0] sm:$0xff] }
 0xe75   : > { %v3275_v35 = vmax.f32 %v3273_v26, 0.0  ;;  %v3276_v38 = vmax.f32 %v3274_v27, 0.0  ;;  %v3538_v26 = vld [vmem:[#allocation4 + $0x17f0] sm:$0xff] }
 0xe76   : > { %v7015_v27 = vpack.c.bf16 %v3538_v26, %v3535_v23 }
 0xe77   : > { %3390 = vmatmul.mubr.f32.vlgmr.msra.gmra.mrb[50].mxu0 %v3275_v35  ;;  %6034 = vmatprep.mubr.f32.mxu1 %v3275_v35  ;;  %v7017_v35 = vpack.c.bf16 %v3537_v32, %v3534_v29  ;;  %v3727_v32 = vld [vmem:[#allocation4 + $0x18d8] sm:$0xff] }
 0xe78   : > { %6035 = vmatmul.mubr.f32.vlgmr.msra.gmra.mrb[42].mxu1 %v3276_v38  ;;  %3395 = vmatprep.mubr.f32.mxu0 %v7584_v0 }
 0xe79   : > { %6994 = vmatpush1.bf16.msra.mxu0 %v6993_v39  ;;  %7026 = vmatpush3.bf16.msra.mxu1 %v7023_v48  ;;  %v7003_v48 = vpack.c.bf16 %v3520_v56, %v3517_v54 }
 0xe7a   : > { %6996 = vmatprep.subr.bf16.mxu0 %v6995_v34  ;;  %7028 = vmatprep.subr.bf16.mxu1 %v7027_v4  ;;  %v3541_v34 = vld [vmem:[#allocation4 + $0x1808] sm:$0xff] }
 0xe7b   : > { %3396 = vmatmul.mubr.f32.gmra.mrb[52].mxu0 %v3276_v38  ;;  %v3539_v38 = vld [vmem:[#allocation4 + $0x17f8] sm:$0xff]  ;;  %v7019_v41 = vpack.c.bf16 %v3544_v40, %v3541_v34  ;;  %v3731_v40 = vld [vmem:[#allocation4 + $0x1908] sm:$0xff] }
 0xe7c   : > { %3610 = vmatprep.mubr.f32.mxu0 %v7584_v0  ;;  %v7047_v39 = vpack.c.bf16 %v3539_v38, %v3536_v37  ;;  %v3729_v37 = vld [vmem:[#allocation4 + $0x18f0] sm:$0xff]  ;;  %v3734_v38 = vld [vmem:[#allocation4 + $0x1928] sm:$0xff] }
 0xe7d   : > { %6998 = vmatpush1.bf16.msra.mxu0 %v6997_v28  ;;  %7030 = vmatpush3.bf16.msra.mxu1 %v7027_v4  ;;  %v3540_v4 = vld [vmem:[#allocation4 + $0x1800] sm:$0xff]  ;;  %v7051_v28 = vpack.c.bf16 %v3545_v11, %v3542_v33  ;;  %v3735_v11 = vld [vmem:[#allocation4 + $0x1938] sm:$0xff] }
 0xe7e   : > { %7000 = vmatprep.subr.bf16.mxu0 %v6999_v49  ;;  %7032 = vmatprep.subr.bf16.mxu1 %v7031_v53  ;;  %v7021_v45 = vpack.c.bf16 %v3543_v43, %v3540_v4  ;;  %v3724_v49 = vld [vmem:[#allocation4 + $0x18b0] sm:$0xff]  ;;  %v3736_v4 = vld [vmem:[#allocation4 + $0x1940] sm:$0xff]  ;;  %v3738_v43 = vld [vmem:[#allocation4 + $0x1958] sm:$0xff] }
 0xe7f   : > { %v7055_v52 = vpack.c.bf16 %v3726_v50, %v3724_v49  ;;  %v3740_v50 = vld [vmem:[#allocation4 + $0x1970] sm:$0xff] }
 0xe81   : > { %7002 = vmatpush1.bf16.msra.mxu0 %v7001_v59  ;;  %7034 = vmatpush3.bf16.msra.mxu1 %v7031_v53 }
 0xe82   : > { %7004 = vmatprep.subr.bf16.mxu0 %v7003_v48  ;;  %7036 = vmatprep.subr.bf16.mxu1 %v7035_v62 }
 0xe85   : > { %7006 = vmatpush1.bf16.msra.mxu0 %v7005_v63  ;;  %7038 = vmatpush3.bf16.msra.mxu1 %v7035_v62 }
 0xe86   : > { %7008 = vmatprep.subr.bf16.mxu0 %v7007_v6  ;;  %7040 = vmatprep.subr.bf16.mxu1 %v7039_v14 }
 0xe89   : > { %7010 = vmatpush1.bf16.msra.mxu0 %v7009_v3  ;;  %7042 = vmatpush3.bf16.msra.mxu1 %v7039_v14  ;;  %v3477_v14 = vld [vmem:[#allocation4 + $0x1698] ss:$0 sm:$0xff] }
 0xe8a   : > { %7012 = vmatprep.subr.bf16.mxu0 %v7011_v31  ;;  %7044 = vmatprep.subr.bf16.mxu1 %v7043_v22 }
 0xe8d   : > { %7014 = vmatpush1.bf16.msra.mxu0 %v7013_v21  ;;  %7046 = vmatpush3.bf16.msra.mxu1 %v7043_v22  ;;  %v3730_v22 = vld [vmem:[#allocation4 + $0x18f8] sm:$0xff] }
 0xe8e   : > { %7016 = vmatprep.subr.bf16.mxu0 %v7015_v27  ;;  %7048 = vmatprep.subr.bf16.mxu1 %v7047_v39  ;;  %v7057_v27 = vpack.c.bf16 %v3725_v19, %v3723_v18  ;;  %v7059_v29 = vpack.c.bf16 %v3730_v22, %v3728_v9  ;;  %v4034_v18 = vld [vmem:[#allocation4 + $0x1d50] sm:$0xff] }
 0xe91   : > { %7018 = vmatpush1.bf16.msra.mxu0 %v7017_v35  ;;  %7050 = vmatpush3.bf16.msra.mxu1 %v7047_v39  ;;  %v3732_v35 = vld [vmem:[#allocation4 + $0x1910] sm:$0xff]  ;;  %v7061_v39 = vpack.c.bf16 %v3729_v37, %v3727_v32 }
 0xe92   : > { %7020 = vmatprep.subr.bf16.mxu0 %v7019_v41  ;;  %7052 = vmatprep.subr.bf16.mxu1 %v7051_v28  ;;  %v7063_v34 = vpack.c.bf16 %v3734_v38, %v3732_v35  ;;  %v3733_v41 = vld [vmem:[#allocation4 + $0x1920] sm:$0xff] }
 0xe93   : > { %v7065_v33 = vpack.c.bf16 %v3733_v41, %v3731_v40 }
 0xe95   : > { %7022 = vmatpush1.bf16.msra.mxu0 %v7021_v45  ;;  %7054 = vmatpush3.bf16.msra.mxu1 %v7051_v28  ;;  %v7067_v45 = vpack.c.bf16 %v3738_v43, %v3736_v4  ;;  %v3737_v28 = vld [vmem:[#allocation4 + $0x1950] sm:$0xff] }
 0xe96   : > { %7056 = vmatprep.subr.bf16.mxu0 %v7055_v52  ;;  %v7069_v49 = vpack.c.bf16 %v3737_v28, %v3735_v11  ;;  %v3742_v52 = vld [vmem:[#allocation4 + $0x1988] sm:$0xff] }
 0xf4a   : > { %v3391_v53 = vpop.f32.mrb[50].mxu0 }
 0xf4b   : > { %v3393_v54 = vpop.f32.mrb[51].mxu0  ;;  %v6036_v56 = vpop.f32.mrb[42].mxu1  ;;  %v3478_v60 = vrot.slane %v3391_v53, 7  ;;  %v7071_v53 = vpack.c.bf16 %v3742_v52, %v3740_v50  ;;  %v4037_v50 = vld [vmem:[#allocation4 + $0x1d68] sm:$0xff]  ;;  %v4040_v52 = vld [vmem:[#allocation4 + $0x1d80] sm:$0xff] }
 0xf4c   : > { %v3485_v57 = vrot.slane %v6036_v56, 1  ;;  %v3468_v58 = vpop.f32.mrb[43].mxu1  ;;  %v3741_v56 = vld [vmem:[#allocation4 + $0x1980] sm:$0xff]  ;;  %v7127_v12 = vpack.c.bf16 %v4040_v52, %v4037_v50  ;;  %v4013_v52 = vld [vmem:[#allocation4 + $0x1ca8] sm:$0xff] }
 0xf4d   : > { %v3484_v59 = vrot.slane %v3468_v58, 1  ;;  %v3744_v58 = vld [vmem:[#allocation4 + $0x19a0] sm:$0xff] }
 0xf4e   : > { %v3397_v48 = vpop.f32.mrb[52].mxu0 }
 0xf4f   : > { %v3486_v61 = vsel %vm457_vm1, %v3484_v59, %v3485_v57  ;;  %v3479_v62 = vrot.slane %v3397_v48, 7  ;;  %v3399_v63 = vpop.f32.mrb[53].mxu0  ;;  %v3487_v1 = vsel %vm457_vm1, %v3485_v57, %v3484_v59  ;;  %v3746_v59 = vld [vmem:[#allocation4 + $0x19b8] sm:$0xff] }
 0xf50   : > { %v3488_v13 = vsel %vm7901_vm12, %v3486_v61, 0.0  ;;  %v3489_v16 = vsel %vm7897_vm11, %v3487_v1, 0.0  ;;  %v7075_v48 = vpack.c.bf16 %v3746_v59, %v3744_v58  ;;  %v3745_v61 = vld [vmem:[#allocation4 + $0x19b0] sm:$0xff]  ;;  %v3750_v1 = vld [vmem:[#allocation4 + $0x19e8] sm:$0xff] }
 0xf51   : > { %v3481_v2 = vsel %vm444_vm2, %v3479_v62, %v3478_v60  ;;  %v3480_v6 = vsel %vm444_vm2, %v3478_v60, %v3479_v62  ;;  %v3743_v60 = vld [vmem:[#allocation4 + $0x1998] sm:$0xff]  ;;  %v4049_v59 = vld [vmem:[#allocation4 + $0x1dc8] sm:$0xff] }
 0xf52   : > { %v3482_v36 = vsel %vm7881_vm9, %v3481_v2, 0.0  ;;  %v3483_v10 = vsel %vm7885_vm10, %v3480_v6, 0.0  ;;  %v7077_v62 = vpack.c.bf16 %v3745_v61, %v3743_v60  ;;  %v3747_v6 = vld [vmem:[#allocation4 + $0x19c8] sm:$0xff]  ;;  %v4055_v60 = vld [vmem:[#allocation4 + $0x1df8] sm:$0xff]  ;;  %v4058_v61 = vld [vmem:[#allocation4 + $0x1e10] sm:$0xff] }
 0xf53   : > { %v3490_v8 = vadd.f32 %v3482_v36, %v3393_v54  ;;  %v3491_v3 = vadd.f32 %v3483_v10, %v3399_v63  ;;  %v3739_v54 = vld [vmem:[#allocation4 + $0x1968] sm:$0xff]  ;;  %v3748_v63 = vld [vmem:[#allocation4 + $0x19d0] sm:$0xff]  ;;  %v3749_v36 = vld [vmem:[#allocation4 + $0x19e0] sm:$0xff] }
 0xf54   : > { %v7073_v57 = vpack.c.bf16 %v3741_v56, %v3739_v54  ;;  %v7079_v2 = vpack.c.bf16 %v3750_v1, %v3748_v63  ;;  %v7081_v10 = vpack.c.bf16 %v3749_v36, %v3747_v6  ;;  %v4061_v63 = vld [vmem:[#allocation4 + $0x1e28] sm:$0xff]  ;;  %v4064_v1 = vld [vmem:[#allocation4 + $0x1e40] sm:$0xff]  ;;  %v4067_v6 = vld [vmem:[#allocation4 + $0x1e58] sm:$0xff] }
 0xf55   : > { %v3492_v17 = vadd.f32 %v3490_v8, %v3488_v13  ;;  %v3493_v31 = vadd.f32 %v3491_v3, %v3489_v16  ;;  %v3752_v8 = vld [vmem:[#allocation4 + $0x1a00] sm:$0xff]  ;;  %v3754_v3 = vld [vmem:[#allocation4 + $0x1a18] sm:$0xff]  ;;  %v3753_v16 = vld [vmem:[#allocation4 + $0x1a10] sm:$0xff] }
 0xf56   : > { %v7083_v13 = vpack.c.bf16 %v3754_v3, %v3752_v8  ;;  %v4070_v36 = vld [vmem:[#allocation4 + $0x1e70] sm:$0xff]  ;;  %v4073_v8 = vld [vmem:[#allocation4 + $0x1e88] sm:$0xff]  ;;  %v4076_v3 = vld [vmem:[#allocation4 + $0x1ea0] sm:$0xff] }
 0xf57   : > { %v3494_v20 = vadd.f32 %v3492_v17, %v3477_v14  ;;  %v3495_v21 = vadd.f32 %v3493_v31, %v3477_v14  ;;  %v3751_v14 = vld [vmem:[#allocation4 + $0x19f8] sm:$0xff] }
 0xf58   : > { %v7085_v17 = vpack.c.bf16 %v3753_v16, %v3751_v14  ;;  %v4031_v31 = vld [vmem:[#allocation4 + $0x1d38] sm:$0xff]  ;;  %v3986_v16 = vld [vmem:[#allocation4 + $0x1bd0] sm:$0xff] }
 0xf59   : > { %v3496_v23 = vmax.f32 %v3494_v20, 0.0  ;;  %v3497_v26 = vmax.f32 %v3495_v21, 0.0  ;;  %v7123_v19 = vpack.c.bf16 %v4034_v18, %v4031_v31  ;;  %v3983_v14 = vld [vmem:[#allocation4 + $0x1bb8] sm:$0xff]  ;;  %v3938_v18 = vld [vmem:[#allocation4 + $0x1a50] sm:$0xff] }
 0xf5a   : > { %v3935_v31 = vld [vmem:[#allocation4 + $0x1a38] sm:$0xff] }
 0xf5b   : > { %3611 = vmatmul.mubr.f32.vlgmr.msra.gmra.mrb[54].mxu0 %v3496_v23  ;;  %6069 = vmatprep.mubr.f32.mxu1 %v3496_v23 }
 0xf5c   : > { %6070 = vmatmul.mubr.f32.vlgmr.msra.gmra.mrb[44].mxu1 %v3497_v26  ;;  %3616 = vmatprep.mubr.f32.mxu0 %v7584_v0 }
 0xf5d   : > { %7058 = vmatpush1.bf16.msra.mxu0 %v7057_v27  ;;  %3908 = vmatprep.mubr.f32.mxu1 %v7584_v0 }
 0xf5e   : > { %7060 = vmatprep.subr.bf16.mxu0 %v7059_v29 }
 0xf5f   : > { %3617 = vmatmul.mubr.f32.gmra.mrb[56].mxu0 %v3497_v26 }
 0xf60   : > { %3819 = vmatprep.mubr.f32.mxu0 %v7584_v0 }
 0xf61   : > { %7062 = vmatpush1.bf16.msra.mxu0 %v7061_v39 }
 0xf62   : > { %7064 = vmatprep.subr.bf16.mxu0 %v7063_v34 }
 0xf65   : > { %7066 = vmatpush1.bf16.msra.mxu0 %v7065_v33 }
 0xf66   : > { %7068 = vmatprep.subr.bf16.mxu0 %v7067_v45  ;;  %v3698_v45 = vld [vmem:[#allocation4 + $0x1830] ss:$0 sm:$0xff] }
 0xf69   : > { %7070 = vmatpush1.bf16.msra.mxu0 %v7069_v49 }
 0xf6a   : > { %7072 = vmatprep.subr.bf16.mxu0 %v7071_v53 }
 0xf6d   : > { %7074 = vmatpush1.bf16.msra.mxu0 %v7073_v57  ;;  %v4043_v57 = vld [vmem:[#allocation4 + $0x1d98] sm:$0xff] }
 0xf6e   : > { %7076 = vmatprep.subr.bf16.mxu0 %v7075_v48  ;;  %v7131_v58 = vpack.c.bf16 %v4046_v15, %v4043_v57  ;;  %v7135_v48 = vpack.c.bf16 %v4052_v24, %v4049_v59  ;;  %v4019_v15 = vld [vmem:[#allocation4 + $0x1cd8] sm:$0xff]  ;;  %v3974_v24 = vld [vmem:[#allocation4 + $0x1b70] sm:$0xff] }
 0xf6f   : > { %v3971_v59 = vld [vmem:[#allocation4 + $0x1b58] sm:$0xff] }
 0xf71   : > { %7078 = vmatpush1.bf16.msra.mxu0 %v7077_v62  ;;  %v7139_v62 = vpack.c.bf16 %v4058_v61, %v4055_v60  ;;  %v4025_v60 = vld [vmem:[#allocation4 + $0x1d08] sm:$0xff]  ;;  %v4028_v61 = vld [vmem:[#allocation4 + $0x1d20] sm:$0xff] }
 0xf72   : > { %7080 = vmatprep.subr.bf16.mxu0 %v7079_v2  ;;  %v7143_v2 = vpack.c.bf16 %v4064_v1, %v4061_v63 }
 0xf75   : > { %7082 = vmatpush1.bf16.msra.mxu0 %v7081_v10  ;;  %v7147_v10 = vpack.c.bf16 %v4070_v36, %v4067_v6  ;;  %v4033_v6 = vld [vmem:[#allocation4 + $0x1d48] sm:$0xff] }
 0xf76   : > { %7084 = vmatprep.subr.bf16.mxu0 %v7083_v13  ;;  %v7151_v13 = vpack.c.bf16 %v4076_v3, %v4073_v8 }
 0xf79   : > { %7086 = vmatpush1.bf16.msra.mxu0 %v7085_v17  ;;  %v7219_v17 = vpack.c.bf16 %v3986_v16, %v3983_v14  ;;  %v4029_v14 = vld [vmem:[#allocation4 + $0x1d28] sm:$0xff]  ;;  %v4032_v16 = vld [vmem:[#allocation4 + $0x1d40] sm:$0xff] }
 0xf7a   : > { %7124 = vmatprep.subr.bf16.mxu0 %v7123_v19 }
0x102e   : > { %v3612_v20 = vpop.f32.mrb[54].mxu0 }
0x102f   : > { %v3614_v21 = vpop.f32.mrb[55].mxu0  ;;  %v6071_v9 = vpop.f32.mrb[44].mxu1  ;;  %v3699_v29 = vrot.slane %v3612_v20, 7  ;;  %v3989_v20 = vld [vmem:[#allocation4 + $0x1be8] sm:$0xff] }
0x1030   : > { %v3706_v22 = vrot.slane %v6071_v9, 1  ;;  %v3689_v23 = vpop.f32.mrb[45].mxu1 }
0x1031   : > { %v3705_v26 = vrot.slane %v3689_v23, 1  ;;  %v3944_v23 = vld [vmem:[#allocation4 + $0x1a80] sm:$0xff] }
0x1032   : > { %v3618_v27 = vpop.f32.mrb[56].mxu0 }
0x1033   : > { %v3707_v32 = vsel %vm457_vm1, %v3705_v26, %v3706_v22  ;;  %v3700_v37 = vrot.slane %v3618_v27, 7  ;;  %v3620_v35 = vpop.f32.mrb[57].mxu0  ;;  %v3708_v38 = vsel %vm457_vm1, %v3706_v22, %v3705_v26  ;;  %v3941_v22 = vld [vmem:[#allocation4 + $0x1a68] sm:$0xff]  ;;  %v3995_v27 = vld [vmem:[#allocation4 + $0x1c18] sm:$0xff] }
0x1034   : > { %v3709_v33 = vsel %vm7901_vm12, %v3707_v32, 0.0  ;;  %v3710_v11 = vsel %vm7897_vm11, %v3708_v38, 0.0  ;;  %v7225_v26 = vpack.c.bf16 %v3944_v23, %v3941_v22  ;;  %v4042_v22 = vld [vmem:[#allocation4 + $0x1d90] sm:$0xff]  ;;  %v4045_v23 = vld [vmem:[#allocation4 + $0x1da8] sm:$0xff] }
0x1035   : > { %v3702_v39 = vsel %vm444_vm2, %v3700_v37, %v3699_v29  ;;  %v3701_v34 = vsel %vm444_vm2, %v3699_v29, %v3700_v37  ;;  %v3998_v29 = vld [vmem:[#allocation4 + $0x1c30] sm:$0xff]  ;;  %v3947_v37 = vld [vmem:[#allocation4 + $0x1a98] sm:$0xff] }
0x1036   : > { %v3703_v40 = vsel %vm7881_vm9, %v3702_v39, 0.0  ;;  %v3704_v41 = vsel %vm7885_vm10, %v3701_v34, 0.0  ;;  %v7227_v32 = vpack.c.bf16 %v3998_v29, %v3995_v27  ;;  %v4001_v39 = vld [vmem:[#allocation4 + $0x1c48] sm:$0xff]  ;;  %v4004_v34 = vld [vmem:[#allocation4 + $0x1c60] sm:$0xff]  ;;  %v7099_v29 = vpack.c.bf16 %v4045_v23, %v4042_v22  ;;  %v3942_v22 = vld [vmem:[#allocation4 + $0x1a70] sm:$0xff] }
0x1037   : > { %v3711_v4 = vadd.f32 %v3703_v40, %v3614_v21  ;;  %v3712_v43 = vadd.f32 %v3704_v41, %v3620_v35  ;;  %v3992_v21 = vld [vmem:[#allocation4 + $0x1c00] sm:$0xff]  ;;  %v3950_v35 = vld [vmem:[#allocation4 + $0x1ab0] sm:$0xff]  ;;  %v7231_v40 = vpack.c.bf16 %v4004_v34, %v4001_v39  ;;  %v3953_v41 = vld [vmem:[#allocation4 + $0x1ac8] sm:$0xff] }
0x1038   : > { %v7223_v9 = vpack.c.bf16 %v3992_v21, %v3989_v20  ;;  %v7229_v38 = vpack.c.bf16 %v3950_v35, %v3947_v37  ;;  %v4035_v21 = vld [vmem:[#allocation4 + $0x1d58] sm:$0xff]  ;;  %v4044_v37 = vld [vmem:[#allocation4 + $0x1da0] sm:$0xff]  ;;  %v3946_v23 = vld [vmem:[#allocation4 + $0x1a90] sm:$0xff] }
0x1039   : > { %v3713_v28 = vadd.f32 %v3711_v4, %v3709_v33  ;;  %v3714_v49 = vadd.f32 %v3712_v43, %v3710_v11  ;;  %v3956_v4 = vld [vmem:[#allocation4 + $0x1ae0] sm:$0xff]  ;;  %v4007_v33 = vld [vmem:[#allocation4 + $0x1c78] sm:$0xff] }
0x103a   : > { %v7233_v43 = vpack.c.bf16 %v3956_v4, %v3953_v41  ;;  %v4048_v35 = vld [vmem:[#allocation4 + $0x1dc0] sm:$0xff]  ;;  %v3721_v39 = vld [vmem:[#allocation4 + $0x1878] sm:$0xff]  ;;  %v4050_v4 = vld [vmem:[#allocation4 + $0x1dd0] sm:$0xff] }
0x103b   : > { %v3715_v53 = vadd.f32 %v3713_v28, %v3698_v45  ;;  %v3716_v56 = vadd.f32 %v3714_v49, %v3698_v45  ;;  %v4010_v45 = vld [vmem:[#allocation4 + $0x1c90] sm:$0xff]  ;;  %v3959_v28 = vld [vmem:[#allocation4 + $0x1af8] sm:$0xff] }
0x103c   : > { %v7235_v11 = vpack.c.bf16 %v4010_v45, %v4007_v33  ;;  %v3962_v49 = vld [vmem:[#allocation4 + $0x1b10] sm:$0xff]  ;;  %v4047_v41 = vld [vmem:[#allocation4 + $0x1db8] sm:$0xff]  ;;  %v4057_v33 = vld [vmem:[#allocation4 + $0x1e08] sm:$0xff] }
0x103d   : > { %v3717_v54 = vmax.f32 %v3715_v53, 0.0  ;;  %v3718_v25 = vmax.f32 %v3716_v56, 0.0  ;;  %v7237_v50 = vpack.c.bf16 %v3962_v49, %v3959_v28  ;;  %v4016_v53 = vld [vmem:[#allocation4 + $0x1cc0] sm:$0xff]  ;;  %v3722_v45 = vld [vmem:[#allocation4 + $0x1890] sm:$0xff]  ;;  %v4053_v49 = vld [vmem:[#allocation4 + $0x1de8] sm:$0xff] }
0x103e   : > { %v3968_v56 = vld [vmem:[#allocation4 + $0x1b40] sm:$0xff] }
0x103f   : > { %3820 = vmatmul.mubr.f32.vlgmr.msra.gmra.mrb[58].mxu0 %v3717_v54  ;;  %v7239_v54 = vpack.c.bf16 %v4016_v53, %v4013_v52  ;;  %v4060_v52 = vld [vmem:[#allocation4 + $0x1e20] sm:$0xff]  ;;  %v4063_v53 = vld [vmem:[#allocation4 + $0x1e38] sm:$0xff] }
0x1040   : > { %7126 = vmatpush3.bf16.msra.mxu0 %v7123_v19  ;;  %3825 = vmatprep.mubr.f32.mxu0 %v7584_v0  ;;  %v7221_v19 = vpack.c.bf16 %v3938_v18, %v3935_v31  ;;  %v4039_v31 = vld [vmem:[#allocation4 + $0x1d78] sm:$0xff]  ;;  %v3719_v18 = vld [vmem:[#allocation4 + $0x1848] sm:$0xff] }
0x1041   : > { %7128 = vmatprep.subr.bf16.mxu0 %v7127_v12 }
0x1043   : > { %3826 = vmatmul.mubr.f32.gmra.mrb[60].mxu0 %v3718_v25  ;;  %v4022_v25 = vld [vmem:[#allocation4 + $0x1cf0] sm:$0xff] }
0x1044   : > { %7130 = vmatpush3.bf16.msra.mxu0 %v7127_v12  ;;  %6104 = vmatprep.mubr.f32.mxu0 %v7858_v44  ;;  %v3965_v12 = vld [vmem:[#allocation4 + $0x1b28] sm:$0xff] }
0x1045   : > { %7132 = vmatprep.subr.bf16.mxu0 %v7131_v58  ;;  %v7241_v57 = vpack.c.bf16 %v3968_v56, %v3965_v12  ;;  %v7111_v12 = vpack.c.bf16 %v4063_v53, %v4060_v52  ;;  %v4059_v56 = vld [vmem:[#allocation4 + $0x1e18] sm:$0xff]  ;;  %v3966_v53 = vld [vmem:[#allocation4 + $0x1b30] sm:$0xff] }
0x1046   : > { %v3963_v52 = vld [vmem:[#allocation4 + $0x1b18] sm:$0xff] }
0x1048   : > { %7134 = vmatpush3.bf16.msra.mxu0 %v7131_v58  ;;  %v7243_v58 = vpack.c.bf16 %v4022_v25, %v4019_v15  ;;  %v4066_v15 = vld [vmem:[#allocation4 + $0x1e50] sm:$0xff]  ;;  %v4069_v25 = vld [vmem:[#allocation4 + $0x1e68] sm:$0xff] }
0x1049   : > { %7136 = vmatprep.subr.bf16.mxu0 %v7135_v48 }
0x104c   : > { %7138 = vmatpush3.bf16.msra.mxu0 %v7135_v48  ;;  %v7245_v48 = vpack.c.bf16 %v3974_v24, %v3971_v59  ;;  %v7115_v59 = vpack.c.bf16 %v4069_v25, %v4066_v15  ;;  %v4065_v24 = vld [vmem:[#allocation4 + $0x1e48] sm:$0xff]  ;;  %v3972_v15 = vld [vmem:[#allocation4 + $0x1b60] sm:$0xff] }
0x104d   : > { %7140 = vmatprep.subr.bf16.mxu0 %v7139_v62  ;;  %v3976_v25 = vld [vmem:[#allocation4 + $0x1b80] sm:$0xff] }
0x1050   : > { %7142 = vmatpush3.bf16.msra.mxu0 %v7139_v62  ;;  %v7247_v62 = vpack.c.bf16 %v4028_v61, %v4025_v60  ;;  %v4072_v60 = vld [vmem:[#allocation4 + $0x1e80] sm:$0xff]  ;;  %v4075_v61 = vld [vmem:[#allocation4 + $0x1e98] sm:$0xff] }
0x1051   : > { %7144 = vmatprep.subr.bf16.mxu0 %v7143_v2 }
0x1054   : > { %7146 = vmatpush3.bf16.msra.mxu0 %v7143_v2  ;;  %v4030_v2 = vld [vmem:[#allocation4 + $0x1d30] sm:$0xff] }
0x1055   : > { %7148 = vmatprep.subr.bf16.mxu0 %v7147_v10 }
0x1058   : > { %7150 = vmatpush3.bf16.msra.mxu0 %v7147_v10 }
0x1059   : > { %7152 = vmatprep.subr.bf16.mxu0 %v7151_v13 }
0x105c   : > { %7154 = vmatpush3.bf16.msra.mxu0 %v7151_v13  ;;  %v7091_v13 = vpack.c.bf16 %v4033_v6, %v4030_v2  ;;  %v7119_v2 = vpack.c.bf16 %v4075_v61, %v4072_v60  ;;  %v4071_v6 = vld [vmem:[#allocation4 + $0x1e78] sm:$0xff]  ;;  %v3982_v60 = vld [vmem:[#allocation4 + $0x1bb0] sm:$0xff]  ;;  %v3985_v61 = vld [vmem:[#allocation4 + $0x1bc8] sm:$0xff] }
0x105d   : > { %7220 = vmatprep.subr.bf16.mxu0 %v7219_v17  ;;  %v4036_v17 = vld [vmem:[#allocation4 + $0x1d60] sm:$0xff] }
0x105e   : > { %v7095_v20 = vpack.c.bf16 %v4039_v31, %v4036_v17  ;;  %v3933_v17 = vld [vmem:[#allocation4 + $0x1a28] sm:$0xff]  ;;  %v3936_v31 = vld [vmem:[#allocation4 + $0x1a40] sm:$0xff] }
0x105f   : > { %6105 = vmatmul.mubr.f32.vlgmr.msra.gmra.mrb[62].mxu0 %v7860_v42 }
0x1060   : > { %6107 = vmatprep.mubr.f32.mxu0 %v7863_v46  ;;  %7222 = vmatpush3.bf16.msra.mxu0 %v7221_v19  ;;  %v7093_v19 = vpack.c.bf16 %v4032_v16, %v4029_v14 }
0x1061   : > { %7224 = vmatprep.subr.bf16.mxu0 %v7223_v9  ;;  %v4038_v9 = vld [vmem:[#allocation4 + $0x1d70] sm:$0xff] }
0x1062   : > { %v7097_v27 = vpack.c.bf16 %v4038_v9, %v4035_v21  ;;  %v3939_v9 = vld [vmem:[#allocation4 + $0x1a58] sm:$0xff] }
0x1063   : > { %6108 = vmatmul.mubr.f32.gmra.mrb[64].mxu0 %v7867_v47 }
0x1064   : > { %7226 = vmatpush3.bf16.msra.mxu0 %v7225_v26  ;;  %v3720_v26 = vld [vmem:[#allocation4 + $0x1860] sm:$0xff] }
0x1065   : > { %7228 = vmatprep.subr.bf16.mxu0 %v7227_v32  ;;  %v4041_v32 = vld [vmem:[#allocation4 + $0x1d88] sm:$0xff] }
0x1066   : > { %v7101_v34 = vpack.c.bf16 %v4044_v37, %v4041_v32  ;;  %v3945_v32 = vld [vmem:[#allocation4 + $0x1a88] sm:$0xff]  ;;  %v3948_v37 = vld [vmem:[#allocation4 + $0x1aa0] sm:$0xff] }
0x1068   : > { %7230 = vmatpush3.bf16.msra.mxu0 %v7229_v38  ;;  %v4051_v38 = vld [vmem:[#allocation4 + $0x1dd8] sm:$0xff] }
0x1069   : > { %7232 = vmatprep.subr.bf16.mxu0 %v7231_v40  ;;  %v7103_v40 = vpack.c.bf16 %v4051_v38, %v4048_v35  ;;  %v3952_v35 = vld [vmem:[#allocation4 + $0x1ac0] sm:$0xff]  ;;  %v3955_v38 = vld [vmem:[#allocation4 + $0x1ad8] sm:$0xff] }
0x106c   : > { %7234 = vmatpush3.bf16.msra.mxu0 %v7233_v43  ;;  %v4054_v43 = vld [vmem:[#allocation4 + $0x1df0] sm:$0xff] }
0x106d   : > { %7236 = vmatprep.subr.bf16.mxu0 %v7235_v11  ;;  %v7105_v11 = vpack.c.bf16 %v4050_v4, %v4047_v41  ;;  %v7107_v28 = vpack.c.bf16 %v4057_v33, %v4054_v43  ;;  %v3958_v41 = vld [vmem:[#allocation4 + $0x1af0] sm:$0xff]  ;;  %v3961_v4 = vld [vmem:[#allocation4 + $0x1b08] sm:$0xff] }
0x106e   : > { %v7171_v33 = vpack.c.bf16 %v3961_v4, %v3958_v41  ;;  %v4012_v41 = vld [vmem:[#allocation4 + $0x1ca0] sm:$0xff]  ;;  %v4015_v4 = vld [vmem:[#allocation4 + $0x1cb8] sm:$0xff] }
0x1070   : > { %7238 = vmatpush3.bf16.msra.mxu0 %v7237_v50  ;;  %v4056_v50 = vld [vmem:[#allocation4 + $0x1e00] sm:$0xff] }
0x1071   : > { %7240 = vmatprep.subr.bf16.mxu0 %v7239_v54  ;;  %v7109_v54 = vpack.c.bf16 %v4056_v50, %v4053_v49 }
0x1074   : > { %7242 = vmatpush3.bf16.msra.mxu0 %v7241_v57  ;;  %v4062_v57 = vld [vmem:[#allocation4 + $0x1e30] sm:$0xff] }
0x1075   : > { %7244 = vmatprep.subr.bf16.mxu0 %v7243_v58  ;;  %v7113_v58 = vpack.c.bf16 %v4062_v57, %v4059_v56  ;;  %v3969_v57 = vld [vmem:[#allocation4 + $0x1b48] sm:$0xff] }
0x1078   : > { %7246 = vmatpush3.bf16.msra.mxu0 %v7245_v48  ;;  %v4068_v48 = vld [vmem:[#allocation4 + $0x1e60] sm:$0xff] }
0x1079   : > { %7248 = vmatprep.subr.bf16.mxu0 %v7247_v62 }
0x1112   : > { %v3821_v63 = vpop.f32.mrb[58].mxu0 }
0x1113   : > { %v3823_v1 = vpop.f32.mrb[59].mxu0 }
0x1116   : > { %v3827_v36 = vpop.f32.mrb[60].mxu0 }
0x1117   : > { %v7089_v10 = vpack.c.bf16 %v3827_v36, %v3821_v63  ;;  %v3829_v8 = vpop.f32.mrb[61].mxu0  ;;  %v4074_v36 = vld [vmem:[#allocation4 + $0x1e90] sm:$0xff] }
0x1118   : > { %v7087_v3 = vpack.c.bf16 %v3829_v8, %v3823_v1  ;;  %v7117_v1 = vpack.c.bf16 %v4068_v48, %v4065_v24  ;;  %v3937_v8 = vld [vmem:[#allocation4 + $0x1a48] sm:$0xff]  ;;  %v7121_v14 = vpack.c.bf16 %v4074_v36, %v4071_v6  ;;  %v3975_v24 = vld [vmem:[#allocation4 + $0x1b78] sm:$0xff]  ;;  %v3978_v48 = vld [vmem:[#allocation4 + $0x1b90] sm:$0xff] }
0x1119   : > { %v3981_v6 = vld [vmem:[#allocation4 + $0x1ba8] sm:$0xff]  ;;  %v3984_v36 = vld [vmem:[#allocation4 + $0x1bc0] sm:$0xff] }
0x111a   : > { %7088 = vmatprep.subr.bf16.mxu1 %v7087_v3 }
0x111b   : > { %7090 = vmatpush1.bf16.msra.mxu1 %v7089_v10  ;;  %v3934_v10 = vld [vmem:[#allocation4 + $0x1a30] sm:$0xff] }
0x111c   : > { %7092 = vmatprep.subr.bf16.mxu1 %v7091_v13  ;;  %v7155_v16 = vpack.c.bf16 %v3937_v8, %v3934_v10  ;;  %v3988_v10 = vld [vmem:[#allocation4 + $0x1be0] sm:$0xff]  ;;  %v3991_v8 = vld [vmem:[#allocation4 + $0x1bf8] sm:$0xff] }
0x111e   : > { %5207 = vmatmul.mubr.msk.f32.vlgmr.msra.gmra.mrb[46].mxu1 %vm191_vm0, %v3719_v18  ;;  %v3940_v18 = vld [vmem:[#allocation4 + $0x1a60] sm:$0xff] }
0x111f   : > { %7094 = vmatpush1.bf16.msra.mxu1 %v7093_v19  ;;  %3914 = vmatprep.mubr.f32.mxu1 %v7584_v0  ;;  %v3943_v19 = vld [vmem:[#allocation4 + $0x1a78] sm:$0xff] }
0x1120   : > { %7096 = vmatprep.subr.bf16.mxu1 %v7095_v20  ;;  %v7157_v20 = vpack.c.bf16 %v3936_v31, %v3933_v17  ;;  %v7159_v21 = vpack.c.bf16 %v3943_v19, %v3940_v18  ;;  %v3987_v17 = vld [vmem:[#allocation4 + $0x1bd8] sm:$0xff]  ;;  %v3990_v31 = vld [vmem:[#allocation4 + $0x1bf0] sm:$0xff]  ;;  %v3997_v19 = vld [vmem:[#allocation4 + $0x1c28] sm:$0xff] }
0x1121   : > { %v3994_v18 = vld [vmem:[#allocation4 + $0x1c10] sm:$0xff] }
0x1122   : > { %5208 = vmatmul.mubr.msk.f32.gmra.mrb[48].mxu1 %vm191_vm0, %v3720_v26  ;;  %v3949_v26 = vld [vmem:[#allocation4 + $0x1aa8] sm:$0xff] }
0x1123   : > { %7098 = vmatpush1.bf16.msra.mxu1 %v7097_v27  ;;  %3920 = vmatprep.mubr.f32.mxu1 %v7584_v0  ;;  %v7161_v27 = vpack.c.bf16 %v3942_v22, %v3939_v9  ;;  %v3993_v9 = vld [vmem:[#allocation4 + $0x1c08] sm:$0xff]  ;;  %v3996_v22 = vld [vmem:[#allocation4 + $0x1c20] sm:$0xff] }
0x1124   : > { %7100 = vmatprep.subr.bf16.mxu1 %v7099_v29  ;;  %v7163_v29 = vpack.c.bf16 %v3949_v26, %v3946_v23  ;;  %v4000_v23 = vld [vmem:[#allocation4 + $0x1c40] sm:$0xff]  ;;  %v4003_v26 = vld [vmem:[#allocation4 + $0x1c58] sm:$0xff] }
0x1126   : > { %5209 = vmatmul.mubr.msk.f32.gmra.mrb[50].mxu1 %vm191_vm0, %v3721_v39  ;;  %v7165_v39 = vpack.c.bf16 %v3948_v37, %v3945_v32  ;;  %v3999_v32 = vld [vmem:[#allocation4 + $0x1c38] sm:$0xff]  ;;  %v4002_v37 = vld [vmem:[#allocation4 + $0x1c50] sm:$0xff] }
0x1127   : > { %7102 = vmatpush1.bf16.msra.mxu1 %v7101_v34  ;;  %3926 = vmatprep.mubr.f32.mxu1 %v7584_v0  ;;  %v7167_v34 = vpack.c.bf16 %v3955_v38, %v3952_v35  ;;  %v4006_v35 = vld [vmem:[#allocation4 + $0x1c70] sm:$0xff]  ;;  %v4009_v38 = vld [vmem:[#allocation4 + $0x1c88] sm:$0xff] }
0x1128   : > { %7104 = vmatprep.subr.bf16.mxu1 %v7103_v40  ;;  %v3951_v40 = vld [vmem:[#allocation4 + $0x1ab8] sm:$0xff] }
0x112a   : > { %5210 = vmatmul.mubr.msk.f32.gmra.mrb[52].mxu1 %vm191_vm0, %v3722_v45  ;;  %v3957_v45 = vld [vmem:[#allocation4 + $0x1ae8] sm:$0xff] }
0x112b   : > { %7106 = vmatpush1.bf16.msra.mxu1 %v7105_v11  ;;  %4141 = vmatprep.mubr.f32.mxu1 %v7584_v0  ;;  %v3964_v11 = vld [vmem:[#allocation4 + $0x1b20] sm:$0xff] }
0x112c   : > { %7108 = vmatprep.subr.bf16.mxu1 %v7107_v28  ;;  %v3967_v28 = vld [vmem:[#allocation4 + $0x1b38] sm:$0xff] }
0x112d   : > { %v7175_v50 = vpack.c.bf16 %v3967_v28, %v3964_v11  ;;  %v4018_v11 = vld [vmem:[#allocation4 + $0x1cd0] sm:$0xff]  ;;  %v4021_v28 = vld [vmem:[#allocation4 + $0x1ce8] sm:$0xff] }
0x112f   : > { %7110 = vmatpush1.bf16.msra.mxu1 %v7109_v54  ;;  %v3970_v54 = vld [vmem:[#allocation4 + $0x1b50] sm:$0xff] }
0x1130   : > { %7112 = vmatprep.subr.bf16.mxu1 %v7111_v12  ;;  %v7177_v12 = vpack.c.bf16 %v3966_v53, %v3963_v52  ;;  %v7211_v52 = vpack.c.bf16 %v4021_v28, %v4018_v11  ;;  %v4017_v53 = vld [vmem:[#allocation4 + $0x1cc8] sm:$0xff]  ;;  %v4484_v11 = vld [vmem:[#allocation4 + $0x1f50] sm:$0xff] }
0x1131   : > { %v4487_v28 = vld [vmem:[#allocation4 + $0x1f68] sm:$0xff] }
0x1132   : > { %v8094_v62 = vpop.f32.mrb[62].mxu0 }
0x1133   : > { %v8096_v63 = vpop.f32.mrb[63].mxu0  ;;  %7114 = vmatpush1.bf16.msra.mxu1 %v7113_v58  ;;  %v3979_v58 = vld [vmem:[#allocation4 + $0x1b98] sm:$0xff] }
0x1134   : > { %7116 = vmatprep.subr.bf16.mxu1 %v7115_v59  ;;  %v7181_v59 = vpack.c.bf16 %v3972_v15, %v3969_v57 }
0x1136   : > { %v8098_v3 = vpop.f32.mrb[64].mxu0 }
0x1137   : > { %v8100_v13 = vpop.f32.mrb[65].mxu0  ;;  %7118 = vmatpush1.bf16.msra.mxu1 %v7117_v1  ;;  %v7185_v1 = vpack.c.bf16 %v3978_v48, %v3975_v24  ;;  %v4467_v24 = vld [vmem:[#allocation4 + $0x1ec8] sm:$0xff]  ;;  %v4470_v48 = vld [vmem:[#allocation4 + $0x1ee0] sm:$0xff] }
0x1138   : > { %7120 = vmatprep.subr.bf16.mxu1 %v7119_v2  ;;  %v7187_v2 = vpack.c.bf16 %v3985_v61, %v3982_v60  ;;  %v7251_v60 = vpack.c.bf16 %v4470_v48, %v4467_v24  ;;  %v4468_v61 = vld [vmem:[#allocation4 + $0x1ed0] sm:$0xff] }
0x1139   : > { %v4500_v24 = vld [vmem:[#allocation4 + $0x1fd0] sm:$0xff] }
0x113b   : > { %7122 = vmatpush1.bf16.msra.mxu1 %v7121_v14  ;;  %v7189_v14 = vpack.c.bf16 %v3984_v36, %v3981_v6  ;;  %v4466_v6 = vld [vmem:[#allocation4 + $0x1ec0] sm:$0xff]  ;;  %v4469_v36 = vld [vmem:[#allocation4 + $0x1ed8] sm:$0xff] }
0x113c   : > { %7156 = vmatprep.subr.bf16.mxu1 %v7155_v16  ;;  %v7191_v16 = vpack.c.bf16 %v3991_v8, %v3988_v10  ;;  %v4473_v10 = vld [vmem:[#allocation4 + $0x1ef8] sm:$0xff]  ;;  %v4476_v8 = vld [vmem:[#allocation4 + $0x1f10] sm:$0xff] }
0x113e   : > { %4142 = vmatmul.mubr.f32.vlgmr.msra.gmra.mrb[54].mxu1 %v7858_v44  ;;  %v3954_v44 = vld [vmem:[#allocation4 + $0x1ad0] sm:$0xff] }
0x113f   : > { %4147 = vmatprep.mubr.f32.mxu1 %v7584_v0  ;;  %7158 = vmatpush1.bf16.msra.mxu1 %v7157_v20  ;;  %v7169_v43 = vpack.c.bf16 %v3954_v44, %v3951_v40  ;;  %v7193_v20 = vpack.c.bf16 %v3990_v31, %v3987_v17  ;;  %v4005_v40 = vld [vmem:[#allocation4 + $0x1c68] sm:$0xff]  ;;  %v4008_v44 = vld [vmem:[#allocation4 + $0x1c80] sm:$0xff]  ;;  %v7253_v31 = vpack.c.bf16 %v4469_v36, %v4466_v6  ;;  %v4501_v6 = vld [vmem:[#allocation4 + $0x1fd8] sm:$0xff] }
0x1140   : > { %7160 = vmatprep.subr.bf16.mxu1 %v7159_v21  ;;  %v7195_v21 = vpack.c.bf16 %v3997_v19, %v3994_v18  ;;  %v7255_v19 = vpack.c.bf16 %v4476_v8, %v4473_v10  ;;  %v4503_v10 = vld [vmem:[#allocation4 + $0x1fe8] sm:$0xff]  ;;  %v4506_v8 = vld [vmem:[#allocation4 + $0x2000] sm:$0xff] }
0x1142   : > { %4148 = vmatmul.mubr.f32.gmra.mrb[56].mxu1 %v7860_v42  ;;  %v3960_v42 = vld [vmem:[#allocation4 + $0x1b00] sm:$0xff] }
0x1143   : > { %4153 = vmatprep.mubr.f32.mxu1 %v7584_v0  ;;  %7162 = vmatpush1.bf16.msra.mxu1 %v7161_v27  ;;  %v7173_v49 = vpack.c.bf16 %v3960_v42, %v3957_v45  ;;  %v7197_v27 = vpack.c.bf16 %v3996_v22, %v3993_v9  ;;  %v4011_v45 = vld [vmem:[#allocation4 + $0x1c98] sm:$0xff]  ;;  %v4014_v42 = vld [vmem:[#allocation4 + $0x1cb0] sm:$0xff] }
0x1144   : > { %7164 = vmatprep.subr.bf16.mxu1 %v7163_v29  ;;  %v7199_v29 = vpack.c.bf16 %v4003_v26, %v4000_v23 }
0x1146   : > { %4154 = vmatmul.mubr.f32.gmra.mrb[58].mxu1 %v7863_v46  ;;  %v3973_v46 = vld [vmem:[#allocation4 + $0x1b68] sm:$0xff] }
0x1147   : > { %4159 = vmatprep.mubr.f32.mxu1 %v7584_v0  ;;  %7166 = vmatpush1.bf16.msra.mxu1 %v7165_v39  ;;  %v7179_v56 = vpack.c.bf16 %v3973_v46, %v3970_v54  ;;  %v7201_v39 = vpack.c.bf16 %v4002_v37, %v3999_v32  ;;  %v4020_v54 = vld [vmem:[#allocation4 + $0x1ce0] sm:$0xff] }
0x1148   : > { %7168 = vmatprep.subr.bf16.mxu1 %v7167_v34  ;;  %v7203_v34 = vpack.c.bf16 %v4009_v38, %v4006_v35  ;;  %v3980_v46 = vld [vmem:[#allocation4 + $0x1ba0] sm:$0xff]  ;;  %v7213_v15 = vpack.c.bf16 %v4020_v54, %v4017_v53  ;;  %v4479_v35 = vld [vmem:[#allocation4 + $0x1f28] sm:$0xff] }
0x1149   : > { %v4482_v38 = vld [vmem:[#allocation4 + $0x1f40] sm:$0xff]  ;;  %v4491_v54 = vld [vmem:[#allocation4 + $0x1f88] sm:$0xff] }
0x114a   : > { %4160 = vmatmul.mubr.f32.gmra.mrb[60].mxu1 %v7867_v47  ;;  %v7183_v47 = vpack.c.bf16 %v3979_v58, %v3976_v25  ;;  %v4023_v58 = vld [vmem:[#allocation4 + $0x1cf8] sm:$0xff] }
0x114b   : > { %7170 = vmatpush1.bf16.msra.mxu1 %v7169_v43  ;;  %v7205_v43 = vpack.c.bf16 %v4008_v44, %v4005_v40  ;;  %v4481_v40 = vld [vmem:[#allocation4 + $0x1f38] sm:$0xff]  ;;  %v4480_v44 = vld [vmem:[#allocation4 + $0x1f30] sm:$0xff] }
0x114c   : > { %7172 = vmatprep.subr.bf16.mxu1 %v7171_v33  ;;  %v7207_v33 = vpack.c.bf16 %v4015_v4, %v4012_v41  ;;  %v4483_v4 = vld [vmem:[#allocation4 + $0x1f48] sm:$0xff] }
0x114f   : > { %7174 = vmatpush1.bf16.msra.mxu1 %v7173_v49  ;;  %v7209_v49 = vpack.c.bf16 %v4014_v42, %v4011_v45  ;;  %v4488_v45 = vld [vmem:[#allocation4 + $0x1f70] sm:$0xff] }
0x1150   : > { %7176 = vmatprep.subr.bf16.mxu1 %v7175_v50  ;;  %v3977_v50 = vld [vmem:[#allocation4 + $0x1b88] sm:$0xff] }
0x1151   : > { %v7249_v57 = vpack.c.bf16 %v3980_v46, %v3977_v50  ;;  %v7265_v50 = vpack.c.bf16 %v4487_v28, %v4484_v11  ;;  %v4494_v46 = vld [vmem:[#allocation4 + $0x1fa0] sm:$0xff] }
0x1153   : > { %7178 = vmatpush1.bf16.msra.mxu1 %v7177_v12  ;;  %v4024_v12 = vld [vmem:[#allocation4 + $0x1d00] sm:$0xff]  ;;  %7250 = vmatpush3.bf16.msra.mxu0 %v7249_v57  ;;  %v4493_v57 = vld [vmem:[#allocation4 + $0x1f98] sm:$0xff] }
0x1154   : > { %7180 = vmatprep.subr.bf16.mxu1 %v7179_v56  ;;  %v4027_v56 = vld [vmem:[#allocation4 + $0x1d18] sm:$0xff]  ;;  %7252 = vmatprep.subr.bf16.mxu0 %v7251_v60  ;;  %v4496_v60 = vld [vmem:[#allocation4 + $0x1fb0] sm:$0xff] }
0x1155   : > { %v7215_v25 = vpack.c.bf16 %v4027_v56, %v4024_v12  ;;  %v7267_v12 = vpack.c.bf16 %v4494_v46, %v4491_v54  ;;  %v4490_v56 = vld [vmem:[#allocation4 + $0x1f80] sm:$0xff] }
0x1157   : > { %7182 = vmatpush1.bf16.msra.mxu1 %v7181_v59  ;;  %v4026_v59 = vld [vmem:[#allocation4 + $0x1d10] sm:$0xff] }
0x1158   : > { %7184 = vmatprep.subr.bf16.mxu1 %v7183_v47  ;;  %v7217_v47 = vpack.c.bf16 %v4026_v59, %v4023_v58  ;;  %v4495_v58 = vld [vmem:[#allocation4 + $0x1fa8] sm:$0xff] }
0x115b   : > { %7186 = vmatpush1.bf16.msra.mxu1 %v7185_v1  ;;  %v4471_v1 = vld [vmem:[#allocation4 + $0x1ee8] sm:$0xff] }
0x115c   : > { %7188 = vmatprep.subr.bf16.mxu1 %v7187_v2  ;;  %v7283_v2 = vpack.c.bf16 %v4471_v1, %v4468_v61  ;;  %v4499_v61 = vld [vmem:[#allocation4 + $0x1fc8] sm:$0xff]  ;;  %v4498_v1 = vld [vmem:[#allocation4 + $0x1fc0] sm:$0xff] }
0x115d   : > { %v7303_v36 = vpack.c.bf16 %v4501_v6, %v4498_v1 }
0x115f   : > { %7190 = vmatpush1.bf16.msra.mxu1 %v7189_v14  ;;  %v4474_v14 = vld [vmem:[#allocation4 + $0x1f00] sm:$0xff] }
0x1160   : > { %7192 = vmatprep.subr.bf16.mxu1 %v7191_v16  ;;  %v4477_v16 = vld [vmem:[#allocation4 + $0x1f18] sm:$0xff] }
0x1161   : > { %v7287_v9 = vpack.c.bf16 %v4477_v16, %v4474_v14  ;;  %v7275_v14 = vpack.c.bf16 %v4506_v8, %v4503_v10  ;;  %v4502_v16 = vld [vmem:[#allocation4 + $0x1fe0] sm:$0xff] }
0x1163   : > { %7194 = vmatpush1.bf16.msra.mxu1 %v7193_v20  ;;  %v4472_v20 = vld [vmem:[#allocation4 + $0x1ef0] sm:$0xff] }
0x1164   : > { %7196 = vmatprep.subr.bf16.mxu1 %v7195_v21  ;;  %v4475_v21 = vld [vmem:[#allocation4 + $0x1f08] sm:$0xff] }
0x1165   : > { %v7257_v23 = vpack.c.bf16 %v4475_v21, %v4472_v20  ;;  %v4509_v21 = vld [vmem:[#allocation4 + $0x2018] sm:$0xff] }
0x1167   : > { %7198 = vmatpush1.bf16.msra.mxu1 %v7197_v27 }
0x1168   : > { %7200 = vmatprep.subr.bf16.mxu1 %v7199_v29 }
0x116b   : > { %7202 = vmatpush1.bf16.msra.mxu1 %v7201_v39  ;;  %v7259_v39 = vpack.c.bf16 %v4482_v38, %v4479_v35  ;;  %v4730_v35 = vld [vmem:[#allocation4 + $0x2060] sm:$0xff]  ;;  %v4733_v38 = vld [vmem:[#allocation4 + $0x2078] sm:$0xff] }
0x116c   : > { %7204 = vmatprep.subr.bf16.mxu1 %v7203_v34  ;;  %v4478_v34 = vld [vmem:[#allocation4 + $0x1f20] sm:$0xff] }
0x116d   : > { %v7261_v41 = vpack.c.bf16 %v4481_v40, %v4478_v34  ;;  %v4731_v34 = vld [vmem:[#allocation4 + $0x2068] sm:$0xff]  ;;  %v4734_v40 = vld [vmem:[#allocation4 + $0x2080] sm:$0xff] }
0x116f   : > { %7206 = vmatpush1.bf16.msra.mxu1 %v7205_v43  ;;  %v7291_v43 = vpack.c.bf16 %v4483_v4, %v4480_v44  ;;  %v8110_v44 = vpack.c.bf16 %v4734_v40, %v4731_v34  ;;  %v4736_v40 = vld [vmem:[#allocation4 + $0x2090] sm:$0xff] }
0x1170   : > { %7208 = vmatprep.subr.bf16.mxu1 %v7207_v33  ;;  %v4485_v33 = vld [vmem:[#allocation4 + $0x1f58] sm:$0xff] }
0x1171   : > { %v7263_v42 = vpack.c.bf16 %v4488_v45, %v4485_v33 }
0x1173   : > { %7210 = vmatpush1.bf16.msra.mxu1 %v7209_v49  ;;  %v4486_v49 = vld [vmem:[#allocation4 + $0x1f60] sm:$0xff] }
0x1174   : > { %7212 = vmatprep.subr.bf16.mxu1 %v7211_v52  ;;  %v4489_v52 = vld [vmem:[#allocation4 + $0x1f78] sm:$0xff] }
0x1175   : > { %v7295_v53 = vpack.c.bf16 %v4489_v52, %v4486_v49 }
0x1177   : > { %7214 = vmatpush1.bf16.msra.mxu1 %v7213_v15  ;;  %v4492_v15 = vld [vmem:[#allocation4 + $0x1f90] sm:$0xff] }
0x1178   : > { %7216 = vmatprep.subr.bf16.mxu1 %v7215_v25  ;;  %v7269_v25 = vpack.c.bf16 %v4493_v57, %v4490_v56  ;;  %v7299_v59 = vpack.c.bf16 %v4495_v58, %v4492_v15 }
0x117b   : > { %7218 = vmatpush1.bf16.msra.mxu1 %v7217_v47  ;;  %v4497_v47 = vld [vmem:[#allocation4 + $0x1fb8] sm:$0xff] }
0x117c   : > { %7284 = vmatprep.subr.bf16.mxu1 %v7283_v2  ;;  %v7271_v48 = vpack.c.bf16 %v4500_v24, %v4497_v47 }
0x11f1   : > { %v3910_v17 = vpop.f32.mrb[46].mxu1 }
0x11f2   : > { %v3912_v18 = vpop.f32.mrb[47].mxu1 }
0x11f3   : > { %4315 = vmatprep.mubr.f32.mxu1 %v3912_v18  ;;  %4404 = vmatprep.mubr.f32.mxu0 %v3912_v18 }
0x11f4   : > { %4316 = vmatmul.mubr.f32.vlgmr.msra.gmra.mrb[54].mxu1 %v3910_v17  ;;  %4405 = vmatmul.mubr.f32.vlgmr.msra.gmra.mrb[66].mxu0 %v3910_v17  ;;  %v4505_v17 = vld [vmem:[#allocation4 + $0x1ff8] sm:$0xff] }
0x11f5   : > { %v3916_v22 = vpop.f32.mrb[48].mxu1  ;;  %7254 = vmatpush1.bf16.msra.mxu0 %v7253_v31  ;;  %7286 = vmatpush3.bf16.msra.mxu1 %v7283_v2  ;;  %v7273_v2 = vpack.c.bf16 %v4499_v61, %v4496_v60  ;;  %v4504_v31 = vld [vmem:[#allocation4 + $0x1ff0] sm:$0xff]  ;;  %v7277_v18 = vpack.c.bf16 %v4505_v17, %v4502_v16 }
0x11f6   : > { %v3918_v26 = vpop.f32.mrb[49].mxu1  ;;  %7256 = vmatprep.subr.bf16.mxu0 %v7255_v19  ;;  %7288 = vmatprep.subr.bf16.mxu1 %v7287_v9  ;;  %v4507_v19 = vld [vmem:[#allocation4 + $0x2008] sm:$0xff] }
0x11f7   : > { %4321 = vmatprep.mubr.f32.mxu1 %v3918_v26  ;;  %4409 = vmatprep.mubr.f32.mxu0 %v3918_v26  ;;  %v7307_v20 = vpack.c.bf16 %v4507_v19, %v4504_v31  ;;  %v4511_v26 = vld [vmem:[#allocation4 + $0x2028] sm:$0xff] }
0x11f8   : > { %4322 = vmatmul.mubr.f32.gmra.mrb[56].mxu1 %v3916_v22  ;;  %4410 = vmatmul.mubr.f32.gmra.mrb[68].mxu0 %v3916_v22 }
0x11f9   : > { %v3922_v27 = vpop.f32.mrb[50].mxu1  ;;  %7258 = vmatpush1.bf16.msra.mxu0 %v7257_v23  ;;  %7290 = vmatpush3.bf16.msra.mxu1 %v7287_v9  ;;  %v4512_v9 = vld [vmem:[#allocation4 + $0x2030] sm:$0xff] }
0x11fa   : > { %v3924_v29 = vpop.f32.mrb[51].mxu1  ;;  %7260 = vmatprep.subr.bf16.mxu0 %v7259_v39  ;;  %7292 = vmatprep.subr.bf16.mxu1 %v7291_v43  ;;  %v7279_v22 = vpack.c.bf16 %v4512_v9, %v4509_v21  ;;  %v4508_v23 = vld [vmem:[#allocation4 + $0x2010] sm:$0xff]  ;;  %v7315_v39 = vpack.c.bf16 %v4733_v38, %v4730_v35  ;;  %v4425_v21 = vld [vmem:[#allocation4 + $0x1ea8] ss:$0 sm:$0xff]  ;;  %v4729_v35 = vld [vmem:[#allocation4 + $0x2058] sm:$0xff] }
0x11fb   : > { %4327 = vmatprep.mubr.f32.mxu1 %v3924_v29  ;;  %4414 = vmatprep.mubr.f32.mxu0 %v3924_v29  ;;  %v7281_v29 = vpack.c.bf16 %v4511_v26, %v4508_v23  ;;  %v4732_v38 = vld [vmem:[#allocation4 + $0x2070] sm:$0xff] }
0x11fc   : > { %4328 = vmatmul.mubr.f32.gmra.mrb[58].mxu1 %v3922_v27  ;;  %4415 = vmatmul.mubr.f32.gmra.mrb[70].mxu0 %v3922_v27  ;;  %v4510_v27 = vld [vmem:[#allocation4 + $0x2020] sm:$0xff] }
0x11fd   : > { %v3928_v32 = vpop.f32.mrb[52].mxu1  ;;  %7262 = vmatpush1.bf16.msra.mxu0 %v7261_v41  ;;  %7294 = vmatpush3.bf16.msra.mxu1 %v7291_v43 }
0x11fe   : > { %v3930_v37 = vpop.f32.mrb[53].mxu1  ;;  %7264 = vmatprep.subr.bf16.mxu0 %v7263_v42  ;;  %7296 = vmatprep.subr.bf16.mxu1 %v7295_v53 }
0x11ff   : > { %4333 = vmatprep.mubr.f32.mxu1 %v3930_v37  ;;  %4419 = vmatprep.mubr.f32.mxu0 %v3930_v37 }
0x1200   : > { %4334 = vmatmul.mubr.f32.gmra.mrb[60].mxu1 %v3928_v32  ;;  %4420 = vmatmul.mubr.f32.gmra.mrb[72].mxu0 %v3928_v32  ;;  %v4513_v32 = vld [vmem:[#allocation4 + $0x2038] sm:$0xff] }
0x1201   : > { %4578 = vmatprep.mubr.f32.mxu0 %v7584_v0  ;;  %7266 = vmatpush1.bf16.msra.mxu0 %v7265_v50  ;;  %v7311_v37 = vpack.c.bf16 %v4513_v32, %v4510_v27 }
0x1202   : > { %7298 = vmatpush3.bf16.msra.mxu1 %v7295_v53  ;;  %7268 = vmatprep.subr.bf16.mxu0 %v7267_v12 }
0x1203   : > { %7300 = vmatprep.subr.bf16.mxu1 %v7299_v59 }
0x1205   : > { %7270 = vmatpush1.bf16.msra.mxu0 %v7269_v25 }
0x1206   : > { %7302 = vmatpush3.bf16.msra.mxu1 %v7299_v59  ;;  %7272 = vmatprep.subr.bf16.mxu0 %v7271_v48 }
0x1207   : > { %7304 = vmatprep.subr.bf16.mxu1 %v7303_v36 }
0x1209   : > { %7274 = vmatpush1.bf16.msra.mxu0 %v7273_v2 }
0x120a   : > { %7306 = vmatpush3.bf16.msra.mxu1 %v7303_v36  ;;  %7276 = vmatprep.subr.bf16.mxu0 %v7275_v14 }
0x120b   : > { %7308 = vmatprep.subr.bf16.mxu1 %v7307_v20 }
0x120d   : > { %7278 = vmatpush1.bf16.msra.mxu0 %v7277_v18 }
0x120e   : > { %7310 = vmatpush3.bf16.msra.mxu1 %v7307_v20  ;;  %7280 = vmatprep.subr.bf16.mxu0 %v7279_v22 }
0x120f   : > { %7312 = vmatprep.subr.bf16.mxu1 %v7311_v37 }
0x1211   : > { %7282 = vmatpush1.bf16.msra.mxu0 %v7281_v29 }
0x1212   : > { %7314 = vmatpush3.bf16.msra.mxu1 %v7311_v37  ;;  %7316 = vmatprep.subr.bf16.mxu0 %v7315_v39 }
0x1213   : > { %7348 = vmatprep.subr.bf16.mxu1 %v8110_v44 }
0x12c7   : > { %v4317_v41 = vpop.f32.mrb[54].mxu1  ;;  %v5540_v4 = vpop.f32.mrb[66].mxu0 }
0x12c8   : > { %v4319_v43 = vpop.f32.mrb[55].mxu1  ;;  %v5541_v33 = vpop.f32.mrb[67].mxu0  ;;  %v4426_v49 = vrot.slane %v4317_v41, 7  ;;  %v4739_v41 = vld [vmem:[#allocation4 + $0x20a8] sm:$0xff] }
0x12c9   : > { %v5542_v45 = vadd.f32 %v5541_v33, %v5540_v4  ;;  %v4740_v33 = vld [vmem:[#allocation4 + $0x20b0] sm:$0xff] }
0x12cb   : > { %v4407_v42 = vadd.f32 %v5542_v45, %v8096_v63  ;;  %v4323_v11 = vpop.f32.mrb[56].mxu1  ;;  %v5543_v28 = vpop.f32.mrb[68].mxu0 }
0x12cc   : > { %v4427_v50 = vrot.slane %v4323_v11, 7  ;;  %v4325_v52 = vpop.f32.mrb[57].mxu1  ;;  %v5544_v53 = vpop.f32.mrb[69].mxu0  ;;  %v7317_v11 = vpack.c.bf16 %v4732_v38, %v4729_v35  ;;  %v4766_v35 = vld [vmem:[#allocation4 + $0x2180] sm:$0xff]  ;;  %v4769_v38 = vld [vmem:[#allocation4 + $0x2198] sm:$0xff] }
0x12cd   : > { %v5545_v54 = vadd.f32 %v5544_v53, %v5543_v28  ;;  %v4438_v47 = vrot.slane %v4407_v42, 1  ;;  %v4738_v53 = vld [vmem:[#allocation4 + $0x20a0] sm:$0xff] }
0x12ce   : > { %v4432_v46 = vsel %vm444_vm2, %v4426_v49, %v4427_v50 }
0x12cf   : > { %v4451_v12 = vadd.f32 %v4432_v46, %v4325_v52  ;;  %v4412_v56 = vadd.f32 %v8094_v62, %v5545_v54  ;;  %v4329_v57 = vpop.f32.mrb[58].mxu1  ;;  %v5546_v15 = vpop.f32.mrb[70].mxu0  ;;  %v4735_v52 = vld [vmem:[#allocation4 + $0x2088] sm:$0xff] }
0x12d0   : > { %v4428_v25 = vrot.slane %v4329_v57, 7  ;;  %v4331_v58 = vpop.f32.mrb[59].mxu1  ;;  %v5547_v59 = vpop.f32.mrb[71].mxu0  ;;  %v4742_v57 = vld [vmem:[#allocation4 + $0x20c0] sm:$0xff] }
0x12d1   : > { %v4439_v63 = vrot.slane %v4412_v56, 1  ;;  %v5548_v24 = vadd.f32 %v5547_v59, %v5546_v15  ;;  %v4745_v15 = vld [vmem:[#allocation4 + $0x20d8] sm:$0xff]  ;;  %v4744_v59 = vld [vmem:[#allocation4 + $0x20d0] sm:$0xff] }
0x12d2   : > { %v4431_v48 = vsel %vm444_vm2, %v4427_v50, %v4428_v25  ;;  %v7319_v50 = vpack.c.bf16 %v4739_v41, %v4736_v40  ;;  %v4767_v40 = vld [vmem:[#allocation4 + $0x2188] sm:$0xff] }
0x12d3   : > { %v4444_v60 = vsel %vm457_vm1, %v4438_v47, %v4439_v63  ;;  %v4436_v61 = vsel %vm7769_vm4, %v4431_v48, 0.0  ;;  %v4417_v1 = vadd.f32 %v5548_v24, %v8100_v13  ;;  %v4335_v62 = vpop.f32.mrb[60].mxu1  ;;  %v5549_v2 = vpop.f32.mrb[72].mxu0  ;;  %v4748_v48 = vld [vmem:[#allocation4 + $0x20f0] sm:$0xff] }
0x12d4   : > { %v4452_v6 = vadd.f32 %v4436_v61, %v4331_v58  ;;  %v4429_v36 = vrot.slane %v4335_v62, 7  ;;  %v4337_v10 = vpop.f32.mrb[61].mxu1  ;;  %v5550_v8 = vpop.f32.mrb[73].mxu0  ;;  %v4741_v58 = vld [vmem:[#allocation4 + $0x20b8] sm:$0xff]  ;;  %v4750_v62 = vld [vmem:[#allocation4 + $0x2100] sm:$0xff] }
0x12d5   : > { %v4440_v14 = vrot.slane %v4417_v1, 1  ;;  %v5551_v16 = vadd.f32 %v5550_v8, %v5549_v2  ;;  %v4747_v1 = vld [vmem:[#allocation4 + $0x20e8] sm:$0xff]  ;;  %v4749_v2 = vld [vmem:[#allocation4 + $0x20f8] sm:$0xff]  ;;  %v4754_v8 = vld [vmem:[#allocation4 + $0x2120] sm:$0xff] }
0x12d6   : > { %v4433_v17 = vsel %vm444_vm2, %v4429_v36, %v4426_v49  ;;  %v4430_v31 = vsel %vm444_vm2, %v4428_v25, %v4429_v36  ;;  %v7323_v25 = vpack.c.bf16 %v4745_v15, %v4742_v57  ;;  %v4752_v36 = vld [vmem:[#allocation4 + $0x2110] sm:$0xff] }
0x12d7   : > { %v4443_v18 = vsel %vm457_vm1, %v4439_v63, %v4440_v14  ;;  %v4434_v13 = vsel %vm7790_vm6, %v4433_v17, 0.0  ;;  %v4453_v19 = vadd.f32 %v4430_v31, %v4337_v10  ;;  %v4422_v20 = vadd.f32 %v8098_v3, %v5551_v16  ;;  %v4746_v63 = vld [vmem:[#allocation4 + $0x20e0] sm:$0xff]  ;;  %v4753_v17 = vld [vmem:[#allocation4 + $0x2118] sm:$0xff]  ;;  %v4756_v31 = vld [vmem:[#allocation4 + $0x2130] sm:$0xff] }
0x12d8   : > { %v4447_v9 = vsel %vm7765_vm3, %v4443_v18, 0.0  ;;  %v4450_v22 = vadd.f32 %v4434_v13, %v4319_v43  ;;  %v4737_v43 = vld [vmem:[#allocation4 + $0x2098] sm:$0xff]  ;;  %v7359_v10 = vpack.c.bf16 %v4752_v36, %v4749_v2  ;;  %v7333_v18 = vpack.c.bf16 %v4756_v31, %v4753_v17  ;;  %v4755_v13 = vld [vmem:[#allocation4 + $0x2128] sm:$0xff] }
0x12d9   : > { %v4455_v23 = vadd.f32 %v4451_v12, %v4447_v9  ;;  %v4441_v26 = vrot.slane %v4422_v20, 1  ;;  %v7351_v46 = vpack.c.bf16 %v4740_v33, %v4737_v43  ;;  %v7321_v12 = vpack.c.bf16 %v4738_v53, %v4735_v52  ;;  %v4763_v9 = vld [vmem:[#allocation4 + $0x2168] sm:$0xff]  ;;  %v4772_v33 = vld [vmem:[#allocation4 + $0x21b0] sm:$0xff] }
0x12da   : > { %v4454_v27 = vadd.f32 %v4450_v22, %v4444_v60  ;;  %v4751_v60 = vld [vmem:[#allocation4 + $0x2108] sm:$0xff]  ;;  %v4776_v52 = vld [vmem:[#allocation4 + $0x21d0] sm:$0xff] }
0x12db   : > { %v4459_v29 = vadd.f32 %v4455_v23, %v4425_v21  ;;  %v4445_v32 = vsel %vm457_vm1, %v4441_v26, %v4438_v47  ;;  %v4442_v37 = vsel %vm457_vm1, %v4440_v14, %v4441_v26  ;;  %v7325_v47 = vpack.c.bf16 %v4744_v59, %v4741_v58  ;;  %v4757_v14 = vld [vmem:[#allocation4 + $0x2138] sm:$0xff]  ;;  %v4759_v23 = vld [vmem:[#allocation4 + $0x2148] sm:$0xff]  ;;  %v4762_v26 = vld [vmem:[#allocation4 + $0x2160] sm:$0xff] }
0x12dc   : > { %v4458_v39 = vadd.f32 %v4454_v27, %v4425_v21  ;;  %v4456_v34 = vadd.f32 %v4452_v6, %v4442_v37  ;;  %v4449_v3 = vsel %vm7786_vm5, %v4445_v32, 0.0  ;;  %v7327_v61 = vpack.c.bf16 %v4751_v60, %v4748_v48  ;;  %v4761_v27 = vld [vmem:[#allocation4 + $0x2158] sm:$0xff]  ;;  %v4764_v32 = vld [vmem:[#allocation4 + $0x2170] sm:$0xff] }
0x12dd   : > { %v4457_v4 = vadd.f32 %v4453_v19, %v4449_v3  ;;  %v4463_v28 = vmax.f32 %v4459_v29, 0.0  ;;  %v7329_v6 = vpack.c.bf16 %v4750_v62, %v4747_v1  ;;  %v7331_v16 = vpack.c.bf16 %v4757_v14, %v4754_v8  ;;  %v4758_v19 = vld [vmem:[#allocation4 + $0x2140] sm:$0xff]  ;;  %v4768_v3 = vld [vmem:[#allocation4 + $0x2190] sm:$0xff] }
0x12de   : > { %v4462_v45 = vmax.f32 %v4458_v39, 0.0  ;;  %v4460_v42 = vadd.f32 %v4456_v34, %v4425_v21  ;;  %v7363_v20 = vpack.c.bf16 %v4758_v19, %v4755_v13  ;;  %v7337_v29 = vpack.c.bf16 %v4762_v26, %v4759_v23  ;;  %v4765_v34 = vld [vmem:[#allocation4 + $0x2178] sm:$0xff] }
0x12df   : > { %v4461_v49 = vadd.f32 %v4457_v4, %v4425_v21  ;;  %v4760_v21 = vld [vmem:[#allocation4 + $0x2150] sm:$0xff]  ;;  %v7367_v37 = vpack.c.bf16 %v4764_v32, %v4761_v27  ;;  %v7339_v39 = vpack.c.bf16 %v4769_v38, %v4766_v35  ;;  %v7341_v41 = vpack.c.bf16 %v4768_v3, %v4765_v34  ;;  %v4770_v4 = vld [vmem:[#allocation4 + $0x21a0] sm:$0xff] }
0x12e0   : > { %4579 = vmatmul.mubr.f32.vlgmr.msra.gmra.mrb[74].mxu0 %v4462_v45  ;;  %6142 = vmatprep.mubr.f32.mxu1 %v4462_v45  ;;  %v4464_v54 = vmax.f32 %v4460_v42, 0.0  ;;  %v7335_v22 = vpack.c.bf16 %v4763_v9, %v4760_v21  ;;  %v7371_v43 = vpack.c.bf16 %v4770_v4, %v4767_v40  ;;  %v4775_v45 = vld [vmem:[#allocation4 + $0x21c8] sm:$0xff]  ;;  %v4994_v4 = vld [vmem:[#allocation4 + $0x2220] sm:$0xff] }
0x12e1   : > { %6143 = vmatmul.mubr.f32.vlgmr.msra.gmra.mrb[62].mxu1 %v4463_v28  ;;  %4584 = vmatprep.mubr.f32.mxu0 %v7584_v0  ;;  %v4465_v56 = vmax.f32 %v4461_v49, 0.0  ;;  %v7343_v42 = vpack.c.bf16 %v4775_v45, %v4772_v33  ;;  %v4773_v49 = vld [vmem:[#allocation4 + $0x21b8] sm:$0xff] }
0x12e2   : > { %6145 = vmatprep.mubr.f32.mxu1 %v4464_v54  ;;  %7318 = vmatpush1.bf16.msra.mxu0 %v7317_v11  ;;  %v4771_v11 = vld [vmem:[#allocation4 + $0x21a8] sm:$0xff]  ;;  %v7375_v53 = vpack.c.bf16 %v4776_v52, %v4773_v49 }
0x12e3   : > { %7350 = vmatpush3.bf16.msra.mxu1 %v8110_v44  ;;  %7320 = vmatprep.subr.bf16.mxu0 %v7319_v50  ;;  %v4743_v44 = vld [vmem:[#allocation4 + $0x20c8] sm:$0xff] }
0x12e4   : > { %4585 = vmatmul.mubr.f32.gmra.mrb[76].mxu0 %v4463_v28  ;;  %7352 = vmatprep.subr.bf16.mxu1 %v7351_v46  ;;  %v7355_v24 = vpack.c.bf16 %v4746_v63, %v4743_v44  ;;  %v4774_v28 = vld [vmem:[#allocation4 + $0x21c0] sm:$0xff]  ;;  %v4997_v52 = vld [vmem:[#allocation4 + $0x2268] sm:$0xff] }
0x12e5   : > { %6146 = vmatmul.mubr.f32.gmra.mrb[64].mxu1 %v4465_v56  ;;  %4590 = vmatprep.mubr.f32.mxu0 %v7584_v0  ;;  %v7345_v50 = vpack.c.bf16 %v4774_v28, %v4771_v11 }
0x12e6   : > { %7322 = vmatpush1.bf16.msra.mxu0 %v7321_v12 }
0x12e7   : > { %7354 = vmatpush3.bf16.msra.mxu1 %v7351_v46  ;;  %7324 = vmatprep.subr.bf16.mxu0 %v7323_v25  ;;  %v4993_v46 = vld [vmem:[#allocation4 + $0x2208] sm:$0xff] }
0x12e8   : > { %4591 = vmatmul.mubr.f32.gmra.mrb[78].mxu0 %v4464_v54  ;;  %7356 = vmatprep.subr.bf16.mxu1 %v7355_v24  ;;  %v4992_v54 = vld [vmem:[#allocation4 + $0x21f0] sm:$0xff] }
0x12e9   : > { %4596 = vmatprep.mubr.f32.mxu0 %v7584_v0  ;;  %v7379_v12 = vpack.c.bf16 %v4993_v46, %v4992_v54  ;;  %v4998_v54 = vld [vmem:[#allocation4 + $0x2280] sm:$0xff]  ;;  %v4999_v46 = vld [vmem:[#allocation4 + $0x2298] sm:$0xff] }
0x12ea   : > { %7326 = vmatpush1.bf16.msra.mxu0 %v7325_v47 }
0x12eb   : > { %7358 = vmatpush3.bf16.msra.mxu1 %v7355_v24  ;;  %7328 = vmatprep.subr.bf16.mxu0 %v7327_v61 }
0x12ec   : > { %4597 = vmatmul.mubr.f32.gmra.mrb[80].mxu0 %v4465_v56  ;;  %7360 = vmatprep.subr.bf16.mxu1 %v7359_v10 }
0x12ed   : > { %4841 = vmatprep.mubr.f32.mxu0 %v7584_v0 }
0x12ee   : > { %7330 = vmatpush1.bf16.msra.mxu0 %v7329_v6 }
0x12ef   : > { %7362 = vmatpush3.bf16.msra.mxu1 %v7359_v10  ;;  %7332 = vmatprep.subr.bf16.mxu0 %v7331_v16 }
0x12f0   : > { %7364 = vmatprep.subr.bf16.mxu1 %v7363_v20 }
0x12f2   : > { %7334 = vmatpush1.bf16.msra.mxu0 %v7333_v18 }
0x12f3   : > { %7366 = vmatpush3.bf16.msra.mxu1 %v7363_v20  ;;  %7336 = vmatprep.subr.bf16.mxu0 %v7335_v22 }
0x12f4   : > { %7368 = vmatprep.subr.bf16.mxu1 %v7367_v37 }
0x12f6   : > { %7338 = vmatpush1.bf16.msra.mxu0 %v7337_v29 }
0x12f7   : > { %7370 = vmatpush3.bf16.msra.mxu1 %v7367_v37  ;;  %7340 = vmatprep.subr.bf16.mxu0 %v7339_v39  ;;  %v4688_v37 = vld [vmem:[#allocation4 + $0x2040] ss:$0 sm:$0xff] }
0x12f8   : > { %7372 = vmatprep.subr.bf16.mxu1 %v7371_v43 }
0x12fa   : > { %7342 = vmatpush1.bf16.msra.mxu0 %v7341_v41 }
0x12fb   : > { %7374 = vmatpush3.bf16.msra.mxu1 %v7371_v43  ;;  %7344 = vmatprep.subr.bf16.mxu0 %v7343_v42  ;;  %v4995_v43 = vld [vmem:[#allocation4 + $0x2238] sm:$0xff] }
0x12fc   : > { %7376 = vmatprep.subr.bf16.mxu1 %v7375_v53  ;;  %v7383_v11 = vpack.c.bf16 %v4995_v43, %v4994_v4 }
0x12fe   : > { %7346 = vmatpush1.bf16.msra.mxu0 %v7345_v50  ;;  %v4996_v50 = vld [vmem:[#allocation4 + $0x2250] sm:$0xff] }
0x12ff   : > { %7378 = vmatpush3.bf16.msra.mxu1 %v7375_v53  ;;  %7380 = vmatprep.subr.bf16.mxu0 %v7379_v12  ;;  %v7387_v53 = vpack.c.bf16 %v4997_v52, %v4996_v50 }
0x13b3   : > { %v4580_v56 = vpop.f32.mrb[74].mxu0 }
0x13b4   : > { %v4582_v57 = vpop.f32.mrb[75].mxu0  ;;  %v6144_v15 = vpop.f32.mrb[62].mxu1  ;;  %v4689_v47 = vrot.slane %v4580_v56, 7  ;;  %v7391_v56 = vpack.c.bf16 %v4999_v46, %v4998_v54 }
0x13b5   : > { %v4702_v25 = vrot.slane %v6144_v15, 1  ;;  %v4669_v58 = vpop.f32.mrb[63].mxu1 }
0x13b6   : > { %v4701_v59 = vrot.slane %v4669_v58, 1  ;;  %v5003_v58 = vld [vmem:[#allocation4 + $0x22f8] sm:$0xff] }
0x13b7   : > { %v4586_v44 = vpop.f32.mrb[76].mxu0 }
0x13b8   : > { %v4707_v63 = vsel %vm457_vm1, %v4701_v59, %v4702_v25  ;;  %v4690_v24 = vrot.slane %v4586_v44, 7  ;;  %v4588_v48 = vpop.f32.mrb[77].mxu0  ;;  %v6147_v60 = vpop.f32.mrb[64].mxu1  ;;  %v5005_v44 = vld [vmem:[#allocation4 + $0x2328] sm:$0xff] }
0x13b9   : > { %v4704_v61 = vrot.slane %v6147_v60, 1  ;;  %v4679_v1 = vpop.f32.mrb[65].mxu1 }
0x13ba   : > { %v4695_v62 = vsel %vm444_vm2, %v4689_v47, %v4690_v24  ;;  %v4703_v2 = vrot.slane %v4679_v1, 1 }
0x13bb   : > { %v4714_v6 = vadd.f32 %v4695_v62, %v4588_v48  ;;  %v4592_v36 = vpop.f32.mrb[78].mxu0  ;;  %v4708_v10 = vsel %vm457_vm1, %v4704_v61, %v4701_v59 }
0x13bc   : > { %v4706_v8 = vsel %vm457_vm1, %v4702_v25, %v4703_v2  ;;  %v4691_v14 = vrot.slane %v4592_v36, 7  ;;  %v4594_v16 = vpop.f32.mrb[79].mxu0  ;;  %v4705_v17 = vsel %vm457_vm1, %v4703_v2, %v4704_v61  ;;  %v4712_v38 = vsel %vm7786_vm5, %v4708_v10, 0.0  ;;  %v5002_v25 = vld [vmem:[#allocation4 + $0x22e0] sm:$0xff] }
0x13bd   : > { %v4710_v31 = vsel %vm7765_vm3, %v4706_v8, 0.0  ;;  %v7399_v59 = vpack.c.bf16 %v5003_v58, %v5002_v25 }
0x13be   : > { %v4718_v18 = vadd.f32 %v4714_v6, %v4710_v31  ;;  %v4694_v13 = vsel %vm444_vm2, %v4690_v24, %v4691_v14  ;;  %v5007_v24 = vld [vmem:[#allocation4 + $0x2358] sm:$0xff] }
0x13bf   : > { %v4699_v19 = vsel %vm7769_vm4, %v4694_v13, 0.0  ;;  %v4598_v20 = vpop.f32.mrb[80].mxu0 }
0x13c0   : > { %v4715_v21 = vadd.f32 %v4699_v19, %v4594_v16  ;;  %v4692_v9 = vrot.slane %v4598_v20, 7  ;;  %v4600_v22 = vpop.f32.mrb[81].mxu0  ;;  %v4722_v3 = vadd.f32 %v4718_v18, %v4688_v37 }
0x13c2   : > { %v4719_v23 = vadd.f32 %v4715_v21, %v4705_v17  ;;  %v4696_v26 = vsel %vm444_vm2, %v4692_v9, %v4689_v47  ;;  %v4693_v27 = vsel %vm444_vm2, %v4691_v14, %v4692_v9  ;;  %v4726_v45 = vmax.f32 %v4722_v3, 0.0 }
0x13c3   : > { %v4697_v29 = vsel %vm7790_vm6, %v4696_v26, 0.0  ;;  %v4716_v32 = vadd.f32 %v4693_v27, %v4600_v22 }
0x13c4   : > { %v4713_v35 = vadd.f32 %v4697_v29, %v4582_v57  ;;  %v4723_v41 = vadd.f32 %v4719_v23, %v4688_v37  ;;  %v5001_v57 = vld [vmem:[#allocation4 + $0x22c8] sm:$0xff] }
0x13c5   : > { %v4720_v39 = vadd.f32 %v4716_v32, %v4712_v38 }
0x13c6   : > { %v4717_v34 = vadd.f32 %v4713_v35, %v4707_v63  ;;  %v4727_v28 = vmax.f32 %v4723_v41, 0.0  ;;  %v5006_v63 = vld [vmem:[#allocation4 + $0x2340] sm:$0xff] }
0x13c7   : > { %v4724_v42 = vadd.f32 %v4720_v39, %v4688_v37  ;;  %v7407_v48 = vpack.c.bf16 %v5007_v24, %v5006_v63 }
0x13c8   : > { %v4721_v40 = vadd.f32 %v4717_v34, %v4688_v37 }
0x13c9   : > { %v4728_v49 = vmax.f32 %v4724_v42, 0.0 }
0x13ca   : > { %v4725_v33 = vmax.f32 %v4721_v40, 0.0 }
0x13cc   : > { %4842 = vmatmul.mubr.f32.vlgmr.msra.gmra.mrb[82].mxu0 %v4725_v33  ;;  %6180 = vmatprep.mubr.f32.mxu1 %v4725_v33  ;;  %v4951_v33 = vld [vmem:[#allocation4 + $0x21d8] ss:$0 sm:$0xff] }
0x13cd   : > { %6181 = vmatmul.mubr.f32.vlgmr.msra.gmra.mrb[66].mxu1 %v4726_v45  ;;  %4847 = vmatprep.mubr.f32.mxu0 %v7584_v0 }
0x13ce   : > { %6183 = vmatprep.mubr.f32.mxu1 %v4727_v28  ;;  %7382 = vmatpush3.bf16.msra.mxu0 %v7379_v12  ;;  %v5000_v12 = vld [vmem:[#allocation4 + $0x22b0] sm:$0xff] }
0x13cf   : > { %7384 = vmatprep.subr.bf16.mxu0 %v7383_v11  ;;  %v7395_v15 = vpack.c.bf16 %v5001_v57, %v5000_v12 }
0x13d0   : > { %4848 = vmatmul.mubr.f32.gmra.mrb[84].mxu0 %v4726_v45 }
0x13d1   : > { %6184 = vmatmul.mubr.f32.gmra.mrb[68].mxu1 %v4728_v49  ;;  %4853 = vmatprep.mubr.f32.mxu0 %v7584_v0 }
0x13d2   : > { %7386 = vmatpush3.bf16.msra.mxu0 %v7383_v11 }
0x13d3   : > { %7388 = vmatprep.subr.bf16.mxu0 %v7387_v53 }
0x13d4   : > { %4854 = vmatmul.mubr.f32.gmra.mrb[86].mxu0 %v4727_v28 }
0x13d5   : > { %4859 = vmatprep.mubr.f32.mxu0 %v7584_v0  ;;  %v5004_v0 = vld [vmem:[#allocation4 + $0x2310] sm:$0xff] }
0x13d6   : > { %7390 = vmatpush3.bf16.msra.mxu0 %v7387_v53  ;;  %v7403_v47 = vpack.c.bf16 %v5005_v44, %v5004_v0 }
0x13d7   : > { %7392 = vmatprep.subr.bf16.mxu0 %v7391_v56 }
0x13d8   : > { %4860 = vmatmul.mubr.f32.gmra.mrb[88].mxu0 %v4728_v49 }
0x13da   : > { %7394 = vmatpush3.bf16.msra.mxu0 %v7391_v56 }
0x13db   : > { %7396 = vmatprep.subr.bf16.mxu0 %v7395_v15 }
0x13de   : > { %7398 = vmatpush3.bf16.msra.mxu0 %v7395_v15 }
0x13df   : > { %7400 = vmatprep.subr.bf16.mxu0 %v7399_v59 }
0x13e2   : > { %7402 = vmatpush3.bf16.msra.mxu0 %v7399_v59 }
0x13e3   : > { %7404 = vmatprep.subr.bf16.mxu0 %v7403_v47 }
0x13e6   : > { %7406 = vmatpush3.bf16.msra.mxu0 %v7403_v47 }
0x13e7   : > { %7408 = vmatprep.subr.bf16.mxu0 %v7407_v48 }
0x13ea   : > { %7410 = vmatpush3.bf16.msra.mxu0 %v7407_v48 }
0x149f   : > { %v4843_v60 = vpop.f32.mrb[82].mxu0 }
0x14a0   : > { %v4845_v61 = vpop.f32.mrb[83].mxu0  ;;  %v6182_v1 = vpop.f32.mrb[66].mxu1  ;;  %v4952_v10 = vrot.slane %v4843_v60, 7 }
0x14a1   : > { %v4965_v62 = vrot.slane %v6182_v1, 1  ;;  %v4932_v2 = vpop.f32.mrb[67].mxu1 }
0x14a2   : > { %v4964_v6 = vrot.slane %v4932_v2, 1 }
0x14a3   : > { %v4849_v36 = vpop.f32.mrb[84].mxu0 }
0x14a4   : > { %v4970_v8 = vsel %vm457_vm1, %v4964_v6, %v4965_v62  ;;  %v4953_v14 = vrot.slane %v4849_v36, 7  ;;  %v4851_v16 = vpop.f32.mrb[85].mxu0  ;;  %v6185_v17 = vpop.f32.mrb[68].mxu1 }
0x14a5   : > { %v4967_v31 = vrot.slane %v6185_v17, 1  ;;  %v4942_v18 = vpop.f32.mrb[69].mxu1 }
0x14a6   : > { %v4958_v13 = vsel %vm444_vm2, %v4952_v10, %v4953_v14  ;;  %v4966_v19 = vrot.slane %v4942_v18, 1 }
0x14a7   : > { %v4977_v20 = vadd.f32 %v4958_v13, %v4851_v16  ;;  %v4855_v21 = vpop.f32.mrb[86].mxu0  ;;  %v4971_v9 = vsel %vm457_vm1, %v4967_v31, %v4964_v6 }
0x14a8   : > { %v4969_v22 = vsel %vm457_vm1, %v4965_v62, %v4966_v19  ;;  %v4954_v23 = vrot.slane %v4855_v21, 7  ;;  %v4857_v26 = vpop.f32.mrb[87].mxu0  ;;  %v4968_v27 = vsel %vm457_vm1, %v4966_v19, %v4967_v31  ;;  %v4975_v55 = vsel %vm7786_vm5, %v4971_v9, 0.0 }
0x14a9   : > { %v4973_v29 = vsel %vm7765_vm3, %v4969_v22, 0.0 }
0x14aa   : > { %v4981_v32 = vadd.f32 %v4977_v20, %v4973_v29  ;;  %v4957_v37 = vsel %vm444_vm2, %v4953_v14, %v4954_v23 }
0x14ab   : > { %v4962_v35 = vsel %vm7769_vm4, %v4957_v37, 0.0  ;;  %v4861_v38 = vpop.f32.mrb[88].mxu0 }
0x14ac   : > { %v4978_v39 = vadd.f32 %v4962_v35, %v4857_v26  ;;  %v4955_v34 = vrot.slane %v4861_v38, 7  ;;  %v4863_v3 = vpop.f32.mrb[89].mxu0  ;;  %v4985_v28 = vadd.f32 %v4981_v32, %v4951_v33 }
0x14ae   : > { %v4982_v40 = vadd.f32 %v4978_v39, %v4968_v27  ;;  %v4959_v41 = vsel %vm444_vm2, %v4955_v34, %v4952_v10  ;;  %v4956_v4 = vsel %vm444_vm2, %v4954_v23, %v4955_v34  ;;  %v4989_v53 = vmax.f32 %v4985_v28, 0.0 }
0x14af   : > { %v4960_v51 = vsel %vm7790_vm6, %v4959_v41, 0.0  ;;  %v4979_v43 = vadd.f32 %v4956_v4, %v4863_v3 }
0x14b0   : > { %v4976_v45 = vadd.f32 %v4960_v51, %v4845_v61  ;;  %v4986_v50 = vadd.f32 %v4982_v40, %v4951_v33 }
0x14b1   : > { %v4983_v42 = vadd.f32 %v4979_v43, %v4975_v55 }
0x14b2   : > { %v4980_v11 = vadd.f32 %v4976_v45, %v4970_v8  ;;  %v4990_v30 = vmax.f32 %v4986_v50, 0.0 }
0x14b3   : > { %v4987_v54 = vadd.f32 %v4983_v42, %v4951_v33 }
0x14b4   : > { %v4984_v49 = vadd.f32 %v4980_v11, %v4951_v33 }
0x14b5   : > { %v4991_v7 = vmax.f32 %v4987_v54, 0.0 }
0x14b6   : > { %v4988_v52 = vmax.f32 %v4984_v49, 0.0 }
0x14b8   : > { %6218 = vmatprep.mubr.f32.mxu0 %v4988_v52 }
0x14b9   : > { %6219 = vmatmul.mubr.f32.vlgmr.msra.gmra.mrb[90].mxu0 %v4989_v53 }
0x14ba   : > { %6221 = vmatprep.mubr.f32.mxu0 %v4990_v30 }
0x14bd   : > { %6222 = vmatmul.mubr.f32.gmra.mrb[92].mxu0 %v4991_v7 }
0x158c   : > { %v6220_v46 = vpop.f32.mrb[90].mxu0 }
0x158d   : > { %v5075_v56 = vpop.f32.mrb[91].mxu0  ;;  %v5081_v57 = vadd.f32 %v6220_v46, %v5008_v5 }
0x158e   : > { %v5076_v12 = vadd.f32 %v5075_v56, %v5008_v5 }
0x158f   : > { %5095 = vst [vmem:[%s179_s19 + $0x8] sm:$0xff] %v5081_v57 }
0x1590   : > { %5094 = vst [vmem:[%s179_s19] sm:$0xff] %v5076_v12  ;;  %v6223_v15 = vpop.f32.mrb[92].mxu0 }
0x1591   : > { %v5085_v25 = vpop.f32.mrb[93].mxu0  ;;  %v5091_v59 = vadd.f32 %v6223_v15, %v5008_v5 }
0x1592   : > { %v5086_v58 = vadd.f32 %v5085_v25, %v5008_v5 }
0x1593   : > { %5097 = vst [vmem:[%s179_s19 + $0x18] sm:$0xff] %v5091_v59 }
0x1594   : > { %5096 = vst [vmem:[%s179_s19 + $0x10] sm:$0xff] %v5086_v58 }
0x1595 PF: > { %p13_p6 = scmp.ge.s32.totalorder %s7649_s20, 4   ;;  %s8250_s9 = smov %s7568_s10 }
0x1596   : > { %s8251_s10 = smov %s7572_s11  ;;  %s8252_s11 = smov %s7675_s7 }
0x1597   : > { %s8253_s12 = smov %s7649_s20  ;;  %15 = sbr.rel (!%p13_p6) target bundleno = 4 (0x4), region = 72 }
0x159e   :  { %5120 = vsyncpa [#allocation3], 1 }
0x159f   :  { %5122 = vsyncpa [#allocation3 + $0x1], 1 }
0x15a0   :  { %5123 = vsyncpa [#allocation5], 1 }

</bundles_post_ra>
